<compile_context>
chip_gen: v6e
topology: v6e:2x2x1
jax: 0.10.0
libtpu: 0.0.40
codegen_flags: <defaults>
</compile_context>

<pallas_src>
import functools
import math

import jax
import jax.numpy as jnp
from jax import lax
from jax.experimental import pallas as pl
from jax.experimental.pallas import tpu as pltpu

_LANES = 128  # lane width: hidden (16) / num_classes (8) / F_in are padded to multiples of this


def _round_up(x, m):
    return (x + m - 1) // m * m


# ---------------------------------------------------------------------------
# Kernel 0: feature transform  XW = X @ W_pad   (tiny, computed once, row-tiled)
# ---------------------------------------------------------------------------
def _feature_transform_kernel(x_ref, w_ref, out_ref):
    out_ref[...] = jnp.dot(
        x_ref[...], w_ref[...], preferred_element_type=jnp.float32
    ).astype(out_ref.dtype)


# ---------------------------------------------------------------------------
# Kernel 1: layer-1 aggregation + fused next-layer transform
#   out = relu(A @ XW1 + b1) @ W2_pad      (grid = (row blocks, k reduction))
# ---------------------------------------------------------------------------
def _agg_relu_matmul_kernel(a_ref, r_ref, b_ref, w_ref, out_ref, acc_ref):
    k = pl.program_id(1)

    @pl.when(k == 0)
    def _():
        acc_ref[...] = jnp.zeros_like(acc_ref)

    acc_ref[...] += jnp.dot(a_ref[...], r_ref[...],
                            preferred_element_type=jnp.float32)

    @pl.when(k == pl.num_programs(1) - 1)
    def _():
        h1 = jnp.maximum(acc_ref[...] + b_ref[...], 0.0)
        # dropout: identity (eval mode)
        out_ref[...] = jnp.dot(
            h1, w_ref[...], preferred_element_type=jnp.float32
        ).astype(out_ref.dtype)


# ---------------------------------------------------------------------------
# Kernel 2: layer-2 aggregation + masked log_softmax epilogue
#   out = log_softmax(A @ H1W2 + b2)       (grid = (row blocks, k reduction))
# ---------------------------------------------------------------------------
def _agg_logsoftmax_kernel(a_ref, r_ref, b_ref, out_ref, acc_ref, *, valid_cols):
    k = pl.program_id(1)

    @pl.when(k == 0)
    def _():
        acc_ref[...] = jnp.zeros_like(acc_ref)

    acc_ref[...] += jnp.dot(a_ref[...], r_ref[...],
                            preferred_element_type=jnp.float32)

    @pl.when(k == pl.num_programs(1) - 1)
    def _():
        h2 = acc_ref[...] + b_ref[...]
        col = lax.broadcasted_iota(jnp.int32, h2.shape, 1)
        mask = col < valid_cols                        # only the real class lanes
        m = jnp.max(jnp.where(mask, h2, -jnp.inf), axis=-1, keepdims=True)
        p = jnp.where(mask, jnp.exp(h2 - m), 0.0)
        lse = jnp.log(jnp.sum(p, axis=-1, keepdims=True))
        out_ref[...] = (h2 - m - lse).astype(out_ref.dtype)


def _vmem_limit_bytes(tm, tk):
    a_tile = tm * tk * 2              # bf16 A_hat block
    r_tile = tk * _LANES * 2          # bf16 right-hand block
    o_tile = tm * _LANES * 4          # output block (f32 upper bound)
    resident = tm * _LANES * 4 + _LANES * _LANES * 4 + 2 * _LANES * 4
    est = 2 * (a_tile + r_tile + o_tile) + resident    # double buffers + residents
    return int(min(100 * 2**20, max(8 * 2**20, 2 * est)))


@functools.partial(jax.jit, static_argnames=("tm", "tk"))
def gcn_forward(a_hat, x, w1, b1, w2, b2, *, tm=256, tk=512):
    n, f_in = x.shape
    hidden = w1.shape[1]
    c = w2.shape[1]
    assert hidden <= _LANES and c <= _LANES, "hidden/classes > 128 not handled here"

    n_pad = _round_up(n, math.lcm(tm, tk))
    f_pad = _round_up(f_in, _LANES)

    # ---- padding (lane-dense epilogues/outputs) + bf16 cast for the streamed A_hat ----
    a_p = jnp.pad(a_hat.astype(jnp.bfloat16), ((0, n_pad - n), (0, n_pad - n)))
    x_p = jnp.pad(x, ((0, n_pad - n), (0, f_pad - f_in)))
    w1_p = jnp.pad(w1, ((0, f_pad - f_in), (0, _LANES - hidden)))
    b1_p = jnp.pad(b1, (0, _LANES - hidden)).reshape(1, _LANES)
    w2_p = jnp.pad(w2, ((0, _LANES - hidden), (0, _LANES - c)))
    b2_p = jnp.pad(b2, (0, _LANES - c)).reshape(1, _LANES)

    vmem = _vmem_limit_bytes(tm, tk)
    row_grid = n_pad // tm
    k_grid = n_pad // tk

    # ---- pass 0: XW1 = X @ W1 (computed once; streamed thereafter) ----
    xw1 = pl.pallas_call(
        _feature_transform_kernel,
        out_shape=jax.ShapeDtypeStruct((n_pad, _LANES), jnp.bfloat16),
        grid=(row_grid,),
        in_specs=[
            pl.BlockSpec((tm, f_pad), lambda i: (i, 0)),
            pl.BlockSpec((f_pad, _LANES), lambda i: (0, 0)),
        ],
        out_specs=pl.BlockSpec((tm, _LANES), lambda i: (i, 0)),
        compiler_params=pltpu.CompilerParams(
            dimension_semantics=("parallel",), vmem_limit_bytes=vmem),
    )(x_p, w1_p)

    # ---- pass 1: H1W2 = relu(A_hat @ XW1 + b1) @ W2 ----
    h1w2 = pl.pallas_call(
        _agg_relu_matmul_kernel,
        out_shape=jax.ShapeDtypeStruct((n_pad, _LANES), jnp.bfloat16),
        grid=(row_grid, k_grid),
        in_specs=[
            pl.BlockSpec((tm, tk), lambda i, k: (i, k)),
            pl.BlockSpec((tk, _LANES), lambda i, k: (k, 0)),
            pl.BlockSpec((1, _LANES), lambda i, k: (0, 0)),
            pl.BlockSpec((_LANES, _LANES), lambda i, k: (0, 0)),
        ],
        out_specs=pl.BlockSpec((tm, _LANES), lambda i, k: (i, 0)),
        scratch_shapes=[pltpu.VMEM((tm, _LANES), jnp.float32)],
        compiler_params=pltpu.CompilerParams(
            dimension_semantics=("parallel", "arbitrary"),
            vmem_limit_bytes=vmem),
    )(a_p, xw1, b1_p, w2_p)

    # ---- pass 2: out = log_softmax(A_hat @ H1W2 + b2) ----
    out_p = pl.pallas_call(
        functools.partial(_agg_logsoftmax_kernel, valid_cols=c),
        out_shape=jax.ShapeDtypeStruct((n_pad, _LANES), jnp.float32),
        grid=(row_grid, k_grid),
        in_specs=[
            pl.BlockSpec((tm, tk), lambda i, k: (i, k)),
            pl.BlockSpec((tk, _LANES), lambda i, k: (k, 0)),
            pl.BlockSpec((1, _LANES), lambda i, k: (0, 0)),
        ],
        out_specs=pl.BlockSpec((tm, _LANES), lambda i, k: (i, 0)),
        scratch_shapes=[pltpu.VMEM((tm, _LANES), jnp.float32)],
        compiler_params=pltpu.CompilerParams(
            dimension_semantics=("parallel", "arbitrary"),
            vmem_limit_bytes=vmem),
    )(a_p, h1w2, b2_p)

    return out_p[:n, :c]


def build_normalized_adjacency(edge_index, num_nodes):
    """Dense A_hat = D^{-1/2} (A + I) D^{-1/2}, matching PyG GCNConv's gcn_norm.

    Duplicate edges are counted (scatter-add, like PyG message passing); self loops
    are added only for nodes without one (add_remaining_self_loops semantics).
    """
    src = edge_index[0]
    dst = edge_index[1]
    a = jnp.zeros((num_nodes, num_nodes), jnp.float32)
    a = a.at[dst, src].add(1.0)                           # count duplicate edges
    has_loop = jnp.diagonal(a) > 0
    a = a + jnp.diag(jnp.where(has_loop, 0.0, 1.0))       # add remaining self loops
    deg = jnp.sum(a, axis=1)
    dinv = jnp.where(deg > 0, 1.0 / jnp.sqrt(deg), 0.0)
    return dinv[:, None] * a * dinv[None, :]


def reference_forward_f32(a_hat, x, w1, b1, w2, b2):
    h1 = jnp.maximum(a_hat @ (x @ w1) + b1, 0.0)
    h2 = a_hat @ (h1 @ w2) + b2
    return jax.nn.log_softmax(h2, axis=1)


def reference_forward_matched(a_hat, x, w1, b1, w2, b2):
    """Same mixed precision as the kernels: bf16 streamed operands, f32 accumulation."""
    f32 = jnp.float32
    a = a_hat.astype(jnp.bfloat16).astype(f32)
    xw1 = (x @ w1).astype(jnp.bfloat16).astype(f32)
    h1 = jnp.maximum(a @ xw1 + b1, 0.0)
    hw2 = (h1 @ w2).astype(jnp.bfloat16).astype(f32)
    h2 = a @ hw2 + b2
    return jax.nn.log_softmax(h2, axis=1)


if __name__ == "__main__":
    # Small synthetic graph consistent with the module's forward:
    #   N nodes, F input features, hidden=16, C classes.
    N, F_IN, HIDDEN, C, E = 1024, 64, 16, 8, 8192

    key = jax.random.PRNGKey(0)
    k_x, k_e, k_w1, k_b1, k_w2, k_b2 = jax.random.split(key, 6)

    x = jax.random.normal(k_x, (N, F_IN), jnp.float32)
    edge_index = jax.random.randint(k_e, (2, E), 0, N, dtype=jnp.int32)

    # Deterministic parameter init (Glorot-ish scale), shapes from GCNConv(F_IN,16), GCNConv(16,C)
    w1 = jax.random.normal(k_w1, (F_IN, HIDDEN), jnp.float32) * (1.0 / jnp.sqrt(F_IN))
    b1 = 0.1 * jax.random.normal(k_b1, (HIDDEN,), jnp.float32)
    w2 = jax.random.normal(k_w2, (HIDDEN, C), jnp.float32) * (1.0 / jnp.sqrt(HIDDEN))
    b2 = 0.1 * jax.random.normal(k_b2, (C,), jnp.float32)

    a_hat = build_normalized_adjacency(edge_index, N)

    out = gcn_forward(a_hat, x, w1, b1, w2, b2, tm=256, tk=512)
    out = jax.block_until_ready(out)
    assert out.shape == (N, C)

    ref_matched = reference_forward_matched(a_hat, x, w1, b1, w2, b2)
    assert jnp.allclose(out, ref_matched, atol=2e-2, rtol=2e-2), (
        f"mismatch vs matched-precision reference: "
        f"max abs diff {jnp.max(jnp.abs(out - ref_matched))}")

    ref_f32 = reference_forward_f32(a_hat, x, w1, b1, w2, b2)
    assert jnp.allclose(out, ref_f32, atol=1e-1, rtol=1e-1), (
        f"mismatch vs f32 reference: "
        f"max abs diff {jnp.max(jnp.abs(out - ref_f32))}")

    print("KERNEL_OK")
</pallas_src>

<mosaic_0001>
module attributes {stable_mosaic.version = 11 : i64} {
  func.func @_feature_transform_kernel(%arg0: i32, %arg1: memref<256x128xf32, #tpu.memory_space<vmem>>, %arg2: memref<128x128xf32, #tpu.memory_space<vmem>>, %arg3: memref<256x128xbf16, #tpu.memory_space<vmem>>) attributes {dimension_semantics = [#tpu.dimension_semantics<parallel>], iteration_bounds = array<i64: 4>, scalar_prefetch = 0 : i64, scratch_operands = 0 : i64, tpu.core_type = #tpu.core_type<tc>, window_params = [{transform_indices = @transform_0, window_bounds = array<i64: 256, 128>}, {pipeline_mode = #tpu.pipeline_mode<synchronous>, transform_indices = @transform_1, window_bounds = array<i64: 128, 128>}, {transform_indices = @transform_2, window_bounds = array<i64: 256, 128>}]} {
    %c0 = arith.constant 0 : index
    %c0_0 = arith.constant 0 : index
    %0 = vector.load %arg1[%c0, %c0_0] : memref<256x128xf32, #tpu.memory_space<vmem>>, vector<256x128xf32>
    %c0_1 = arith.constant 0 : index
    %c0_2 = arith.constant 0 : index
    %1 = vector.load %arg2[%c0_1, %c0_2] : memref<128x128xf32, #tpu.memory_space<vmem>>, vector<128x128xf32>
    %cst = arith.constant dense<0.000000e+00> : vector<256x128xf32>
    %2 = tpu.matmul %0, %1, %cst {dimension_numbers = #tpu.dot_dimension_numbers<[1], [0], [0], [1], [0, 0, 1, 1], [], []>} : vector<256x128xf32>, vector<128x128xf32>, vector<256x128xf32> -> vector<256x128xf32>
    %3 = arith.truncf %2 : vector<256x128xf32> to vector<256x128xbf16>
    %c0_3 = arith.constant 0 : index
    %c0_4 = arith.constant 0 : index
    %4 = vector.load %arg3[%c0_3, %c0_4] : memref<256x128xbf16, #tpu.memory_space<vmem>>, vector<256x128xbf16>
    tpu.vector_store %arg3[%c0_3, %c0_4], %3 {strides = array<i32>} : memref<256x128xbf16, #tpu.memory_space<vmem>>, vector<256x128xbf16>,
    return
  }
  func.func @transform_0(%arg0: i32) -> (i32, i32) {
    %c0_i32 = arith.constant 0 : i32
    %c0_i32_0 = arith.constant 0 : i32
    return %arg0, %c0_i32 : i32, i32
  }
  func.func @transform_1(%arg0: i32) -> (i32, i32) {
    %c0_i32 = arith.constant 0 : i32
    %c0_i32_0 = arith.constant 0 : i32
    %c0_i32_1 = arith.constant 0 : i32
    return %c0_i32, %c0_i32_0 : i32, i32
  }
  func.func @transform_2(%arg0: i32) -> (i32, i32) {
    %c0_i32 = arith.constant 0 : i32
    %c0_i32_0 = arith.constant 0 : i32
    return %arg0, %c0_i32 : i32, i32
  }
}

module attributes {stable_mosaic.version = 11 : i64} {
  func.func @_agg_relu_matmul_kernel(%arg0: i32, %arg1: i32, %arg2: memref<256x512xbf16, #tpu.memory_space<vmem>>, %arg3: memref<512x128xbf16, #tpu.memory_space<vmem>>, %arg4: memref<1x128xf32, #tpu.memory_space<vmem>>, %arg5: memref<128x128xf32, #tpu.memory_space<vmem>>, %arg6: memref<256x128xbf16, #tpu.memory_space<vmem>>, %arg7: memref<256x128xf32, #tpu.memory_space<vmem>>) attributes {dimension_semantics = [#tpu.dimension_semantics<parallel>, #tpu.dimension_semantics<arbitrary>], iteration_bounds = array<i64: 4, 2>, scalar_prefetch = 0 : i64, scratch_operands = 1 : i64, tpu.core_type = #tpu.core_type<tc>, window_params = [{transform_indices = @transform_0, window_bounds = array<i64: 256, 512>}, {transform_indices = @transform_1, window_bounds = array<i64: 512, 128>}, {pipeline_mode = #tpu.pipeline_mode<synchronous>, transform_indices = @transform_2, window_bounds = array<i64: 1, 128>}, {pipeline_mode = #tpu.pipeline_mode<synchronous>, transform_indices = @transform_3, window_bounds = array<i64: 128, 128>}, {transform_indices = @transform_4, window_bounds = array<i64: 256, 128>}]} {
    %c0_i32 = arith.constant 0 : i32
    %0 = arith.cmpi eq, %arg1, %c0_i32 : i32
    %1 = arith.extui %0 : i1 to i32
    %c0_i32_0 = arith.constant 0 : i32
    %2 = arith.cmpi ne, %1, %c0_i32_0 : i32
    scf.if %2 {
      %cst_9 = arith.constant 0.000000e+00 : f32
      %12 = vector.broadcast %cst_9 : f32 to vector<256x128xf32>
      %c0_10 = arith.constant 0 : index
      %c0_11 = arith.constant 0 : index
      %13 = vector.load %arg7[%c0_10, %c0_11] : memref<256x128xf32, #tpu.memory_space<vmem>>, vector<256x128xf32>
      tpu.vector_store %arg7[%c0_10, %c0_11], %12 {strides = array<i32>} : memref<256x128xf32, #tpu.memory_space<vmem>>, vector<256x128xf32>,
    } else {
    }
    %c0 = arith.constant 0 : index
    %c0_1 = arith.constant 0 : index
    %3 = vector.load %arg7[%c0, %c0_1] : memref<256x128xf32, #tpu.memory_space<vmem>>, vector<256x128xf32>
    %c0_2 = arith.constant 0 : index
    %c0_3 = arith.constant 0 : index
    %4 = vector.load %arg2[%c0_2, %c0_3] : memref<256x512xbf16, #tpu.memory_space<vmem>>, vector<256x512xbf16>
    %c0_4 = arith.constant 0 : index
    %c0_5 = arith.constant 0 : index
    %5 = vector.load %arg3[%c0_4, %c0_5] : memref<512x128xbf16, #tpu.memory_space<vmem>>, vector<512x128xbf16>
    %cst = arith.constant dense<0.000000e+00> : vector<256x128xf32>
    %6 = tpu.matmul %4, %5, %cst {dimension_numbers = #tpu.dot_dimension_numbers<[1], [0], [0], [1], [0, 0, 1, 1], [], []>} : vector<256x512xbf16>, vector<512x128xbf16>, vector<256x128xf32> -> vector<256x128xf32>
    %7 = arith.addf %3, %6 : vector<256x128xf32>
    %c0_6 = arith.constant 0 : index
    %c0_7 = arith.constant 0 : index
    %8 = vector.load %arg7[%c0_6, %c0_7] : memref<256x128xf32, #tpu.memory_space<vmem>>, vector<256x128xf32>
    tpu.vector_store %arg7[%c0_6, %c0_7], %7 {strides = array<i32>} : memref<256x128xf32, #tpu.memory_space<vmem>>, vector<256x128xf32>,
    %c1_i32 = arith.constant 1 : i32
    %9 = arith.cmpi eq, %arg1, %c1_i32 : i32
    %10 = arith.extui %9 : i1 to i32
    %c0_i32_8 = arith.constant 0 : i32
    %11 = arith.cmpi ne, %10, %c0_i32_8 : i32
    scf.if %11 {
      %c0_9 = arith.constant 0 : index
      %c0_10 = arith.constant 0 : index
      %12 = vector.load %arg7[%c0_9, %c0_10] : memref<256x128xf32, #tpu.memory_space<vmem>>, vector<256x128xf32>
      %c0_11 = arith.constant 0 : index
      %c0_12 = arith.constant 0 : index
      %13 = vector.load %arg4[%c0_11, %c0_12] : memref<1x128xf32, #tpu.memory_space<vmem>>, vector<1x128xf32>
      %14 = vector.broadcast %13 : vector<1x128xf32> to vector<256x128xf32>
      %15 = arith.addf %12, %14 : vector<256x128xf32>
      %cst_13 = arith.constant 0.000000e+00 : f32
      %16 = vector.broadcast %cst_13 : f32 to vector<256x128xf32>
      %17 = arith.maximumf %15, %16 : vector<256x128xf32>
      %c0_14 = arith.constant 0 : index
      %c0_15 = arith.constant 0 : index
      %18 = vector.load %arg5[%c0_14, %c0_15] : memref<128x128xf32, #tpu.memory_space<vmem>>, vector<128x128xf32>
      %cst_16 = arith.constant dense<0.000000e+00> : vector<256x128xf32>
      %19 = tpu.matmul %17, %18, %cst_16 {dimension_numbers = #tpu.dot_dimension_numbers<[1], [0], [0], [1], [0, 0, 1, 1], [], []>} : vector<256x128xf32>, vector<128x128xf32>, vector<256x128xf32> -> vector<256x128xf32>
      %20 = arith.truncf %19 : vector<256x128xf32> to vector<256x128xbf16>
      %c0_17 = arith.constant 0 : index
      %c0_18 = arith.constant 0 : index
      %21 = vector.load %arg6[%c0_17, %c0_18] : memref<256x128xbf16, #tpu.memory_space<vmem>>, vector<256x128xbf16>
      tpu.vector_store %arg6[%c0_17, %c0_18], %20 {strides = array<i32>} : memref<256x128xbf16, #tpu.memory_space<vmem>>, vector<256x128xbf16>,
    } else {
    }
    return
  }
  func.func @transform_0(%arg0: i32, %arg1: i32) -> (i32, i32) {
    %c0_i32 = arith.constant 0 : i32
    return %arg0, %arg1 : i32, i32
  }
  func.func @transform_1(%arg0: i32, %arg1: i32) -> (i32, i32) {
    %c0_i32 = arith.constant 0 : i32
    %c0_i32_0 = arith.constant 0 : i32
    return %arg1, %c0_i32 : i32, i32
  }
  func.func @transform_2(%arg0: i32, %arg1: i32) -> (i32, i32) {
    %c0_i32 = arith.constant 0 : i32
    %c0_i32_0 = arith.constant 0 : i32
    %c0_i32_1 = arith.constant 0 : i32
    return %c0_i32, %c0_i32_0 : i32, i32
  }
  func.func @transform_3(%arg0: i32, %arg1: i32) -> (i32, i32) {
    %c0_i32 = arith.constant 0 : i32
    %c0_i32_0 = arith.constant 0 : i32
    %c0_i32_1 = arith.constant 0 : i32
    return %c0_i32, %c0_i32_0 : i32, i32
  }
  func.func @transform_4(%arg0: i32, %arg1: i32) -> (i32, i32) {
    %c0_i32 = arith.constant 0 : i32
    %c0_i32_0 = arith.constant 0 : i32
    return %arg0, %c0_i32 : i32, i32
  }
}

module attributes {stable_mosaic.version = 11 : i64} {
  func.func @_agg_logsoftmax_kernel(%arg0: i32, %arg1: i32, %arg2: memref<256x512xbf16, #tpu.memory_space<vmem>>, %arg3: memref<512x128xbf16, #tpu.memory_space<vmem>>, %arg4: memref<1x128xf32, #tpu.memory_space<vmem>>, %arg5: memref<256x128xf32, #tpu.memory_space<vmem>>, %arg6: memref<256x128xf32, #tpu.memory_space<vmem>>) attributes {dimension_semantics = [#tpu.dimension_semantics<parallel>, #tpu.dimension_semantics<arbitrary>], iteration_bounds = array<i64: 4, 2>, scalar_prefetch = 0 : i64, scratch_operands = 1 : i64, tpu.core_type = #tpu.core_type<tc>, window_params = [{transform_indices = @transform_0, window_bounds = array<i64: 256, 512>}, {transform_indices = @transform_1, window_bounds = array<i64: 512, 128>}, {pipeline_mode = #tpu.pipeline_mode<synchronous>, transform_indices = @transform_2, window_bounds = array<i64: 1, 128>}, {transform_indices = @transform_3, window_bounds = array<i64: 256, 128>}]} {
    %c0_i32 = arith.constant 0 : i32
    %0 = arith.cmpi eq, %arg1, %c0_i32 : i32
    %1 = arith.extui %0 : i1 to i32
    %c0_i32_0 = arith.constant 0 : i32
    %2 = arith.cmpi ne, %1, %c0_i32_0 : i32
    scf.if %2 {
      %cst_9 = arith.constant 0.000000e+00 : f32
      %12 = vector.broadcast %cst_9 : f32 to vector<256x128xf32>
      %c0_10 = arith.constant 0 : index
      %c0_11 = arith.constant 0 : index
      %13 = vector.load %arg6[%c0_10, %c0_11] : memref<256x128xf32, #tpu.memory_space<vmem>>, vector<256x128xf32>
      tpu.vector_store %arg6[%c0_10, %c0_11], %12 {strides = array<i32>} : memref<256x128xf32, #tpu.memory_space<vmem>>, vector<256x128xf32>,
    } else {
    }
    %c0 = arith.constant 0 : index
    %c0_1 = arith.constant 0 : index
    %3 = vector.load %arg6[%c0, %c0_1] : memref<256x128xf32, #tpu.memory_space<vmem>>, vector<256x128xf32>
    %c0_2 = arith.constant 0 : index
    %c0_3 = arith.constant 0 : index
    %4 = vector.load %arg2[%c0_2, %c0_3] : memref<256x512xbf16, #tpu.memory_space<vmem>>, vector<256x512xbf16>
    %c0_4 = arith.constant 0 : index
    %c0_5 = arith.constant 0 : index
    %5 = vector.load %arg3[%c0_4, %c0_5] : memref<512x128xbf16, #tpu.memory_space<vmem>>, vector<512x128xbf16>
    %cst = arith.constant dense<0.000000e+00> : vector<256x128xf32>
    %6 = tpu.matmul %4, %5, %cst {dimension_numbers = #tpu.dot_dimension_numbers<[1], [0], [0], [1], [0, 0, 1, 1], [], []>} : vector<256x512xbf16>, vector<512x128xbf16>, vector<256x128xf32> -> vector<256x128xf32>
    %7 = arith.addf %3, %6 : vector<256x128xf32>
    %c0_6 = arith.constant 0 : index
    %c0_7 = arith.constant 0 : index
    %8 = vector.load %arg6[%c0_6, %c0_7] : memref<256x128xf32, #tpu.memory_space<vmem>>, vector<256x128xf32>
    tpu.vector_store %arg6[%c0_6, %c0_7], %7 {strides = array<i32>} : memref<256x128xf32, #tpu.memory_space<vmem>>, vector<256x128xf32>,
    %c1_i32 = arith.constant 1 : i32
    %9 = arith.cmpi eq, %arg1, %c1_i32 : i32
    %10 = arith.extui %9 : i1 to i32
    %c0_i32_8 = arith.constant 0 : i32
    %11 = arith.cmpi ne, %10, %c0_i32_8 : i32
    scf.if %11 {
      %c0_9 = arith.constant 0 : index
      %c0_10 = arith.constant 0 : index
      %12 = vector.load %arg6[%c0_9, %c0_10] : memref<256x128xf32, #tpu.memory_space<vmem>>, vector<256x128xf32>
      %c0_11 = arith.constant 0 : index
      %c0_12 = arith.constant 0 : index
      %13 = vector.load %arg4[%c0_11, %c0_12] : memref<1x128xf32, #tpu.memory_space<vmem>>, vector<1x128xf32>
      %14 = vector.broadcast %13 : vector<1x128xf32> to vector<256x128xf32>
      %15 = arith.addf %12, %14 : vector<256x128xf32>
      %16 = tpu.iota {dimensions = array<i32: 1>} : vector<256x128xi32>
      %c8_i32 = arith.constant 8 : i32
      %17 = vector.broadcast %c8_i32 : i32 to vector<256x128xi32>
      %18 = arith.cmpi slt, %16, %17 : vector<256x128xi32>
      %cst_13 = arith.constant 0xFF800000 : f32
      %19 = vector.broadcast %cst_13 : f32 to vector<256x128xf32>
      %20 = arith.select %18, %15, %19 : vector<256x128xi1>, vector<256x128xf32>
      %cst_14 = arith.constant dense<0xFF800000> : vector<256xf32>
      %21 = vector.multi_reduction <maximumf>, %20, %cst_14 [1] : vector<256x128xf32> to vector<256xf32>
      %22 = vector.shape_cast %21 : vector<256xf32> to vector<256x1xf32>
      %23 = vector.broadcast %22 : vector<256x1xf32> to vector<256x128xf32>
      %24 = arith.subf %15, %23 : vector<256x128xf32>
      %25 = math.exp %24 : vector<256x128xf32>
      %cst_15 = arith.constant 0.000000e+00 : f32
      %26 = vector.broadcast %cst_15 : f32 to vector<256x128xf32>
      %27 = arith.select %18, %25, %26 : vector<256x128xi1>, vector<256x128xf32>
      %cst_16 = arith.constant dense<0.000000e+00> : vector<256xf32>
      %28 = vector.multi_reduction <add>, %27, %cst_16 [1] : vector<256x128xf32> to vector<256xf32>
      %29 = vector.shape_cast %28 : vector<256xf32> to vector<256x1xf32>
      %30 = math.log %29 : vector<256x1xf32>
      %31 = vector.broadcast %22 : vector<256x1xf32> to vector<256x128xf32>
      %32 = arith.subf %15, %31 : vector<256x128xf32>
      %33 = vector.broadcast %30 : vector<256x1xf32> to vector<256x128xf32>
      %34 = arith.subf %32, %33 : vector<256x128xf32>
      %c0_17 = arith.constant 0 : index
      %c0_18 = arith.constant 0 : index
      %35 = vector.load %arg5[%c0_17, %c0_18] : memref<256x128xf32, #tpu.memory_space<vmem>>, vector<256x128xf32>
      tpu.vector_store %arg5[%c0_17, %c0_18], %34 {strides = array<i32>} : memref<256x128xf32, #tpu.memory_space<vmem>>, vector<256x128xf32>,
    } else {
    }
    return
  }
  func.func @transform_0(%arg0: i32, %arg1: i32) -> (i32, i32) {
    %c0_i32 = arith.constant 0 : i32
    return %arg0, %arg1 : i32, i32
  }
  func.func @transform_1(%arg0: i32, %arg1: i32) -> (i32, i32) {
    %c0_i32 = arith.constant 0 : i32
    %c0_i32_0 = arith.constant 0 : i32
    return %arg1, %c0_i32 : i32, i32
  }
  func.func @transform_2(%arg0: i32, %arg1: i32) -> (i32, i32) {
    %c0_i32 = arith.constant 0 : i32
    %c0_i32_0 = arith.constant 0 : i32
    %c0_i32_1 = arith.constant 0 : i32
    return %c0_i32, %c0_i32_0 : i32, i32
  }
  func.func @transform_3(%arg0: i32, %arg1: i32) -> (i32, i32) {
    %c0_i32 = arith.constant 0 : i32
    %c0_i32_0 = arith.constant 0 : i32
    return %arg0, %c0_i32 : i32, i32
  }
}

</mosaic_0001>

<bundles_post_ra>
// kernel: gcn_forward.3
= control target key start
LH: loop header
LB: loop body
LE: loop exit
PB: predicated region body
PF: predicated region fallthrough
CT: control target
= control target key end

     0   :  { %s997_s9 = smov 0   ;;  %s1120_s0 = inlined_call_operand.vmem [shape: f32[1024,128], index: 0, kind: input, shape index: {}]   ;;  %s1121_s1 = inlined_call_operand.vmem [shape: f32[128,128], index: 1, kind: input, shape index: {}]   ;;  %s1122_s2 = inlined_call_operand.vmem [shape: bf16[1024,128], index: 2, kind: output, shape index: {}]  }
   0x1 LB: > { %s636_s10 = sadd.s32 4294967295, %s980_s9   ;;  %p640_p0 = scmp.ge.s32.totalorder %s980_s9, 1  ;;  %s980_s9 = sphi %s997_s9, %s12_s9  }
   0x2   : > { %p113_p1 = scmp.lt.s32.totalorder %s980_s9, 5 }
   0x4   : > { %p114_p2 = pnand %p640_p0, %p113_p1 }
   0x5   : > { %s641_s27 = sshll.u32 (!%p114_p2), %s636_s10, 5 }
   0x6   : > { %117 = sbr.rel (%p114_p2) target bundleno = 271 (0x10f), region = 28  ;;  %p136_p3 = scmp.lt.s32.totalorder (!%p114_p2), %s641_s27, 127 }
   0xb   : > { %v194_v0 = vld [vmem:[%s1121_s1 + $0x78] sm:$0xff]  ;;  %v193_v1 = vld [vmem:[%s1121_s1 + $0x70] sm:$0xff]  ;;  %v192_v2 = vld [vmem:[%s1121_s1 + $0x68] sm:$0xff]  ;;  %s1124_s27 = smov (!%p136_p3, %s641_s27), 127 }
   0xc   : > { %854 = vmatprep.subr.mxu0 %v194_v0  ;;  %934 = vmatprep.subr.mxu1 %v194_v0  ;;  %v191_v3 = vld [vmem:[%s1121_s1 + $0x60] sm:$0xff]  ;;  %v190_v4 = vld [vmem:[%s1121_s1 + $0x58] sm:$0xff]  ;;  %v189_v5 = vld [vmem:[%s1121_s1 + $0x50] sm:$0xff]  ;;  %s642_s13 = sshll.u32 %s1124_s27, 3  ;;  %s644_s21 = sshll.u32 %s1124_s27, 2 }
   0xd   : > { %855 = vmatpush3.msra.mxu0 %v194_v0  ;;  %950 = vmatpush3.msra.mxu1 %v194_v0  ;;  %v188_v6 = vld [vmem:[%s1121_s1 + $0x48] sm:$0xff]  ;;  %v187_v7 = vld [vmem:[%s1121_s1 + $0x40] sm:$0xff]  ;;  %v186_v8 = vld [vmem:[%s1121_s1 + $0x38] sm:$0xff]  ;;  %s1058_s18 = scalar_lea.vmem %s1120_s0, %s642_s13  ;;  %s1099_s24 = scalar_lea.vmem %s1122_s2, %s644_s21 }
   0xe   : > { %856 = vmatprep.subr.mxu0 %v193_v1  ;;  %935 = vmatprep.subr.mxu1 %v193_v1  ;;  %v185_v9 = vld [vmem:[%s1121_s1 + $0x30] sm:$0xff]  ;;  %v184_v10 = vld [vmem:[%s1121_s1 + $0x28] sm:$0xff]  ;;  %v183_v11 = vld [vmem:[%s1121_s1 + $0x20] sm:$0xff] }
   0xf   : > { %857 = vmatpush3.msra.mxu0 %v193_v1  ;;  %951 = vmatpush3.msra.mxu1 %v193_v1  ;;  %v182_v12 = vld [vmem:[%s1121_s1 + $0x18] sm:$0xff]  ;;  %v181_v13 = vld [vmem:[%s1121_s1 + $0x10] sm:$0xff]  ;;  %v180_v14 = vld [vmem:[%s1121_s1 + $0x8] sm:$0xff] }
  0x10   : > { %858 = vmatprep.subr.mxu0 %v192_v2  ;;  %936 = vmatprep.subr.mxu1 %v192_v2  ;;  %v179_v15 = vld [vmem:[%s1121_s1] sm:$0xff]  ;;  %v148_v18 = vld [vmem:[%s1058_s18 + $0x8] sm:$0xff]  ;;  %v149_v20 = vld [vmem:[%s1058_s18 + $0x10] sm:$0xff] }
  0x11   : > { %859 = vmatpush3.msra.mxu0 %v192_v2  ;;  %952 = vmatpush3.msra.mxu1 %v192_v2  ;;  %v147_v16 = vld [vmem:[%s1058_s18] sm:$0xff]  ;;  %v164_v19 = vld [vmem:[%s1058_s18 + $0x88] sm:$0xff]  ;;  %v165_v21 = vld [vmem:[%s1058_s18 + $0x90] sm:$0xff] }
  0x12   : > { %860 = vmatprep.subr.mxu0 %v191_v3  ;;  %937 = vmatprep.subr.mxu1 %v191_v3  ;;  %v163_v17 = vld [vmem:[%s1058_s18 + $0x80] sm:$0xff]  ;;  %v150_v22 = vld [vmem:[%s1058_s18 + $0x18] sm:$0xff]  ;;  %v152_v26 = vld [vmem:[%s1058_s18 + $0x28] sm:$0xff] }
  0x13   : > { %861 = vmatpush3.msra.mxu0 %v191_v3  ;;  %953 = vmatpush3.msra.mxu1 %v191_v3  ;;  %v166_v23 = vld [vmem:[%s1058_s18 + $0x98] sm:$0xff]  ;;  %v151_v24 = vld [vmem:[%s1058_s18 + $0x20] sm:$0xff]  ;;  %v168_v27 = vld [vmem:[%s1058_s18 + $0xa8] sm:$0xff] }
  0x14   : > { %862 = vmatprep.subr.mxu0 %v190_v4  ;;  %938 = vmatprep.subr.mxu1 %v190_v4  ;;  %v167_v25 = vld [vmem:[%s1058_s18 + $0xa0] sm:$0xff]  ;;  %v153_v28 = vld [vmem:[%s1058_s18 + $0x30] sm:$0xff]  ;;  %v154_v30 = vld [vmem:[%s1058_s18 + $0x38] sm:$0xff] }
  0x15   : > { %863 = vmatpush3.msra.mxu0 %v190_v4  ;;  %954 = vmatpush3.msra.mxu1 %v190_v4  ;;  %v169_v29 = vld [vmem:[%s1058_s18 + $0xb0] sm:$0xff]  ;;  %v170_v31 = vld [vmem:[%s1058_s18 + $0xb8] sm:$0xff]  ;;  %v155_v32 = vld [vmem:[%s1058_s18 + $0x40] sm:$0xff] }
  0x16   : > { %864 = vmatprep.subr.mxu0 %v189_v5  ;;  %939 = vmatprep.subr.mxu1 %v189_v5  ;;  %v171_v33 = vld [vmem:[%s1058_s18 + $0xc0] sm:$0xff]  ;;  %v156_v34 = vld [vmem:[%s1058_s18 + $0x48] sm:$0xff]  ;;  %v157_v36 = vld [vmem:[%s1058_s18 + $0x50] sm:$0xff] }
  0x17   : > { %865 = vmatpush3.msra.mxu0 %v189_v5  ;;  %955 = vmatpush3.msra.mxu1 %v189_v5  ;;  %v172_v35 = vld [vmem:[%s1058_s18 + $0xc8] sm:$0xff]  ;;  %v173_v37 = vld [vmem:[%s1058_s18 + $0xd0] sm:$0xff]  ;;  %v158_v38 = vld [vmem:[%s1058_s18 + $0x58] sm:$0xff] }
  0x18   : > { %866 = vmatprep.subr.mxu0 %v188_v6  ;;  %940 = vmatprep.subr.mxu1 %v188_v6  ;;  %v174_v39 = vld [vmem:[%s1058_s18 + $0xd8] sm:$0xff]  ;;  %v159_v40 = vld [vmem:[%s1058_s18 + $0x60] sm:$0xff]  ;;  %v160_v42 = vld [vmem:[%s1058_s18 + $0x68] sm:$0xff] }
  0x19   : > { %867 = vmatpush3.msra.mxu0 %v188_v6  ;;  %956 = vmatpush3.msra.mxu1 %v188_v6  ;;  %v175_v41 = vld [vmem:[%s1058_s18 + $0xe0] sm:$0xff]  ;;  %v176_v43 = vld [vmem:[%s1058_s18 + $0xe8] sm:$0xff]  ;;  %v161_v44 = vld [vmem:[%s1058_s18 + $0x70] sm:$0xff] }
  0x1a   : > { %868 = vmatprep.subr.mxu0 %v187_v7  ;;  %941 = vmatprep.subr.mxu1 %v187_v7  ;;  %v177_v45 = vld [vmem:[%s1058_s18 + $0xf0] sm:$0xff]  ;;  %v162_v46 = vld [vmem:[%s1058_s18 + $0x78] sm:$0xff] }
  0x1b   : > { %869 = vmatpush3.msra.mxu0 %v187_v7  ;;  %957 = vmatpush3.msra.mxu1 %v187_v7  ;;  %v178_v47 = vld [vmem:[%s1058_s18 + $0xf8] sm:$0xff] }
  0x1c   : > { %870 = vmatprep.subr.mxu0 %v186_v8  ;;  %942 = vmatprep.subr.mxu1 %v186_v8 }
  0x1d   : > { %871 = vmatpush3.msra.mxu0 %v186_v8  ;;  %958 = vmatpush3.msra.mxu1 %v186_v8 }
  0x1e   : > { %872 = vmatprep.subr.mxu0 %v185_v9  ;;  %943 = vmatprep.subr.mxu1 %v185_v9 }
  0x1f   : > { %873 = vmatpush3.msra.mxu0 %v185_v9  ;;  %959 = vmatpush3.msra.mxu1 %v185_v9 }
  0x20   : > { %874 = vmatprep.subr.mxu0 %v184_v10  ;;  %944 = vmatprep.subr.mxu1 %v184_v10 }
  0x21   : > { %875 = vmatpush3.msra.mxu0 %v184_v10  ;;  %960 = vmatpush3.msra.mxu1 %v184_v10 }
  0x22   : > { %876 = vmatprep.subr.mxu0 %v183_v11  ;;  %945 = vmatprep.subr.mxu1 %v183_v11 }
  0x23   : > { %877 = vmatpush3.msra.mxu0 %v183_v11  ;;  %961 = vmatpush3.msra.mxu1 %v183_v11 }
  0x24   : > { %878 = vmatprep.subr.mxu0 %v182_v12  ;;  %946 = vmatprep.subr.mxu1 %v182_v12 }
  0x25   : > { %879 = vmatpush3.msra.mxu0 %v182_v12  ;;  %962 = vmatpush3.msra.mxu1 %v182_v12 }
  0x26   : > { %880 = vmatprep.subr.mxu0 %v181_v13  ;;  %947 = vmatprep.subr.mxu1 %v181_v13 }
  0x27   : > { %881 = vmatpush3.msra.mxu0 %v181_v13  ;;  %963 = vmatpush3.msra.mxu1 %v181_v13 }
  0x28   : > { %882 = vmatprep.subr.mxu0 %v180_v14  ;;  %948 = vmatprep.subr.mxu1 %v180_v14 }
  0x29   : > { %883 = vmatpush3.msra.mxu0 %v180_v14  ;;  %964 = vmatpush3.msra.mxu1 %v180_v14 }
  0x2a   : > { %884 = vmatprep.subr.mxu0 %v179_v15  ;;  %949 = vmatprep.subr.mxu1 %v179_v15 }
  0x2b   : > { %885 = vmatpush3.msra.mxu0 %v179_v15  ;;  %965 = vmatpush3.msra.mxu1 %v179_v15 }
  0x2c   : > { %886 = vmatprep.mubr.f32.mxu0 %v147_v16  ;;  %910 = vmatprep.mubr.f32.mxu1 %v163_v17 }
  0x2d   : > { %887 = vmatmul.mubr.f32.vlgmr.msra.gmra.mxu0 %v148_v18  ;;  %911 = vmatmul.mubr.f32.vlgmr.msra.gmra.mxu1 %v164_v19 }
  0x2e   : > { %889 = vmatprep.mubr.f32.mxu0 %v149_v20  ;;  %913 = vmatprep.mubr.f32.mxu1 %v165_v21 }
  0x31   : > { %890 = vmatmul.mubr.f32.gmra.mxu0 %v150_v22  ;;  %914 = vmatmul.mubr.f32.gmra.mxu1 %v166_v23 }
  0x32   : > { %892 = vmatprep.mubr.f32.mxu0 %v151_v24  ;;  %916 = vmatprep.mubr.f32.mxu1 %v167_v25 }
  0x35   : > { %893 = vmatmul.mubr.f32.gmra.mxu0 %v152_v26  ;;  %917 = vmatmul.mubr.f32.gmra.mxu1 %v168_v27 }
  0x36   : > { %895 = vmatprep.mubr.f32.mxu0 %v153_v28  ;;  %919 = vmatprep.mubr.f32.mxu1 %v169_v29 }
  0x39   : > { %896 = vmatmul.mubr.f32.gmra.mxu0 %v154_v30  ;;  %920 = vmatmul.mubr.f32.gmra.mxu1 %v170_v31 }
  0x3a   : > { %898 = vmatprep.mubr.f32.mxu0 %v155_v32  ;;  %922 = vmatprep.mubr.f32.mxu1 %v171_v33 }
  0x3d   : > { %899 = vmatmul.mubr.f32.gmra.mxu0 %v156_v34  ;;  %923 = vmatmul.mubr.f32.gmra.mxu1 %v172_v35 }
  0x3e   : > { %901 = vmatprep.mubr.f32.mxu0 %v157_v36  ;;  %925 = vmatprep.mubr.f32.mxu1 %v173_v37 }
  0x41   : > { %902 = vmatmul.mubr.f32.gmra.mxu0 %v158_v38  ;;  %926 = vmatmul.mubr.f32.gmra.mxu1 %v174_v39 }
  0x42   : > { %904 = vmatprep.mubr.f32.mxu0 %v159_v40  ;;  %928 = vmatprep.mubr.f32.mxu1 %v175_v41 }
  0x45   : > { %905 = vmatmul.mubr.f32.gmra.mxu0 %v160_v42  ;;  %929 = vmatmul.mubr.f32.gmra.mxu1 %v176_v43 }
  0x46   : > { %907 = vmatprep.mubr.f32.mxu0 %v161_v44  ;;  %931 = vmatprep.mubr.f32.mxu1 %v177_v45 }
  0x49   : > { %908 = vmatmul.mubr.f32.gmra.mxu0 %v162_v46  ;;  %932 = vmatmul.mubr.f32.gmra.mxu1 %v178_v47 }
  0xed   : > { %v888_v48 = vpop.f32.mrf.mxu0  ;;  %v912_v49 = vpop.f32.mrf.mxu1 }
  0xef   : > { %v261_v50 = vpop.f32.mrf.mxu0  ;;  %v341_v51 = vpop.f32.mrf.mxu1 }
  0xf0   : > { %v714_v52 = vpack.c.bf16 %v888_v48, %v261_v50  ;;  %v754_v53 = vpack.c.bf16 %v912_v49, %v341_v51 }
  0xf1   : > { %v891_v54 = vpop.f32.mrf.mxu0  ;;  %v915_v55 = vpop.f32.mrf.mxu1 }
  0xf2   : > { %715 = vst [vmem:[%s1099_s24] sm:$0xff] %v714_v52   ;;  %798 = vst [vmem:[%s1099_s24 + $0x40] sm:$0xff] %v754_v53  }
  0xf3   : > { %v271_v56 = vpop.f32.mrf.mxu0  ;;  %v351_v57 = vpop.f32.mrf.mxu1 }
  0xf4   : > { %v719_v58 = vpack.c.bf16 %v891_v54, %v271_v56  ;;  %v759_v59 = vpack.c.bf16 %v915_v55, %v351_v57 }
  0xf5   : > { %v894_v60 = vpop.f32.mrf.mxu0  ;;  %v918_v61 = vpop.f32.mrf.mxu1 }
  0xf6   : > { %791 = vst [vmem:[%s1099_s24 + $0x8] sm:$0xff] %v719_v58   ;;  %799 = vst [vmem:[%s1099_s24 + $0x48] sm:$0xff] %v759_v59  }
  0xf7   : > { %v281_v62 = vpop.f32.mrf.mxu0  ;;  %v361_v63 = vpop.f32.mrf.mxu1 }
  0xf8   : > { %v724_v0 = vpack.c.bf16 %v894_v60, %v281_v62  ;;  %v764_v1 = vpack.c.bf16 %v918_v61, %v361_v63 }
  0xf9   : > { %v897_v2 = vpop.f32.mrf.mxu0  ;;  %v921_v3 = vpop.f32.mrf.mxu1 }
  0xfa   : > { %792 = vst [vmem:[%s1099_s24 + $0x10] sm:$0xff] %v724_v0   ;;  %800 = vst [vmem:[%s1099_s24 + $0x50] sm:$0xff] %v764_v1  }
  0xfb   : > { %v291_v4 = vpop.f32.mrf.mxu0  ;;  %v371_v5 = vpop.f32.mrf.mxu1 }
  0xfc   : > { %v729_v6 = vpack.c.bf16 %v897_v2, %v291_v4  ;;  %v769_v7 = vpack.c.bf16 %v921_v3, %v371_v5 }
  0xfd   : > { %v900_v8 = vpop.f32.mrf.mxu0  ;;  %v924_v9 = vpop.f32.mrf.mxu1 }
  0xfe   : > { %793 = vst [vmem:[%s1099_s24 + $0x18] sm:$0xff] %v729_v6   ;;  %801 = vst [vmem:[%s1099_s24 + $0x58] sm:$0xff] %v769_v7  }
  0xff   : > { %v301_v10 = vpop.f32.mrf.mxu0  ;;  %v381_v11 = vpop.f32.mrf.mxu1 }
 0x100   : > { %v734_v12 = vpack.c.bf16 %v900_v8, %v301_v10  ;;  %v774_v13 = vpack.c.bf16 %v924_v9, %v381_v11 }
 0x101   : > { %v903_v14 = vpop.f32.mrf.mxu0  ;;  %v927_v15 = vpop.f32.mrf.mxu1 }
 0x102   : > { %794 = vst [vmem:[%s1099_s24 + $0x20] sm:$0xff] %v734_v12   ;;  %802 = vst [vmem:[%s1099_s24 + $0x60] sm:$0xff] %v774_v13  }
 0x103   : > { %v311_v16 = vpop.f32.mrf.mxu0  ;;  %v391_v17 = vpop.f32.mrf.mxu1 }
 0x104   : > { %v739_v18 = vpack.c.bf16 %v903_v14, %v311_v16  ;;  %v779_v19 = vpack.c.bf16 %v927_v15, %v391_v17 }
 0x105   : > { %v906_v20 = vpop.f32.mrf.mxu0  ;;  %v930_v21 = vpop.f32.mrf.mxu1 }
 0x106   : > { %795 = vst [vmem:[%s1099_s24 + $0x28] sm:$0xff] %v739_v18   ;;  %803 = vst [vmem:[%s1099_s24 + $0x68] sm:$0xff] %v779_v19  }
 0x107   : > { %v321_v22 = vpop.f32.mrf.mxu0  ;;  %v401_v23 = vpop.f32.mrf.mxu1 }
 0x108   : > { %v744_v24 = vpack.c.bf16 %v906_v20, %v321_v22  ;;  %v784_v25 = vpack.c.bf16 %v930_v21, %v401_v23 }
 0x109   : > { %v909_v26 = vpop.f32.mrf.mxu0  ;;  %v933_v27 = vpop.f32.mrf.mxu1 }
 0x10a   : > { %796 = vst [vmem:[%s1099_s24 + $0x30] sm:$0xff] %v744_v24   ;;  %804 = vst [vmem:[%s1099_s24 + $0x70] sm:$0xff] %v784_v25  }
 0x10b   : > { %v331_v28 = vpop.f32.mrf.mxu0  ;;  %v411_v29 = vpop.f32.mrf.mxu1 }
 0x10c   : > { %v749_v30 = vpack.c.bf16 %v909_v26, %v331_v28  ;;  %v789_v31 = vpack.c.bf16 %v933_v27, %v411_v29 }
 0x10e   : > { %797 = vst [vmem:[%s1099_s24 + $0x38] sm:$0xff] %v749_v30   ;;  %805 = vst [vmem:[%s1099_s24 + $0x78] sm:$0xff] %v789_v31  }
 0x10f PF: > { %s12_s9 = sadd.s32 1, %s980_s9  }
 0x110   : > { %p9_p4 = scmp.ge.s32.totalorder %s12_s9, 6  }
 0x112   :  { %11 = sbr.rel (!%p9_p4) target bundleno = 1 (0x1), region = 58 }

// kernel: gcn_forward.4
= control target key start
LH: loop header
LB: loop body
LE: loop exit
PB: predicated region body
PF: predicated region fallthrough
CT: control target
= control target key end

     0   :  { %s3005_s15 = smov 0   ;;  %s3007_s16 = smov 0   ;;  %s3434_s0 = inlined_call_operand.vmem [shape: bf16[1024,1024], index: 0, kind: input, shape index: {}]   ;;  %s3435_s1 = inlined_call_operand.vmem [shape: bf16[1024,128], index: 1, kind: input, shape index: {}]   ;;  %s3436_s2 = inlined_call_operand.vmem [shape: f32[1,128], index: 2, kind: input, shape index: {}]   ;;  %s3437_s3 = inlined_call_operand.vmem [shape: f32[128,128], index: 3, kind: input, shape index: {}]   ;;  %s3438_s4 = inlined_call_operand.vmem [shape: bf16[1024,128], index: 4, kind: output, shape index: {}]  }
   0x1   :  { %s3009_s17 = smov 0   ;;  %s3011_s18 = smov 0  }
   0x2   :  { %s3013_s19 = smov 0   ;;  %s3015_s20 = smov 0  }
   0x3   :  { %s3017_s21 = smov 0  }
   0x4 LB: > { %s23_s22 = sadd.s32 1, %s2969_s19  ;;  %s26_s23 = sadd.s32 1, %s2973_s20  ;;  %s2977_s21 = sphi %s3017_s21, %s14_s21   ;;  %s2973_s20 = sphi %s3015_s20, %s3444_s20   ;;  %s2969_s19 = sphi %s3013_s19, %s3443_s19   ;;  %s2965_s18 = sphi %s3011_s18, %s3442_s18   ;;  %s2961_s17 = sphi %s3009_s17, %s3441_s17   ;;  %s2957_s16 = sphi %s3007_s16, %s3440_s16   ;;  %s2953_s15 = sphi %s3005_s15, %s3439_s15  }
   0x5   : > { %p24_p0 = scmp.ge.s32.totalorder %s23_s22, 2  ;;  %p42_p1 = scmp.ne.s32.totalorder %s2957_s16, %s2953_s15 }
   0x6   : > { %p43_p2 = scmp.eq.s32.totalorder %s2977_s21, 0  ;;  %s35_s27 = sadd.s32 1, %s2957_s16 }
   0x7   : > { %s3446_s22 = smov (%p24_p0, %s23_s22), 0  ;;  %s3448_s23 = smov (!%p24_p0, %s26_s23), %s2973_s20 }
   0x8   : > { %p44_p3 = por %p43_p2, %p42_p1  ;;  %p28_p4 = scmp.ge.s32.totalorder %s3448_s23, 4 }
   0x9   : > { %s31_s24 = ssub.s32 %s2969_s19, %s3446_s22  ;;  %p2081_p6 = scmp.ge.s32.totalorder %s2977_s21, 8 }
   0xa   : > { %s3450_s23 = smov (%p28_p4, %s3448_s23), 0 }
   0xb   : > { %s30_s25 = ssub.s32 %s2973_s20, %s3450_s23  ;;  %168 = sbr.rel (%p2081_p6) target bundleno = 55 (0x37), region = 24 }
   0xc   : > { %s32_s26 = sor.u32 %s31_s24, %s30_s25 }
   0xd   : > { %p33_p5 = scmp.eq.s32.totalorder %s32_s26, 0 }
   0xf   : > { %s3056_s28 = scalar_select %p33_p5, %s2957_s16, %s35_s27  }
  0x10   : > { %171 = sbr.rel (!%p44_p3) target bundleno = 55 (0x37), region = 28  ;;  %s173_s29 = sand.u32 (%p44_p3), 1, %s2957_s16  }
  0x11   : > { %s2084_s30 = sshll.u32 (%p44_p3), %s2969_s19, 2  ;;  %s2082_s5 = sshll.u32 (%p44_p3), %s173_s29, 9 }
  0x12   : > { %s2226_s6 = sshll.u32 (%p44_p3), %s2973_s20, 8  ;;  %s3070_s12 = scalar_lea.vmem (%p44_p3), [#allocation3], %s2082_s5 }
  0x13   : > { %s179_s7 = sadd.s32 (%p44_p3), %s2226_s6, %s2084_s30 }
  0x14   : > { %s2086_s8 = sshll.u32 (%p44_p3), %s179_s7, 2 }
  0x15   : > { %s3065_s11 = scalar_lea.vmem %s3434_s0, %s2086_s8 }
  0x16   : > { %v194_v0 = vld [vmem:[%s3065_s11] sm:$0xff]  ;;  %v196_v1 = vld [vmem:[%s3065_s11 + $0x8] sm:$0xff] }
  0x17   : > { %v198_v2 = vld [vmem:[%s3065_s11 + $0x20] sm:$0xff]  ;;  %195 = vst [vmem:[%s3070_s12] sm:$0xff] %v194_v0  ;;  %197 = vst [vmem:[%s3070_s12 + $0x8] sm:$0xff] %v196_v1  ;;  %v200_v3 = vld [vmem:[%s3065_s11 + $0x28] sm:$0xff] }
  0x18   : > { %199 = vst [vmem:[%s3070_s12 + $0x10] sm:$0xff] %v198_v2  ;;  %v202_v4 = vld [vmem:[%s3065_s11 + $0x40] sm:$0xff]  ;;  %v204_v5 = vld [vmem:[%s3065_s11 + $0x48] sm:$0xff]  ;;  %201 = vst [vmem:[%s3070_s12 + $0x18] sm:$0xff] %v200_v3 }
  0x19   : > { %203 = vst [vmem:[%s3070_s12 + $0x20] sm:$0xff] %v202_v4  ;;  %205 = vst [vmem:[%s3070_s12 + $0x28] sm:$0xff] %v204_v5  ;;  %v206_v6 = vld [vmem:[%s3065_s11 + $0x60] sm:$0xff]  ;;  %v208_v7 = vld [vmem:[%s3065_s11 + $0x68] sm:$0xff] }
  0x1a   : > { %v210_v8 = vld [vmem:[%s3065_s11 + $0x80] sm:$0xff]  ;;  %207 = vst [vmem:[%s3070_s12 + $0x30] sm:$0xff] %v206_v6  ;;  %209 = vst [vmem:[%s3070_s12 + $0x38] sm:$0xff] %v208_v7  ;;  %v212_v9 = vld [vmem:[%s3065_s11 + $0x88] sm:$0xff] }
  0x1b   : > { %211 = vst [vmem:[%s3070_s12 + $0x40] sm:$0xff] %v210_v8  ;;  %v214_v10 = vld [vmem:[%s3065_s11 + $0xa0] sm:$0xff]  ;;  %v216_v11 = vld [vmem:[%s3065_s11 + $0xa8] sm:$0xff]  ;;  %213 = vst [vmem:[%s3070_s12 + $0x48] sm:$0xff] %v212_v9 }
  0x1c   : > { %215 = vst [vmem:[%s3070_s12 + $0x50] sm:$0xff] %v214_v10  ;;  %217 = vst [vmem:[%s3070_s12 + $0x58] sm:$0xff] %v216_v11  ;;  %v218_v12 = vld [vmem:[%s3065_s11 + $0xc0] sm:$0xff]  ;;  %v220_v13 = vld [vmem:[%s3065_s11 + $0xc8] sm:$0xff] }
  0x1d   : > { %v222_v14 = vld [vmem:[%s3065_s11 + $0xe0] sm:$0xff]  ;;  %219 = vst [vmem:[%s3070_s12 + $0x60] sm:$0xff] %v218_v12  ;;  %221 = vst [vmem:[%s3070_s12 + $0x68] sm:$0xff] %v220_v13  ;;  %v224_v15 = vld [vmem:[%s3065_s11 + $0xe8] sm:$0xff] }
  0x1e   : > { %223 = vst [vmem:[%s3070_s12 + $0x70] sm:$0xff] %v222_v14  ;;  %v226_v16 = vld [vmem:[%s3065_s11 + $0x100] sm:$0xff]  ;;  %v228_v17 = vld [vmem:[%s3065_s11 + $0x108] sm:$0xff]  ;;  %225 = vst [vmem:[%s3070_s12 + $0x78] sm:$0xff] %v224_v15 }
  0x1f   : > { %227 = vst [vmem:[%s3070_s12 + $0x80] sm:$0xff] %v226_v16  ;;  %229 = vst [vmem:[%s3070_s12 + $0x88] sm:$0xff] %v228_v17  ;;  %v230_v18 = vld [vmem:[%s3065_s11 + $0x120] sm:$0xff]  ;;  %v232_v19 = vld [vmem:[%s3065_s11 + $0x128] sm:$0xff] }
  0x20   : > { %v234_v20 = vld [vmem:[%s3065_s11 + $0x140] sm:$0xff]  ;;  %231 = vst [vmem:[%s3070_s12 + $0x90] sm:$0xff] %v230_v18  ;;  %233 = vst [vmem:[%s3070_s12 + $0x98] sm:$0xff] %v232_v19  ;;  %v236_v21 = vld [vmem:[%s3065_s11 + $0x148] sm:$0xff] }
  0x21   : > { %235 = vst [vmem:[%s3070_s12 + $0xa0] sm:$0xff] %v234_v20  ;;  %v238_v22 = vld [vmem:[%s3065_s11 + $0x160] sm:$0xff]  ;;  %v240_v23 = vld [vmem:[%s3065_s11 + $0x168] sm:$0xff]  ;;  %237 = vst [vmem:[%s3070_s12 + $0xa8] sm:$0xff] %v236_v21 }
  0x22   : > { %239 = vst [vmem:[%s3070_s12 + $0xb0] sm:$0xff] %v238_v22  ;;  %241 = vst [vmem:[%s3070_s12 + $0xb8] sm:$0xff] %v240_v23  ;;  %v242_v24 = vld [vmem:[%s3065_s11 + $0x180] sm:$0xff]  ;;  %v244_v25 = vld [vmem:[%s3065_s11 + $0x188] sm:$0xff] }
  0x23   : > { %v246_v26 = vld [vmem:[%s3065_s11 + $0x1a0] sm:$0xff]  ;;  %243 = vst [vmem:[%s3070_s12 + $0xc0] sm:$0xff] %v242_v24  ;;  %245 = vst [vmem:[%s3070_s12 + $0xc8] sm:$0xff] %v244_v25  ;;  %v248_v27 = vld [vmem:[%s3065_s11 + $0x1a8] sm:$0xff] }
  0x24   : > { %247 = vst [vmem:[%s3070_s12 + $0xd0] sm:$0xff] %v246_v26  ;;  %v250_v28 = vld [vmem:[%s3065_s11 + $0x1c0] sm:$0xff]  ;;  %v252_v29 = vld [vmem:[%s3065_s11 + $0x1c8] sm:$0xff]  ;;  %249 = vst [vmem:[%s3070_s12 + $0xd8] sm:$0xff] %v248_v27 }
  0x25   : > { %251 = vst [vmem:[%s3070_s12 + $0xe0] sm:$0xff] %v250_v28  ;;  %253 = vst [vmem:[%s3070_s12 + $0xe8] sm:$0xff] %v252_v29  ;;  %v254_v30 = vld [vmem:[%s3065_s11 + $0x1e0] sm:$0xff]  ;;  %v256_v31 = vld [vmem:[%s3065_s11 + $0x1e8] sm:$0xff] }
  0x26   : > { %v258_v32 = vld [vmem:[%s3065_s11 + $0x200] sm:$0xff]  ;;  %255 = vst [vmem:[%s3070_s12 + $0xf0] sm:$0xff] %v254_v30  ;;  %257 = vst [vmem:[%s3070_s12 + $0xf8] sm:$0xff] %v256_v31  ;;  %v260_v33 = vld [vmem:[%s3065_s11 + $0x208] sm:$0xff] }
  0x27   : > { %259 = vst [vmem:[%s3070_s12 + $0x100] sm:$0xff] %v258_v32  ;;  %v262_v34 = vld [vmem:[%s3065_s11 + $0x220] sm:$0xff]  ;;  %v264_v35 = vld [vmem:[%s3065_s11 + $0x228] sm:$0xff]  ;;  %261 = vst [vmem:[%s3070_s12 + $0x108] sm:$0xff] %v260_v33 }
  0x28   : > { %263 = vst [vmem:[%s3070_s12 + $0x110] sm:$0xff] %v262_v34  ;;  %265 = vst [vmem:[%s3070_s12 + $0x118] sm:$0xff] %v264_v35  ;;  %v266_v36 = vld [vmem:[%s3065_s11 + $0x240] sm:$0xff]  ;;  %v268_v37 = vld [vmem:[%s3065_s11 + $0x248] sm:$0xff] }
  0x29   : > { %v270_v38 = vld [vmem:[%s3065_s11 + $0x260] sm:$0xff]  ;;  %267 = vst [vmem:[%s3070_s12 + $0x120] sm:$0xff] %v266_v36  ;;  %269 = vst [vmem:[%s3070_s12 + $0x128] sm:$0xff] %v268_v37  ;;  %v272_v39 = vld [vmem:[%s3065_s11 + $0x268] sm:$0xff] }
  0x2a   : > { %271 = vst [vmem:[%s3070_s12 + $0x130] sm:$0xff] %v270_v38  ;;  %v274_v40 = vld [vmem:[%s3065_s11 + $0x280] sm:$0xff]  ;;  %v276_v41 = vld [vmem:[%s3065_s11 + $0x288] sm:$0xff]  ;;  %273 = vst [vmem:[%s3070_s12 + $0x138] sm:$0xff] %v272_v39 }
  0x2b   : > { %275 = vst [vmem:[%s3070_s12 + $0x140] sm:$0xff] %v274_v40  ;;  %277 = vst [vmem:[%s3070_s12 + $0x148] sm:$0xff] %v276_v41  ;;  %v278_v42 = vld [vmem:[%s3065_s11 + $0x2a0] sm:$0xff]  ;;  %v280_v43 = vld [vmem:[%s3065_s11 + $0x2a8] sm:$0xff] }
  0x2c   : > { %v282_v44 = vld [vmem:[%s3065_s11 + $0x2c0] sm:$0xff]  ;;  %279 = vst [vmem:[%s3070_s12 + $0x150] sm:$0xff] %v278_v42  ;;  %281 = vst [vmem:[%s3070_s12 + $0x158] sm:$0xff] %v280_v43  ;;  %v284_v45 = vld [vmem:[%s3065_s11 + $0x2c8] sm:$0xff] }
  0x2d   : > { %283 = vst [vmem:[%s3070_s12 + $0x160] sm:$0xff] %v282_v44  ;;  %v286_v46 = vld [vmem:[%s3065_s11 + $0x2e0] sm:$0xff]  ;;  %v288_v47 = vld [vmem:[%s3065_s11 + $0x2e8] sm:$0xff]  ;;  %285 = vst [vmem:[%s3070_s12 + $0x168] sm:$0xff] %v284_v45 }
  0x2e   : > { %287 = vst [vmem:[%s3070_s12 + $0x170] sm:$0xff] %v286_v46  ;;  %289 = vst [vmem:[%s3070_s12 + $0x178] sm:$0xff] %v288_v47  ;;  %v290_v48 = vld [vmem:[%s3065_s11 + $0x300] sm:$0xff]  ;;  %v292_v49 = vld [vmem:[%s3065_s11 + $0x308] sm:$0xff] }
  0x2f   : > { %v294_v50 = vld [vmem:[%s3065_s11 + $0x320] sm:$0xff]  ;;  %291 = vst [vmem:[%s3070_s12 + $0x180] sm:$0xff] %v290_v48  ;;  %293 = vst [vmem:[%s3070_s12 + $0x188] sm:$0xff] %v292_v49  ;;  %v296_v51 = vld [vmem:[%s3065_s11 + $0x328] sm:$0xff] }
  0x30   : > { %295 = vst [vmem:[%s3070_s12 + $0x190] sm:$0xff] %v294_v50  ;;  %v298_v52 = vld [vmem:[%s3065_s11 + $0x340] sm:$0xff]  ;;  %v300_v53 = vld [vmem:[%s3065_s11 + $0x348] sm:$0xff]  ;;  %297 = vst [vmem:[%s3070_s12 + $0x198] sm:$0xff] %v296_v51 }
  0x31   : > { %299 = vst [vmem:[%s3070_s12 + $0x1a0] sm:$0xff] %v298_v52  ;;  %301 = vst [vmem:[%s3070_s12 + $0x1a8] sm:$0xff] %v300_v53  ;;  %v302_v54 = vld [vmem:[%s3065_s11 + $0x360] sm:$0xff]  ;;  %v304_v55 = vld [vmem:[%s3065_s11 + $0x368] sm:$0xff] }
  0x32   : > { %v306_v56 = vld [vmem:[%s3065_s11 + $0x380] sm:$0xff]  ;;  %303 = vst [vmem:[%s3070_s12 + $0x1b0] sm:$0xff] %v302_v54  ;;  %305 = vst [vmem:[%s3070_s12 + $0x1b8] sm:$0xff] %v304_v55  ;;  %v308_v57 = vld [vmem:[%s3065_s11 + $0x388] sm:$0xff] }
  0x33   : > { %307 = vst [vmem:[%s3070_s12 + $0x1c0] sm:$0xff] %v306_v56  ;;  %v310_v58 = vld [vmem:[%s3065_s11 + $0x3a0] sm:$0xff]  ;;  %v312_v59 = vld [vmem:[%s3065_s11 + $0x3a8] sm:$0xff]  ;;  %309 = vst [vmem:[%s3070_s12 + $0x1c8] sm:$0xff] %v308_v57 }
  0x34   : > { %311 = vst [vmem:[%s3070_s12 + $0x1d0] sm:$0xff] %v310_v58  ;;  %313 = vst [vmem:[%s3070_s12 + $0x1d8] sm:$0xff] %v312_v59  ;;  %v314_v60 = vld [vmem:[%s3065_s11 + $0x3c0] sm:$0xff]  ;;  %v316_v61 = vld [vmem:[%s3065_s11 + $0x3c8] sm:$0xff] }
  0x35   : > { %v318_v62 = vld [vmem:[%s3065_s11 + $0x3e0] sm:$0xff]  ;;  %315 = vst [vmem:[%s3070_s12 + $0x1e0] sm:$0xff] %v314_v60  ;;  %317 = vst [vmem:[%s3070_s12 + $0x1e8] sm:$0xff] %v316_v61  ;;  %v320_v63 = vld [vmem:[%s3065_s11 + $0x3e8] sm:$0xff] }
  0x36   : > { %319 = vst [vmem:[%s3070_s12 + $0x1f0] sm:$0xff] %v318_v62  ;;  %321 = vst [vmem:[%s3070_s12 + $0x1f8] sm:$0xff] %v320_v63 }
  0x37 PF: > { %p2087_p7 = scmp.ge.s32.totalorder %s2977_s21, 1  ;;  %p335_p8 = scmp.lt.s32.totalorder %s2977_s21, 9 }
  0x39   : > { %p336_p9 = pnand %p2087_p7, %p335_p8 }
  0x3a   : > { %s342_s13 = sand.u32 (!%p336_p9), 1, %s2953_s15   ;;  %s2089_s14 = sshll.u32 (!%p336_p9), %s2961_s17, 6 }
  0x3b   : > { %339 = sbr.rel (%p336_p9) target bundleno = 710 (0x2c6), region = 55  ;;  %s2088_s24 = sshll.u32 (!%p336_p9), %s342_s13, 9 }
  0x3c   : > { %p375_p10 = scmp.lt.s32.totalorder (!%p336_p9), %s2089_s14, 127  ;;  %s2091_s25 = sshll.u32 (!%p336_p9), %s2965_s18, 5 }
  0x3d   : > { %p381_p11 = scmp.lt.s32.totalorder (!%p336_p9), %s2091_s25, 127  ;;  %s3212_s15 = scalar_lea.vmem (!%p336_p9), [#allocation3], %s2088_s24 }
  0x3e   : > { %p2093_p12 = scmp.ne.s32.totalorder (!%p336_p9), %s2961_s17, 0 }
  0x40   : > { %s3452_s14 = smov (!%p375_p10, %s2089_s14), 127  ;;  %s3454_s25 = smov (!%p381_p11, %s2091_s25), 127 }
  0x41   : > { %s2090_s26 = sshll.u32 %s3452_s14, 2  ;;  %s2092_s5 = sshll.u32 %s3454_s25, 2 }
  0x42   : > { %s3205_s30 = scalar_lea.vmem %s3435_s1, %s2090_s26  ;;  %s3210_s8 = scalar_lea.vmem %s3438_s4, %s2092_s5 }
  0x43   : > { %390 = sbr.rel (%p2093_p12) target bundleno = 89 (0x59), region = 63 }
  0x48   : > { %v2979_v0 = vmov 0.0  }
  0x49   : > { %391 = vst [vmem:[#allocation2 + $0xb0] sm:$0xff] %v2979_v0  ;;  %392 = vst [vmem:[#allocation2] sm:$0xff] %v2979_v0 }
  0x4a   : > { %393 = vst [vmem:[#allocation2 + $0xd8] sm:$0xff] %v2979_v0  ;;  %394 = vst [vmem:[#allocation2 + $0x18] sm:$0xff] %v2979_v0 }
  0x4b   : > { %395 = vst [vmem:[#allocation2 + $0x50] sm:$0xff] %v2979_v0  ;;  %396 = vst [vmem:[#allocation2 + $0x68] sm:$0xff] %v2979_v0 }
  0x4c   : > { %397 = vst [vmem:[#allocation2 + $0x30] sm:$0xff] %v2979_v0  ;;  %398 = vst [vmem:[#allocation2 + $0x48] sm:$0xff] %v2979_v0 }
  0x4d   : > { %399 = vst [vmem:[#allocation2 + $0x80] sm:$0xff] %v2979_v0  ;;  %400 = vst [vmem:[#allocation2 + $0x88] sm:$0xff] %v2979_v0 }
  0x4e   : > { %401 = vst [vmem:[#allocation2 + $0xe8] sm:$0xff] %v2979_v0  ;;  %402 = vst [vmem:[#allocation2 + $0xb8] sm:$0xff] %v2979_v0 }
  0x4f   : > { %403 = vst [vmem:[#allocation2 + $0x60] sm:$0xff] %v2979_v0  ;;  %404 = vst [vmem:[#allocation2 + $0xf0] sm:$0xff] %v2979_v0 }
  0x50   : > { %405 = vst [vmem:[#allocation2 + $0x8] sm:$0xff] %v2979_v0  ;;  %406 = vst [vmem:[#allocation2 + $0x78] sm:$0xff] %v2979_v0 }
  0x51   : > { %407 = vst [vmem:[#allocation2 + $0x38] sm:$0xff] %v2979_v0  ;;  %408 = vst [vmem:[#allocation2 + $0x58] sm:$0xff] %v2979_v0 }
  0x52   : > { %409 = vst [vmem:[#allocation2 + $0x40] sm:$0xff] %v2979_v0  ;;  %410 = vst [vmem:[#allocation2 + $0xc8] sm:$0xff] %v2979_v0 }
  0x53   : > { %411 = vst [vmem:[#allocation2 + $0xe0] sm:$0xff] %v2979_v0  ;;  %412 = vst [vmem:[#allocation2 + $0x90] sm:$0xff] %v2979_v0 }
  0x54   : > { %413 = vst [vmem:[#allocation2 + $0x70] sm:$0xff] %v2979_v0  ;;  %414 = vst [vmem:[#allocation2 + $0xc0] sm:$0xff] %v2979_v0 }
  0x55   : > { %415 = vst [vmem:[#allocation2 + $0xa8] sm:$0xff] %v2979_v0  ;;  %416 = vst [vmem:[#allocation2 + $0xd0] sm:$0xff] %v2979_v0 }
  0x56   : > { %417 = vst [vmem:[#allocation2 + $0x10] sm:$0xff] %v2979_v0  ;;  %418 = vst [vmem:[#allocation2 + $0x28] sm:$0xff] %v2979_v0 }
  0x57   : > { %419 = vst [vmem:[#allocation2 + $0xa0] sm:$0xff] %v2979_v0  ;;  %420 = vst [vmem:[#allocation2 + $0xf8] sm:$0xff] %v2979_v0 }
  0x58   : > { %421 = vst [vmem:[#allocation2 + $0x20] sm:$0xff] %v2979_v0  ;;  %422 = vst [vmem:[#allocation2 + $0x98] sm:$0xff] %v2979_v0 }
  0x59 PF: > { %v2795_v1 = vld [vmem:[%s3205_s30 + $0x78] sm:$0xff]   ;;  %v2799_v5 = vld [vmem:[%s3205_s30 + $0x70] sm:$0xff]   ;;  %v2803_v9 = vld [vmem:[%s3205_s30 + $0x68] sm:$0xff]   ;;  %p2190_p13 = scmp.ne.s32.totalorder %s2961_s17, 1 }
  0x5a   : > { %v2796_v2 = vld [vmem:[%s3205_s30 + $0xf8] sm:$0xff]   ;;  %2354 = vmatprep.subr.bf16.mxu0 %v2795_v1  ;;  %v2800_v6 = vld [vmem:[%s3205_s30 + $0xf0] sm:$0xff]   ;;  %v2804_v10 = vld [vmem:[%s3205_s30 + $0xe8] sm:$0xff]  }
  0x5b   : > { %v2797_v3 = vld [vmem:[%s3205_s30 + $0x38] sm:$0xff]   ;;  %2466 = vmatprep.subr.bf16.mxu1 %v2796_v2  ;;  %v2801_v7 = vld [vmem:[%s3205_s30 + $0x30] sm:$0xff]   ;;  %v2805_v11 = vld [vmem:[%s3205_s30 + $0x28] sm:$0xff]  }
  0x5c   : > { %v2798_v4 = vld [vmem:[%s3205_s30 + $0xb8] sm:$0xff]   ;;  %2355 = vmatpush3.bf16.msra.mxu0 %v2797_v3  ;;  %v2802_v8 = vld [vmem:[%s3205_s30 + $0xb0] sm:$0xff]   ;;  %v2806_v12 = vld [vmem:[%s3205_s30 + $0xa8] sm:$0xff]  }
  0x5d   : > { %2467 = vmatpush3.bf16.msra.mxu1 %v2798_v4  ;;  %2356 = vmatprep.subr.bf16.mxu0 %v2799_v5  ;;  %v2807_v13 = vld [vmem:[%s3205_s30 + $0x60] sm:$0xff]   ;;  %v2811_v17 = vld [vmem:[%s3205_s30 + $0x58] sm:$0xff]   ;;  %v2815_v21 = vld [vmem:[%s3205_s30 + $0x50] sm:$0xff]  }
  0x5e   : > { %2468 = vmatprep.subr.bf16.mxu1 %v2800_v6  ;;  %v2808_v14 = vld [vmem:[%s3205_s30 + $0xe0] sm:$0xff]   ;;  %v2812_v18 = vld [vmem:[%s3205_s30 + $0xd8] sm:$0xff]   ;;  %v2816_v22 = vld [vmem:[%s3205_s30 + $0xd0] sm:$0xff]  }
  0x5f   : > { %v2809_v15 = vld [vmem:[%s3205_s30 + $0x20] sm:$0xff]   ;;  %v2813_v19 = vld [vmem:[%s3205_s30 + $0x18] sm:$0xff]   ;;  %v2817_v23 = vld [vmem:[%s3205_s30 + $0x10] sm:$0xff]  }
  0x60   : > { %2357 = vmatpush3.bf16.msra.mxu0 %v2801_v7  ;;  %v2810_v16 = vld [vmem:[%s3205_s30 + $0xa0] sm:$0xff]   ;;  %v2814_v20 = vld [vmem:[%s3205_s30 + $0x98] sm:$0xff]   ;;  %v2818_v24 = vld [vmem:[%s3205_s30 + $0x90] sm:$0xff]  }
  0x61   : > { %2469 = vmatpush3.bf16.msra.mxu1 %v2802_v8  ;;  %2358 = vmatprep.subr.bf16.mxu0 %v2803_v9  ;;  %v2819_v25 = vld [vmem:[%s3205_s30 + $0x48] sm:$0xff]   ;;  %v2823_v29 = vld [vmem:[%s3205_s30 + $0x40] sm:$0xff]  }
  0x62   : > { %2470 = vmatprep.subr.bf16.mxu1 %v2804_v10  ;;  %v2820_v26 = vld [vmem:[%s3205_s30 + $0xc8] sm:$0xff]   ;;  %v2824_v30 = vld [vmem:[%s3205_s30 + $0xc0] sm:$0xff]  }
  0x63   : > { %v2821_v27 = vld [vmem:[%s3205_s30 + $0x8] sm:$0xff]   ;;  %v2825_v31 = vld [vmem:[%s3205_s30] sm:$0xff]  }
  0x64   : > { %2359 = vmatpush3.bf16.msra.mxu0 %v2805_v11  ;;  %v2822_v28 = vld [vmem:[%s3205_s30 + $0x88] sm:$0xff]   ;;  %v2826_v32 = vld [vmem:[%s3205_s30 + $0x80] sm:$0xff]  }
  0x65   : > { %2471 = vmatpush3.bf16.msra.mxu1 %v2806_v12  ;;  %2360 = vmatprep.subr.bf16.mxu0 %v2807_v13  ;;  %v2827_v33 = vld [vmem:[%s3212_s15] ss:$16 sps:$4 sm:$0xff]   ;;  %v2829_v34 = vld [vmem:[%s3212_s15 + $0x4] ss:$16 sps:$4 sm:$0xff]   ;;  %v2830_v35 = vld [vmem:[%s3212_s15 + $0x8] ss:$16 sps:$4 sm:$0xff]  }
  0x66   : > { %2472 = vmatprep.subr.bf16.mxu1 %v2808_v14  ;;  %v2832_v36 = vld [vmem:[%s3212_s15 + $0xc] ss:$16 sps:$4 sm:$0xff]   ;;  %1127 = vmatprep.mubr.bf16.mxu0 %v2829_v34  ;;  %v2833_v37 = vld [vmem:[%s3212_s15 + $0x24] ss:$16 sps:$4 sm:$0xff]   ;;  %v2837_v39 = vld [vmem:[%s3212_s15 + $0x20] ss:$16 sps:$4 sm:$0xff]  }
  0x67   : > { %1288 = vmatprep.mubr.bf16.mxu1 %v2832_v36  ;;  %v2835_v38 = vld [vmem:[%s3212_s15 + $0x2c] ss:$16 sps:$4 sm:$0xff]   ;;  %v2838_v40 = vld [vmem:[%s3212_s15 + $0x28] ss:$16 sps:$4 sm:$0xff]   ;;  %v2839_v41 = vld [vmem:[%s3212_s15 + $0x44] ss:$16 sps:$4 sm:$0xff]  }
  0x68   : > { %2361 = vmatpush3.bf16.msra.mxu0 %v2809_v15  ;;  %v2841_v42 = vld [vmem:[%s3212_s15 + $0x4c] ss:$16 sps:$4 sm:$0xff]   ;;  %v2843_v43 = vld [vmem:[%s3212_s15 + $0x40] ss:$16 sps:$4 sm:$0xff]   ;;  %v2844_v44 = vld [vmem:[%s3212_s15 + $0x48] ss:$16 sps:$4 sm:$0xff]  }
  0x69   : > { %2473 = vmatpush3.bf16.msra.mxu1 %v2810_v16  ;;  %2362 = vmatprep.subr.bf16.mxu0 %v2811_v17  ;;  %v2845_v45 = vld [vmem:[%s3212_s15 + $0x64] ss:$16 sps:$4 sm:$0xff]   ;;  %v2847_v46 = vld [vmem:[%s3212_s15 + $0x6c] ss:$16 sps:$4 sm:$0xff]   ;;  %v2849_v47 = vld [vmem:[%s3212_s15 + $0x60] ss:$16 sps:$4 sm:$0xff]  }
  0x6a   : > { %2474 = vmatprep.subr.bf16.mxu1 %v2812_v18  ;;  %v2850_v48 = vld [vmem:[%s3212_s15 + $0x68] ss:$16 sps:$4 sm:$0xff]   ;;  %v2851_v49 = vld [vmem:[%s3212_s15 + $0x84] ss:$16 sps:$4 sm:$0xff]   ;;  %v2853_v50 = vld [vmem:[%s3212_s15 + $0x8c] ss:$16 sps:$4 sm:$0xff]  }
  0x6b   : > { %v2855_v51 = vld [vmem:[%s3212_s15 + $0x80] ss:$16 sps:$4 sm:$0xff]   ;;  %v2856_v52 = vld [vmem:[%s3212_s15 + $0x88] ss:$16 sps:$4 sm:$0xff]   ;;  %v2857_v53 = vld [vmem:[%s3212_s15 + $0xa4] ss:$16 sps:$4 sm:$0xff]  }
  0x6c   : > { %2363 = vmatpush3.bf16.msra.mxu0 %v2813_v19  ;;  %v2859_v54 = vld [vmem:[%s3212_s15 + $0xac] ss:$16 sps:$4 sm:$0xff]   ;;  %v2861_v55 = vld [vmem:[%s3212_s15 + $0xa0] ss:$16 sps:$4 sm:$0xff]   ;;  %v2862_v56 = vld [vmem:[%s3212_s15 + $0xa8] ss:$16 sps:$4 sm:$0xff]  }
  0x6d   : > { %2475 = vmatpush3.bf16.msra.mxu1 %v2814_v20  ;;  %2364 = vmatprep.subr.bf16.mxu0 %v2815_v21  ;;  %v2863_v57 = vld [vmem:[%s3212_s15 + $0xc4] ss:$16 sps:$4 sm:$0xff]   ;;  %v2865_v58 = vld [vmem:[%s3212_s15 + $0xcc] ss:$16 sps:$4 sm:$0xff]   ;;  %v2867_v59 = vld [vmem:[%s3212_s15 + $0xc0] ss:$16 sps:$4 sm:$0xff]  }
  0x6e   : > { %2476 = vmatprep.subr.bf16.mxu1 %v2816_v22  ;;  %v2868_v60 = vld [vmem:[%s3212_s15 + $0xc8] ss:$16 sps:$4 sm:$0xff]   ;;  %v2869_v61 = vld [vmem:[%s3212_s15 + $0xe4] ss:$16 sps:$4 sm:$0xff]   ;;  %v2871_v62 = vld [vmem:[%s3212_s15 + $0xec] ss:$16 sps:$4 sm:$0xff]  }
  0x6f   : > { %v2873_v63 = vld [vmem:[%s3212_s15 + $0xe0] ss:$16 sps:$4 sm:$0xff]   ;;  %v2874_v0 = vld [vmem:[%s3212_s15 + $0xe8] ss:$16 sps:$4 sm:$0xff]   ;;  %v2875_v1 = vld [vmem:[%s3212_s15 + $0x104] ss:$16 sps:$4 sm:$0xff]  }
  0x70   : > { %2365 = vmatpush3.bf16.msra.mxu0 %v2817_v23  ;;  %v2877_v2 = vld [vmem:[%s3212_s15 + $0x10c] ss:$16 sps:$4 sm:$0xff]   ;;  %v2879_v3 = vld [vmem:[%s3212_s15 + $0x100] ss:$16 sps:$4 sm:$0xff]   ;;  %v2880_v4 = vld [vmem:[%s3212_s15 + $0x108] ss:$16 sps:$4 sm:$0xff]  }
  0x71   : > { %2477 = vmatpush3.bf16.msra.mxu1 %v2818_v24  ;;  %2366 = vmatprep.subr.bf16.mxu0 %v2819_v25  ;;  %v2881_v5 = vld [vmem:[%s3212_s15 + $0x124] ss:$16 sps:$4 sm:$0xff]   ;;  %v2883_v6 = vld [vmem:[%s3212_s15 + $0x12c] ss:$16 sps:$4 sm:$0xff]   ;;  %v2885_v7 = vld [vmem:[%s3212_s15 + $0x120] ss:$16 sps:$4 sm:$0xff]  }
  0x72   : > { %2478 = vmatprep.subr.bf16.mxu1 %v2820_v26  ;;  %v2886_v8 = vld [vmem:[%s3212_s15 + $0x128] ss:$16 sps:$4 sm:$0xff]   ;;  %v2887_v9 = vld [vmem:[%s3212_s15 + $0x144] ss:$16 sps:$4 sm:$0xff]   ;;  %v2889_v10 = vld [vmem:[%s3212_s15 + $0x14c] ss:$16 sps:$4 sm:$0xff]  }
  0x73   : > { %v2891_v11 = vld [vmem:[%s3212_s15 + $0x140] ss:$16 sps:$4 sm:$0xff]   ;;  %v2892_v12 = vld [vmem:[%s3212_s15 + $0x148] ss:$16 sps:$4 sm:$0xff]   ;;  %v2893_v13 = vld [vmem:[%s3212_s15 + $0x164] ss:$16 sps:$4 sm:$0xff]  }
  0x74   : > { %2367 = vmatpush3.bf16.msra.mxu0 %v2821_v27  ;;  %v2895_v14 = vld [vmem:[%s3212_s15 + $0x16c] ss:$16 sps:$4 sm:$0xff]   ;;  %v2897_v15 = vld [vmem:[%s3212_s15 + $0x160] ss:$16 sps:$4 sm:$0xff]   ;;  %v2898_v16 = vld [vmem:[%s3212_s15 + $0x168] ss:$16 sps:$4 sm:$0xff]  }
  0x75   : > { %2479 = vmatpush3.bf16.msra.mxu1 %v2822_v28  ;;  %2368 = vmatprep.subr.bf16.mxu0 %v2823_v29  ;;  %v2899_v17 = vld [vmem:[%s3212_s15 + $0x184] ss:$16 sps:$4 sm:$0xff]   ;;  %v2901_v18 = vld [vmem:[%s3212_s15 + $0x18c] ss:$16 sps:$4 sm:$0xff]   ;;  %v2903_v19 = vld [vmem:[%s3212_s15 + $0x180] ss:$16 sps:$4 sm:$0xff]  }
  0x76   : > { %2480 = vmatprep.subr.bf16.mxu1 %v2824_v30  ;;  %v2904_v20 = vld [vmem:[%s3212_s15 + $0x188] ss:$16 sps:$4 sm:$0xff]   ;;  %v2905_v21 = vld [vmem:[%s3212_s15 + $0x1a4] ss:$16 sps:$4 sm:$0xff]   ;;  %v2907_v22 = vld [vmem:[%s3212_s15 + $0x1ac] ss:$16 sps:$4 sm:$0xff]  }
  0x77   : > { %v2909_v23 = vld [vmem:[%s3212_s15 + $0x1a0] ss:$16 sps:$4 sm:$0xff]   ;;  %v2910_v24 = vld [vmem:[%s3212_s15 + $0x1a8] ss:$16 sps:$4 sm:$0xff]   ;;  %v2911_v25 = vld [vmem:[%s3212_s15 + $0x1c4] ss:$16 sps:$4 sm:$0xff]  }
  0x78   : > { %2369 = vmatpush3.bf16.msra.mxu0 %v2825_v31  ;;  %v2913_v26 = vld [vmem:[%s3212_s15 + $0x1cc] ss:$16 sps:$4 sm:$0xff]   ;;  %v2915_v27 = vld [vmem:[%s3212_s15 + $0x1c0] ss:$16 sps:$4 sm:$0xff]   ;;  %v2916_v28 = vld [vmem:[%s3212_s15 + $0x1c8] ss:$16 sps:$4 sm:$0xff]  }
  0x79   : > { %2481 = vmatpush3.bf16.msra.mxu1 %v2826_v32  ;;  %v2917_v29 = vld [vmem:[%s3212_s15 + $0x1e4] ss:$16 sps:$4 sm:$0xff]   ;;  %v2919_v30 = vld [vmem:[%s3212_s15 + $0x1ec] ss:$16 sps:$4 sm:$0xff]   ;;  %v2921_v31 = vld [vmem:[%s3212_s15 + $0x1e0] ss:$16 sps:$4 sm:$0xff]  }
  0x7a   : > { %v2922_v32 = vld [vmem:[%s3212_s15 + $0x1e8] ss:$16 sps:$4 sm:$0xff]  }
  0x7b   : > { %1128 = vmatmul.mubr.bf16.vlgmr.msra.gmra.mxu0 %v2827_v33 }
  0x7c   : > { %1289 = vmatmul.mubr.bf16.vlgmr.msra.gmra.mxu1 %v2830_v35  ;;  %1135 = vmatprep.mubr.bf16.mxu0 %v2833_v37 }
  0x7d   : > { %1296 = vmatprep.mubr.bf16.mxu1 %v2835_v38 }
  0x83   : > { %1136 = vmatmul.mubr.bf16.gmra.mxu0 %v2837_v39 }
  0x84   : > { %1297 = vmatmul.mubr.bf16.gmra.mxu1 %v2838_v40  ;;  %1143 = vmatprep.mubr.bf16.mxu0 %v2839_v41  ;;  %v423_v40 = vld [vmem:[#allocation2 + $0xb0] sm:$0xff] }
  0x85   : > { %1304 = vmatprep.mubr.bf16.mxu1 %v2841_v42 }
  0x8b   : > { %1144 = vmatmul.mubr.bf16.gmra.mxu0 %v2843_v43 }
  0x8c   : > { %1305 = vmatmul.mubr.bf16.gmra.mxu1 %v2844_v44  ;;  %1151 = vmatprep.mubr.bf16.mxu0 %v2845_v45 }
  0x8d   : > { %1312 = vmatprep.mubr.bf16.mxu1 %v2847_v46 }
  0x93   : > { %1152 = vmatmul.mubr.bf16.gmra.mxu0 %v2849_v47 }
  0x94   : > { %1313 = vmatmul.mubr.bf16.gmra.mxu1 %v2850_v48  ;;  %1159 = vmatprep.mubr.bf16.mxu0 %v2851_v49  ;;  %v424_v49 = vld [vmem:[#allocation2] sm:$0xff] }
  0x95   : > { %1320 = vmatprep.mubr.bf16.mxu1 %v2853_v50 }
  0x9b   : > { %1160 = vmatmul.mubr.bf16.gmra.mxu0 %v2855_v51 }
  0x9c   : > { %1321 = vmatmul.mubr.bf16.gmra.mxu1 %v2856_v52  ;;  %1167 = vmatprep.mubr.bf16.mxu0 %v2857_v53 }
  0x9d   : > { %1328 = vmatprep.mubr.bf16.mxu1 %v2859_v54 }
  0xa3   : > { %1168 = vmatmul.mubr.bf16.gmra.mxu0 %v2861_v55 }
  0xa4   : > { %1329 = vmatmul.mubr.bf16.gmra.mxu1 %v2862_v56  ;;  %1175 = vmatprep.mubr.bf16.mxu0 %v2863_v57 }
  0xa5   : > { %1336 = vmatprep.mubr.bf16.mxu1 %v2865_v58  ;;  %v425_v58 = vld [vmem:[#allocation2 + $0xd8] sm:$0xff] }
  0xab   : > { %1176 = vmatmul.mubr.bf16.gmra.mxu0 %v2867_v59 }
  0xac   : > { %1337 = vmatmul.mubr.bf16.gmra.mxu1 %v2868_v60  ;;  %1183 = vmatprep.mubr.bf16.mxu0 %v2869_v61 }
  0xad   : > { %1344 = vmatprep.mubr.bf16.mxu1 %v2871_v62 }
  0xb3   : > { %1184 = vmatmul.mubr.bf16.gmra.mxu0 %v2873_v63 }
  0xb4   : > { %1345 = vmatmul.mubr.bf16.gmra.mxu1 %v2874_v0  ;;  %1191 = vmatprep.mubr.bf16.mxu0 %v2875_v1 }
  0xb5   : > { %1352 = vmatprep.mubr.bf16.mxu1 %v2877_v2 }
  0xbb   : > { %1192 = vmatmul.mubr.bf16.gmra.mxu0 %v2879_v3  ;;  %v426_v3 = vld [vmem:[#allocation2 + $0x18] sm:$0xff] }
  0xbc   : > { %1353 = vmatmul.mubr.bf16.gmra.mxu1 %v2880_v4  ;;  %1199 = vmatprep.mubr.bf16.mxu0 %v2881_v5 }
  0xbd   : > { %1360 = vmatprep.mubr.bf16.mxu1 %v2883_v6 }
  0xc3   : > { %1200 = vmatmul.mubr.bf16.gmra.mxu0 %v2885_v7 }
  0xc4   : > { %1361 = vmatmul.mubr.bf16.gmra.mxu1 %v2886_v8  ;;  %1207 = vmatprep.mubr.bf16.mxu0 %v2887_v9 }
  0xc5   : > { %1368 = vmatprep.mubr.bf16.mxu1 %v2889_v10 }
  0xcb   : > { %1208 = vmatmul.mubr.bf16.gmra.mxu0 %v2891_v11 }
  0xcc   : > { %1369 = vmatmul.mubr.bf16.gmra.mxu1 %v2892_v12  ;;  %1215 = vmatprep.mubr.bf16.mxu0 %v2893_v13  ;;  %v427_v12 = vld [vmem:[#allocation2 + $0x50] sm:$0xff] }
  0xcd   : > { %1376 = vmatprep.mubr.bf16.mxu1 %v2895_v14 }
  0xd3   : > { %1216 = vmatmul.mubr.bf16.gmra.mxu0 %v2897_v15 }
  0xd4   : > { %1377 = vmatmul.mubr.bf16.gmra.mxu1 %v2898_v16  ;;  %1223 = vmatprep.mubr.bf16.mxu0 %v2899_v17 }
  0xd5   : > { %1384 = vmatprep.mubr.bf16.mxu1 %v2901_v18 }
  0xdb   : > { %1224 = vmatmul.mubr.bf16.gmra.mxu0 %v2903_v19 }
  0xdc   : > { %1385 = vmatmul.mubr.bf16.gmra.mxu1 %v2904_v20  ;;  %1231 = vmatprep.mubr.bf16.mxu0 %v2905_v21  ;;  %v428_v21 = vld [vmem:[#allocation2 + $0x68] sm:$0xff] }
  0xdd   : > { %1392 = vmatprep.mubr.bf16.mxu1 %v2907_v22 }
  0xe3   : > { %1232 = vmatmul.mubr.bf16.gmra.mxu0 %v2909_v23 }
  0xe4   : > { %1393 = vmatmul.mubr.bf16.gmra.mxu1 %v2910_v24  ;;  %1239 = vmatprep.mubr.bf16.mxu0 %v2911_v25 }
  0xe5   : > { %1400 = vmatprep.mubr.bf16.mxu1 %v2913_v26 }
  0xeb   : > { %1240 = vmatmul.mubr.bf16.gmra.mxu0 %v2915_v27 }
  0xec   : > { %1401 = vmatmul.mubr.bf16.gmra.mxu1 %v2916_v28  ;;  %1247 = vmatprep.mubr.bf16.mxu0 %v2917_v29 }
  0xed   : > { %1408 = vmatprep.mubr.bf16.mxu1 %v2919_v30  ;;  %v429_v30 = vld [vmem:[#allocation2 + $0x30] sm:$0xff] }
  0xf3   : > { %1248 = vmatmul.mubr.bf16.gmra.mxu0 %v2921_v31 }
  0xf4   : > { %1409 = vmatmul.mubr.bf16.gmra.mxu1 %v2922_v32 }
 0x13b   : > { %v2370_v33 = vpop.f32.mrf.mxu0 }
 0x13c   : > { %v2482_v34 = vpop.f32.mrf.mxu1 }
 0x13d   : > { %v2371_v35 = vpop.f32.mrf.mxu0 }
 0x13e   : > { %v2372_v36 = vadd.f32 %v2371_v35, %v2370_v33  ;;  %v2483_v37 = vpop.f32.mrf.mxu1 }
 0x13f   : > { %v2484_v38 = vadd.f32 %v2483_v37, %v2482_v34  ;;  %v2373_v39 = vpop.f32.mrf.mxu0 }
 0x140   : > { %v2485_v41 = vpop.f32.mrf.mxu1 }
 0x141   : > { %v1291_v42 = vadd.f32 %v2484_v38, %v2372_v36  ;;  %v2374_v43 = vpop.f32.mrf.mxu0 }
 0x142   : > { %v2375_v44 = vadd.f32 %v2374_v43, %v2373_v39  ;;  %v2486_v45 = vpop.f32.mrf.mxu1  ;;  %v430_v39 = vld [vmem:[#allocation2 + $0x48] sm:$0xff] }
 0x143   : > { %v1417_v46 = vadd.f32 %v1291_v42, %v423_v40  ;;  %v2487_v47 = vadd.f32 %v2486_v45, %v2485_v41  ;;  %v2376_v48 = vpop.f32.mrf.mxu0 }
 0x144   : > { %v2488_v50 = vpop.f32.mrf.mxu1 }
 0x145   : > { %1449 = vst [vmem:[#allocation2 + $0xb0] sm:$0xff] %v1417_v46  ;;  %v1294_v51 = vadd.f32 %v2487_v47, %v2375_v44  ;;  %v2377_v52 = vpop.f32.mrf.mxu0 }
 0x146   : > { %v2378_v53 = vadd.f32 %v2377_v52, %v2376_v48  ;;  %v2489_v54 = vpop.f32.mrf.mxu1  ;;  %v431_v48 = vld [vmem:[#allocation2 + $0x80] sm:$0xff] }
 0x147   : > { %v1418_v55 = vadd.f32 %v1294_v51, %v424_v49  ;;  %v2490_v56 = vadd.f32 %v2489_v54, %v2488_v50  ;;  %v2379_v57 = vpop.f32.mrf.mxu0 }
 0x148   : > { %v2491_v59 = vpop.f32.mrf.mxu1 }
 0x149   : > { %1450 = vst [vmem:[#allocation2] sm:$0xff] %v1418_v55  ;;  %v1299_v60 = vadd.f32 %v2490_v56, %v2378_v53  ;;  %v2380_v61 = vpop.f32.mrf.mxu0 }
 0x14a   : > { %v2381_v62 = vadd.f32 %v2380_v61, %v2379_v57  ;;  %v2492_v63 = vpop.f32.mrf.mxu1  ;;  %v432_v57 = vld [vmem:[#allocation2 + $0x88] sm:$0xff] }
 0x14b   : > { %v1419_v0 = vadd.f32 %v1299_v60, %v425_v58  ;;  %v2493_v1 = vadd.f32 %v2492_v63, %v2491_v59  ;;  %v2382_v2 = vpop.f32.mrf.mxu0 }
 0x14c   : > { %v2494_v4 = vpop.f32.mrf.mxu1 }
 0x14d   : > { %1451 = vst [vmem:[#allocation2 + $0xd8] sm:$0xff] %v1419_v0  ;;  %v1302_v5 = vadd.f32 %v2493_v1, %v2381_v62  ;;  %v2383_v6 = vpop.f32.mrf.mxu0 }
 0x14e   : > { %v2384_v7 = vadd.f32 %v2383_v6, %v2382_v2  ;;  %v2495_v8 = vpop.f32.mrf.mxu1  ;;  %v433_v2 = vld [vmem:[#allocation2 + $0xe8] sm:$0xff] }
 0x14f   : > { %v1420_v9 = vadd.f32 %v1302_v5, %v426_v3  ;;  %v2496_v10 = vadd.f32 %v2495_v8, %v2494_v4  ;;  %v2385_v11 = vpop.f32.mrf.mxu0 }
 0x150   : > { %v2497_v13 = vpop.f32.mrf.mxu1 }
 0x151   : > { %1452 = vst [vmem:[#allocation2 + $0x18] sm:$0xff] %v1420_v9  ;;  %v1307_v14 = vadd.f32 %v2496_v10, %v2384_v7  ;;  %v2386_v15 = vpop.f32.mrf.mxu0 }
 0x152   : > { %v2387_v16 = vadd.f32 %v2386_v15, %v2385_v11  ;;  %v2498_v17 = vpop.f32.mrf.mxu1  ;;  %v434_v11 = vld [vmem:[#allocation2 + $0xb8] sm:$0xff] }
 0x153   : > { %v1421_v18 = vadd.f32 %v1307_v14, %v427_v12  ;;  %v2499_v19 = vadd.f32 %v2498_v17, %v2497_v13  ;;  %v2388_v20 = vpop.f32.mrf.mxu0 }
 0x154   : > { %v2500_v22 = vpop.f32.mrf.mxu1 }
 0x155   : > { %1453 = vst [vmem:[#allocation2 + $0x50] sm:$0xff] %v1421_v18  ;;  %v1310_v23 = vadd.f32 %v2499_v19, %v2387_v16  ;;  %v2389_v24 = vpop.f32.mrf.mxu0 }
 0x156   : > { %v2390_v25 = vadd.f32 %v2389_v24, %v2388_v20  ;;  %v2501_v26 = vpop.f32.mrf.mxu1  ;;  %v435_v20 = vld [vmem:[#allocation2 + $0x60] sm:$0xff] }
 0x157   : > { %v1422_v27 = vadd.f32 %v1310_v23, %v428_v21  ;;  %v2502_v28 = vadd.f32 %v2501_v26, %v2500_v22  ;;  %v2391_v29 = vpop.f32.mrf.mxu0 }
 0x158   : > { %v2503_v31 = vpop.f32.mrf.mxu1 }
 0x159   : > { %1454 = vst [vmem:[#allocation2 + $0x68] sm:$0xff] %v1422_v27  ;;  %v1315_v32 = vadd.f32 %v2502_v28, %v2390_v25  ;;  %v2392_v33 = vpop.f32.mrf.mxu0 }
 0x15a   : > { %v2393_v34 = vadd.f32 %v2392_v33, %v2391_v29  ;;  %v2504_v35 = vpop.f32.mrf.mxu1  ;;  %v436_v29 = vld [vmem:[#allocation2 + $0xf0] sm:$0xff] }
 0x15b   : > { %v1423_v36 = vadd.f32 %v1315_v32, %v429_v30  ;;  %v2505_v37 = vadd.f32 %v2504_v35, %v2503_v31  ;;  %v2394_v38 = vpop.f32.mrf.mxu0 }
 0x15c   : > { %v2506_v40 = vpop.f32.mrf.mxu1 }
 0x15d   : > { %1455 = vst [vmem:[#allocation2 + $0x30] sm:$0xff] %v1423_v36  ;;  %v1318_v41 = vadd.f32 %v2505_v37, %v2393_v34  ;;  %v2395_v42 = vpop.f32.mrf.mxu0 }
 0x15e   : > { %v2396_v43 = vadd.f32 %v2395_v42, %v2394_v38  ;;  %v2507_v44 = vpop.f32.mrf.mxu1  ;;  %v437_v38 = vld [vmem:[#allocation2 + $0x8] sm:$0xff] }
 0x15f   : > { %v1424_v45 = vadd.f32 %v1318_v41, %v430_v39  ;;  %v2508_v46 = vadd.f32 %v2507_v44, %v2506_v40  ;;  %v2397_v47 = vpop.f32.mrf.mxu0 }
 0x160   : > { %v2509_v49 = vpop.f32.mrf.mxu1 }
 0x161   : > { %1456 = vst [vmem:[#allocation2 + $0x48] sm:$0xff] %v1424_v45  ;;  %v1323_v50 = vadd.f32 %v2508_v46, %v2396_v43  ;;  %v2398_v51 = vpop.f32.mrf.mxu0 }
 0x162   : > { %v2399_v52 = vadd.f32 %v2398_v51, %v2397_v47  ;;  %v2510_v53 = vpop.f32.mrf.mxu1  ;;  %v438_v47 = vld [vmem:[#allocation2 + $0x78] sm:$0xff] }
 0x163   : > { %v1425_v54 = vadd.f32 %v1323_v50, %v431_v48  ;;  %v2511_v55 = vadd.f32 %v2510_v53, %v2509_v49  ;;  %v2400_v56 = vpop.f32.mrf.mxu0 }
 0x164   : > { %v2512_v58 = vpop.f32.mrf.mxu1 }
 0x165   : > { %1457 = vst [vmem:[#allocation2 + $0x80] sm:$0xff] %v1425_v54  ;;  %v1326_v59 = vadd.f32 %v2511_v55, %v2399_v52  ;;  %v2401_v60 = vpop.f32.mrf.mxu0 }
 0x166   : > { %v2402_v61 = vadd.f32 %v2401_v60, %v2400_v56  ;;  %v2513_v62 = vpop.f32.mrf.mxu1  ;;  %v439_v56 = vld [vmem:[#allocation2 + $0x38] sm:$0xff] }
 0x167   : > { %v1426_v63 = vadd.f32 %v1326_v59, %v432_v57  ;;  %v2514_v0 = vadd.f32 %v2513_v62, %v2512_v58  ;;  %v2403_v1 = vpop.f32.mrf.mxu0 }
 0x168   : > { %v2515_v3 = vpop.f32.mrf.mxu1 }
 0x169   : > { %1458 = vst [vmem:[#allocation2 + $0x88] sm:$0xff] %v1426_v63  ;;  %v1331_v4 = vadd.f32 %v2514_v0, %v2402_v61  ;;  %v2404_v5 = vpop.f32.mrf.mxu0 }
 0x16a   : > { %v2405_v6 = vadd.f32 %v2404_v5, %v2403_v1  ;;  %v2516_v7 = vpop.f32.mrf.mxu1  ;;  %v440_v1 = vld [vmem:[#allocation2 + $0x58] sm:$0xff] }
 0x16b   : > { %v1427_v8 = vadd.f32 %v1331_v4, %v433_v2  ;;  %v2517_v9 = vadd.f32 %v2516_v7, %v2515_v3  ;;  %v2406_v10 = vpop.f32.mrf.mxu0 }
 0x16c   : > { %v2518_v12 = vpop.f32.mrf.mxu1 }
 0x16d   : > { %1459 = vst [vmem:[#allocation2 + $0xe8] sm:$0xff] %v1427_v8  ;;  %v1334_v13 = vadd.f32 %v2517_v9, %v2405_v6  ;;  %v2407_v14 = vpop.f32.mrf.mxu0 }
 0x16e   : > { %v2408_v15 = vadd.f32 %v2407_v14, %v2406_v10  ;;  %v2519_v16 = vpop.f32.mrf.mxu1  ;;  %v441_v10 = vld [vmem:[#allocation2 + $0x40] sm:$0xff] }
 0x16f   : > { %v1428_v17 = vadd.f32 %v1334_v13, %v434_v11  ;;  %v2520_v18 = vadd.f32 %v2519_v16, %v2518_v12  ;;  %v2409_v19 = vpop.f32.mrf.mxu0 }
 0x170   : > { %v2521_v21 = vpop.f32.mrf.mxu1 }
 0x171   : > { %1460 = vst [vmem:[#allocation2 + $0xb8] sm:$0xff] %v1428_v17  ;;  %v1339_v22 = vadd.f32 %v2520_v18, %v2408_v15  ;;  %v2410_v23 = vpop.f32.mrf.mxu0 }
 0x172   : > { %v2411_v24 = vadd.f32 %v2410_v23, %v2409_v19  ;;  %v2522_v25 = vpop.f32.mrf.mxu1  ;;  %v442_v19 = vld [vmem:[#allocation2 + $0xc8] sm:$0xff] }
 0x173   : > { %v1429_v26 = vadd.f32 %v1339_v22, %v435_v20  ;;  %v2523_v27 = vadd.f32 %v2522_v25, %v2521_v21  ;;  %v2412_v28 = vpop.f32.mrf.mxu0 }
 0x174   : > { %v2524_v30 = vpop.f32.mrf.mxu1 }
 0x175   : > { %1461 = vst [vmem:[#allocation2 + $0x60] sm:$0xff] %v1429_v26  ;;  %v1342_v31 = vadd.f32 %v2523_v27, %v2411_v24  ;;  %v2413_v32 = vpop.f32.mrf.mxu0 }
 0x176   : > { %v2414_v33 = vadd.f32 %v2413_v32, %v2412_v28  ;;  %v2525_v34 = vpop.f32.mrf.mxu1  ;;  %v443_v28 = vld [vmem:[#allocation2 + $0xe0] sm:$0xff] }
 0x177   : > { %v1430_v35 = vadd.f32 %v1342_v31, %v436_v29  ;;  %v2526_v36 = vadd.f32 %v2525_v34, %v2524_v30  ;;  %v2415_v37 = vpop.f32.mrf.mxu0 }
 0x178   : > { %v2527_v39 = vpop.f32.mrf.mxu1 }
 0x179   : > { %1462 = vst [vmem:[#allocation2 + $0xf0] sm:$0xff] %v1430_v35  ;;  %v1347_v40 = vadd.f32 %v2526_v36, %v2414_v33  ;;  %v2416_v41 = vpop.f32.mrf.mxu0 }
 0x17a   : > { %v2417_v42 = vadd.f32 %v2416_v41, %v2415_v37  ;;  %v2528_v43 = vpop.f32.mrf.mxu1  ;;  %v444_v37 = vld [vmem:[#allocation2 + $0x90] sm:$0xff] }
 0x17b   : > { %v1431_v44 = vadd.f32 %v1347_v40, %v437_v38  ;;  %v2529_v45 = vadd.f32 %v2528_v43, %v2527_v39  ;;  %v2418_v46 = vpop.f32.mrf.mxu0 }
 0x17c   : > { %v2530_v48 = vpop.f32.mrf.mxu1 }
 0x17d   : > { %1463 = vst [vmem:[#allocation2 + $0x8] sm:$0xff] %v1431_v44  ;;  %v1350_v49 = vadd.f32 %v2529_v45, %v2417_v42  ;;  %v2419_v50 = vpop.f32.mrf.mxu0 }
 0x17e   : > { %v2420_v51 = vadd.f32 %v2419_v50, %v2418_v46  ;;  %v2531_v52 = vpop.f32.mrf.mxu1  ;;  %v445_v46 = vld [vmem:[#allocation2 + $0x70] sm:$0xff] }
 0x17f   : > { %v1432_v53 = vadd.f32 %v1350_v49, %v438_v47  ;;  %v2532_v54 = vadd.f32 %v2531_v52, %v2530_v48  ;;  %v2421_v55 = vpop.f32.mrf.mxu0 }
 0x180   : > { %v2533_v57 = vpop.f32.mrf.mxu1 }
 0x181   : > { %1464 = vst [vmem:[#allocation2 + $0x78] sm:$0xff] %v1432_v53  ;;  %v1355_v58 = vadd.f32 %v2532_v54, %v2420_v51  ;;  %v2422_v59 = vpop.f32.mrf.mxu0 }
 0x182   : > { %v2423_v60 = vadd.f32 %v2422_v59, %v2421_v55  ;;  %v2534_v61 = vpop.f32.mrf.mxu1  ;;  %v446_v55 = vld [vmem:[#allocation2 + $0xc0] sm:$0xff] }
 0x183   : > { %v1433_v62 = vadd.f32 %v1355_v58, %v439_v56  ;;  %v2535_v63 = vadd.f32 %v2534_v61, %v2533_v57  ;;  %v2424_v0 = vpop.f32.mrf.mxu0 }
 0x184   : > { %v2536_v2 = vpop.f32.mrf.mxu1 }
 0x185   : > { %1465 = vst [vmem:[#allocation2 + $0x38] sm:$0xff] %v1433_v62  ;;  %v1358_v3 = vadd.f32 %v2535_v63, %v2423_v60  ;;  %v2425_v4 = vpop.f32.mrf.mxu0 }
 0x186   : > { %v2426_v5 = vadd.f32 %v2425_v4, %v2424_v0  ;;  %v2537_v6 = vpop.f32.mrf.mxu1  ;;  %v447_v0 = vld [vmem:[#allocation2 + $0xa8] sm:$0xff] }
 0x187   : > { %v1434_v7 = vadd.f32 %v1358_v3, %v440_v1  ;;  %v2538_v8 = vadd.f32 %v2537_v6, %v2536_v2  ;;  %v2427_v9 = vpop.f32.mrf.mxu0 }
 0x188   : > { %v2539_v11 = vpop.f32.mrf.mxu1 }
 0x189   : > { %1466 = vst [vmem:[#allocation2 + $0x58] sm:$0xff] %v1434_v7  ;;  %v1363_v12 = vadd.f32 %v2538_v8, %v2426_v5  ;;  %v2428_v13 = vpop.f32.mrf.mxu0 }
 0x18a   : > { %v2429_v14 = vadd.f32 %v2428_v13, %v2427_v9  ;;  %v2540_v15 = vpop.f32.mrf.mxu1  ;;  %v448_v9 = vld [vmem:[#allocation2 + $0xd0] sm:$0xff] }
 0x18b   : > { %v1435_v16 = vadd.f32 %v1363_v12, %v441_v10  ;;  %v2541_v17 = vadd.f32 %v2540_v15, %v2539_v11  ;;  %v2430_v18 = vpop.f32.mrf.mxu0 }
 0x18c   : > { %v2542_v20 = vpop.f32.mrf.mxu1 }
 0x18d   : > { %1467 = vst [vmem:[#allocation2 + $0x40] sm:$0xff] %v1435_v16  ;;  %v1366_v21 = vadd.f32 %v2541_v17, %v2429_v14  ;;  %v2431_v22 = vpop.f32.mrf.mxu0 }
 0x18e   : > { %v2432_v23 = vadd.f32 %v2431_v22, %v2430_v18  ;;  %v2543_v24 = vpop.f32.mrf.mxu1  ;;  %v449_v18 = vld [vmem:[#allocation2 + $0x10] sm:$0xff] }
 0x18f   : > { %v1436_v25 = vadd.f32 %v1366_v21, %v442_v19  ;;  %v2544_v26 = vadd.f32 %v2543_v24, %v2542_v20  ;;  %v2433_v27 = vpop.f32.mrf.mxu0 }
 0x190   : > { %v2545_v29 = vpop.f32.mrf.mxu1 }
 0x191   : > { %1468 = vst [vmem:[#allocation2 + $0xc8] sm:$0xff] %v1436_v25  ;;  %v1371_v30 = vadd.f32 %v2544_v26, %v2432_v23  ;;  %v2434_v31 = vpop.f32.mrf.mxu0 }
 0x192   : > { %v2435_v32 = vadd.f32 %v2434_v31, %v2433_v27  ;;  %v2546_v33 = vpop.f32.mrf.mxu1  ;;  %v450_v27 = vld [vmem:[#allocation2 + $0x28] sm:$0xff] }
 0x193   : > { %v1437_v34 = vadd.f32 %v1371_v30, %v443_v28  ;;  %v2547_v35 = vadd.f32 %v2546_v33, %v2545_v29  ;;  %v2436_v36 = vpop.f32.mrf.mxu0 }
 0x194   : > { %v2548_v38 = vpop.f32.mrf.mxu1 }
 0x195   : > { %1469 = vst [vmem:[#allocation2 + $0xe0] sm:$0xff] %v1437_v34  ;;  %v1374_v39 = vadd.f32 %v2547_v35, %v2435_v32  ;;  %v2437_v40 = vpop.f32.mrf.mxu0 }
 0x196   : > { %v2438_v41 = vadd.f32 %v2437_v40, %v2436_v36  ;;  %v2549_v42 = vpop.f32.mrf.mxu1  ;;  %v451_v36 = vld [vmem:[#allocation2 + $0xa0] sm:$0xff] }
 0x197   : > { %v1438_v43 = vadd.f32 %v1374_v39, %v444_v37  ;;  %v2550_v44 = vadd.f32 %v2549_v42, %v2548_v38  ;;  %v2439_v45 = vpop.f32.mrf.mxu0 }
 0x198   : > { %v2551_v47 = vpop.f32.mrf.mxu1 }
 0x199   : > { %1470 = vst [vmem:[#allocation2 + $0x90] sm:$0xff] %v1438_v43  ;;  %v1379_v48 = vadd.f32 %v2550_v44, %v2438_v41  ;;  %v2440_v49 = vpop.f32.mrf.mxu0 }
 0x19a   : > { %v2441_v50 = vadd.f32 %v2440_v49, %v2439_v45  ;;  %v2552_v51 = vpop.f32.mrf.mxu1  ;;  %v452_v45 = vld [vmem:[#allocation2 + $0xf8] sm:$0xff] }
 0x19b   : > { %v1439_v52 = vadd.f32 %v1379_v48, %v445_v46  ;;  %v2553_v53 = vadd.f32 %v2552_v51, %v2551_v47  ;;  %v2442_v54 = vpop.f32.mrf.mxu0 }
 0x19c   : > { %v2554_v56 = vpop.f32.mrf.mxu1 }
 0x19d   : > { %1471 = vst [vmem:[#allocation2 + $0x70] sm:$0xff] %v1439_v52  ;;  %v1382_v57 = vadd.f32 %v2553_v53, %v2441_v50  ;;  %v2443_v58 = vpop.f32.mrf.mxu0 }
 0x19e   : > { %v2444_v59 = vadd.f32 %v2443_v58, %v2442_v54  ;;  %v2555_v60 = vpop.f32.mrf.mxu1  ;;  %v453_v54 = vld [vmem:[#allocation2 + $0x20] sm:$0xff] }
 0x19f   : > { %v1440_v61 = vadd.f32 %v1382_v57, %v446_v55  ;;  %v2556_v62 = vadd.f32 %v2555_v60, %v2554_v56  ;;  %v2445_v63 = vpop.f32.mrf.mxu0 }
 0x1a0   : > { %v2557_v1 = vpop.f32.mrf.mxu1 }
 0x1a1   : > { %1472 = vst [vmem:[#allocation2 + $0xc0] sm:$0xff] %v1440_v61  ;;  %v1387_v2 = vadd.f32 %v2556_v62, %v2444_v59  ;;  %v2446_v3 = vpop.f32.mrf.mxu0  ;;  %v454_v62 = vld [vmem:[#allocation2 + $0x98] sm:$0xff] }
 0x1a2   : > { %v2447_v4 = vadd.f32 %v2446_v3, %v2445_v63  ;;  %v2558_v5 = vpop.f32.mrf.mxu1 }
 0x1a3   : > { %v1441_v6 = vadd.f32 %v1387_v2, %v447_v0  ;;  %v2559_v7 = vadd.f32 %v2558_v5, %v2557_v1  ;;  %v2448_v8 = vpop.f32.mrf.mxu0 }
 0x1a4   : > { %v2560_v10 = vpop.f32.mrf.mxu1 }
 0x1a5   : > { %1473 = vst [vmem:[#allocation2 + $0xa8] sm:$0xff] %v1441_v6  ;;  %v1390_v11 = vadd.f32 %v2559_v7, %v2447_v4  ;;  %v2449_v12 = vpop.f32.mrf.mxu0 }
 0x1a6   : > { %v2450_v13 = vadd.f32 %v2449_v12, %v2448_v8  ;;  %v2561_v14 = vpop.f32.mrf.mxu1 }
 0x1a7   : > { %v1442_v15 = vadd.f32 %v1390_v11, %v448_v9  ;;  %v2562_v16 = vadd.f32 %v2561_v14, %v2560_v10  ;;  %v2451_v17 = vpop.f32.mrf.mxu0 }
 0x1a8   : > { %v2563_v19 = vpop.f32.mrf.mxu1 }
 0x1a9   : > { %1474 = vst [vmem:[#allocation2 + $0xd0] sm:$0xff] %v1442_v15  ;;  %v1395_v20 = vadd.f32 %v2562_v16, %v2450_v13  ;;  %v2452_v21 = vpop.f32.mrf.mxu0 }
 0x1aa   : > { %v2453_v22 = vadd.f32 %v2452_v21, %v2451_v17  ;;  %v2564_v23 = vpop.f32.mrf.mxu1 }
 0x1ab   : > { %v1443_v24 = vadd.f32 %v1395_v20, %v449_v18  ;;  %v2565_v25 = vadd.f32 %v2564_v23, %v2563_v19  ;;  %v2454_v26 = vpop.f32.mrf.mxu0 }
 0x1ac   : > { %v2566_v28 = vpop.f32.mrf.mxu1 }
 0x1ad   : > { %1475 = vst [vmem:[#allocation2 + $0x10] sm:$0xff] %v1443_v24  ;;  %v1398_v29 = vadd.f32 %v2565_v25, %v2453_v22  ;;  %v2455_v30 = vpop.f32.mrf.mxu0 }
 0x1ae   : > { %v2456_v31 = vadd.f32 %v2455_v30, %v2454_v26  ;;  %v2567_v32 = vpop.f32.mrf.mxu1 }
 0x1af   : > { %v1444_v33 = vadd.f32 %v1398_v29, %v450_v27  ;;  %v2568_v34 = vadd.f32 %v2567_v32, %v2566_v28  ;;  %v2457_v35 = vpop.f32.mrf.mxu0 }
 0x1b0   : > { %v2569_v37 = vpop.f32.mrf.mxu1 }
 0x1b1   : > { %1476 = vst [vmem:[#allocation2 + $0x28] sm:$0xff] %v1444_v33  ;;  %v1403_v38 = vadd.f32 %v2568_v34, %v2456_v31  ;;  %v2458_v39 = vpop.f32.mrf.mxu0 }
 0x1b2   : > { %v2459_v40 = vadd.f32 %v2458_v39, %v2457_v35  ;;  %v2570_v41 = vpop.f32.mrf.mxu1 }
 0x1b3   : > { %v1445_v42 = vadd.f32 %v1403_v38, %v451_v36  ;;  %v2571_v43 = vadd.f32 %v2570_v41, %v2569_v37  ;;  %v2460_v44 = vpop.f32.mrf.mxu0 }
 0x1b4   : > { %v2572_v46 = vpop.f32.mrf.mxu1 }
 0x1b5   : > { %1477 = vst [vmem:[#allocation2 + $0xa0] sm:$0xff] %v1445_v42  ;;  %v1406_v47 = vadd.f32 %v2571_v43, %v2459_v40  ;;  %v2461_v48 = vpop.f32.mrf.mxu0 }
 0x1b6   : > { %v2462_v49 = vadd.f32 %v2461_v48, %v2460_v44  ;;  %v2573_v50 = vpop.f32.mrf.mxu1 }
 0x1b7   : > { %v1446_v51 = vadd.f32 %v1406_v47, %v452_v45  ;;  %v2574_v52 = vadd.f32 %v2573_v50, %v2572_v46  ;;  %v2463_v53 = vpop.f32.mrf.mxu0 }
 0x1b8   : > { %v2575_v55 = vpop.f32.mrf.mxu1 }
 0x1b9   : > { %1478 = vst [vmem:[#allocation2 + $0xf8] sm:$0xff] %v1446_v51  ;;  %v1411_v56 = vadd.f32 %v2574_v52, %v2462_v49  ;;  %v2464_v57 = vpop.f32.mrf.mxu0 }
 0x1ba   : > { %v2465_v58 = vadd.f32 %v2464_v57, %v2463_v53  ;;  %v2576_v59 = vpop.f32.mrf.mxu1 }
 0x1bb   : > { %v1447_v60 = vadd.f32 %v1411_v56, %v453_v54  ;;  %v2577_v61 = vadd.f32 %v2576_v59, %v2575_v55 }
 0x1bd   : > { %1479 = vst [vmem:[#allocation2 + $0x20] sm:$0xff] %v1447_v60  ;;  %v1414_v63 = vadd.f32 %v2577_v61, %v2465_v58  ;;  %1484 = sbr.rel (%p2190_p13) target bundleno = 710 (0x2c6), region = 67 }
 0x1bf   : > { %v1448_v0 = vadd.f32 %v1414_v63, %v454_v62 }
 0x1c1   : > { %1480 = vst [vmem:[#allocation2 + $0x98] sm:$0xff] %v1448_v0 }
 0x1c2   : > { %v1603_v1 = vld [vmem:[%s3437_s3 + $0x78] sm:$0xff]  ;;  %v1602_v2 = vld [vmem:[%s3437_s3 + $0x70] sm:$0xff]  ;;  %v1601_v3 = vld [vmem:[%s3437_s3 + $0x68] sm:$0xff] }
 0x1c3   : > { %2626 = vmatprep.subr.mxu0 %v1603_v1  ;;  %2706 = vmatprep.subr.mxu1 %v1603_v1  ;;  %v1600_v4 = vld [vmem:[%s3437_s3 + $0x60] sm:$0xff]  ;;  %v1599_v5 = vld [vmem:[%s3437_s3 + $0x58] sm:$0xff]  ;;  %v1598_v6 = vld [vmem:[%s3437_s3 + $0x50] sm:$0xff] }
 0x1c4   : > { %2627 = vmatpush3.msra.mxu0 %v1603_v1  ;;  %2722 = vmatpush3.msra.mxu1 %v1603_v1  ;;  %v1597_v7 = vld [vmem:[%s3437_s3 + $0x48] sm:$0xff]  ;;  %v1596_v8 = vld [vmem:[%s3437_s3 + $0x40] sm:$0xff]  ;;  %v1595_v9 = vld [vmem:[%s3437_s3 + $0x38] sm:$0xff] }
 0x1c5   : > { %2628 = vmatprep.subr.mxu0 %v1602_v2  ;;  %2707 = vmatprep.subr.mxu1 %v1602_v2  ;;  %v1594_v10 = vld [vmem:[%s3437_s3 + $0x30] sm:$0xff]  ;;  %v1593_v11 = vld [vmem:[%s3437_s3 + $0x28] sm:$0xff]  ;;  %v1592_v12 = vld [vmem:[%s3437_s3 + $0x20] sm:$0xff] }
 0x1c6   : > { %2629 = vmatpush3.msra.mxu0 %v1602_v2  ;;  %2723 = vmatpush3.msra.mxu1 %v1602_v2  ;;  %v1591_v13 = vld [vmem:[%s3437_s3 + $0x18] sm:$0xff]  ;;  %v1485_v14 = vld [vmem:[#allocation2 + $0xb0] sm:$0xff]  ;;  %v3354_v15 = vld [vmem:[%s3436_s2] ss:$0 sm:$0xff] }
 0x1c7   : > { %2630 = vmatprep.subr.mxu0 %v1601_v3  ;;  %2708 = vmatprep.subr.mxu1 %v1601_v3  ;;  %v1501_v16 = vld [vmem:[#allocation2 + $0x38] sm:$0xff]  ;;  %v1486_v17 = vld [vmem:[#allocation2] sm:$0xff]  ;;  %v1590_v19 = vld [vmem:[%s3437_s3 + $0x10] sm:$0xff]  ;;  %v1524_v22 = vadd.f32 %v3354_v15, %v1485_v14 }
 0x1c8   : > { %2631 = vmatpush3.msra.mxu0 %v1601_v3  ;;  %2724 = vmatpush3.msra.mxu1 %v1601_v3  ;;  %v1502_v18 = vld [vmem:[#allocation2 + $0x58] sm:$0xff]  ;;  %v1503_v21 = vld [vmem:[#allocation2 + $0x40] sm:$0xff]  ;;  %v1540_v23 = vadd.f32 %v3354_v15, %v1501_v16  ;;  %v1589_v24 = vld [vmem:[%s3437_s3 + $0x8] sm:$0xff]  ;;  %v1525_v25 = vadd.f32 %v3354_v15, %v1486_v17 }
 0x1c9   : > { %2632 = vmatprep.subr.mxu0 %v1600_v4  ;;  %2709 = vmatprep.subr.mxu1 %v1600_v4  ;;  %v1487_v20 = vld [vmem:[#allocation2 + $0xd8] sm:$0xff]  ;;  %v1541_v26 = vadd.f32 %v3354_v15, %v1502_v18  ;;  %v1542_v28 = vadd.f32 %v3354_v15, %v1503_v21  ;;  %v1504_v30 = vld [vmem:[#allocation2 + $0xc8] sm:$0xff]  ;;  %v1588_v31 = vld [vmem:[%s3437_s3] sm:$0xff]  ;;  %v1556_v34 = vmax.f32 %v1524_v22, 0.0 }
 0x1ca   : > { %2633 = vmatpush3.msra.mxu0 %v1600_v4  ;;  %2725 = vmatpush3.msra.mxu1 %v1600_v4  ;;  %v1526_v27 = vadd.f32 %v3354_v15, %v1487_v20  ;;  %v1488_v29 = vld [vmem:[#allocation2 + $0x18] sm:$0xff]  ;;  %v1489_v32 = vld [vmem:[#allocation2 + $0x50] sm:$0xff]  ;;  %v1505_v33 = vld [vmem:[#allocation2 + $0xe0] sm:$0xff]  ;;  %v1572_v35 = vmax.f32 %v1540_v23, 0.0  ;;  %v1557_v36 = vmax.f32 %v1525_v25, 0.0  ;;  %v1543_v39 = vadd.f32 %v3354_v15, %v1504_v30 }
 0x1cb   : > { %2634 = vmatprep.subr.mxu0 %v1599_v5  ;;  %2710 = vmatprep.subr.mxu1 %v1599_v5  ;;  %v1573_v37 = vmax.f32 %v1541_v26, 0.0  ;;  %v1527_v38 = vadd.f32 %v3354_v15, %v1488_v29  ;;  %v1574_v41 = vmax.f32 %v1542_v28, 0.0  ;;  %v1528_v42 = vadd.f32 %v3354_v15, %v1489_v32  ;;  %v1490_v44 = vld [vmem:[#allocation2 + $0x68] sm:$0xff]  ;;  %v1506_v45 = vld [vmem:[#allocation2 + $0x90] sm:$0xff]  ;;  %v1508_v57 = vld [vmem:[#allocation2 + $0xc0] sm:$0xff] }
 0x1cc   : > { %2635 = vmatpush3.msra.mxu0 %v1599_v5  ;;  %2726 = vmatpush3.msra.mxu1 %v1599_v5  ;;  %v1558_v40 = vmax.f32 %v1526_v27, 0.0  ;;  %v1544_v43 = vadd.f32 %v3354_v15, %v1505_v33  ;;  %v1491_v46 = vld [vmem:[#allocation2 + $0x30] sm:$0xff]  ;;  %v1575_v49 = vmax.f32 %v1543_v39, 0.0  ;;  %v1529_v50 = vadd.f32 %v3354_v15, %v1490_v44  ;;  %v1492_v56 = vld [vmem:[#allocation2 + $0x48] sm:$0xff]  ;;  %v1493_v58 = vld [vmem:[#allocation2 + $0x80] sm:$0xff] }
 0x1cd   : > { %2636 = vmatprep.subr.mxu0 %v1598_v6  ;;  %2711 = vmatprep.subr.mxu1 %v1598_v6  ;;  %v1507_v47 = vld [vmem:[#allocation2 + $0x70] sm:$0xff]  ;;  %v1559_v48 = vmax.f32 %v1527_v38, 0.0  ;;  %v1545_v51 = vadd.f32 %v3354_v15, %v1506_v45  ;;  %v1560_v52 = vmax.f32 %v1528_v42, 0.0  ;;  %v1530_v54 = vadd.f32 %v3354_v15, %v1491_v46  ;;  %v1509_v59 = vld [vmem:[#allocation2 + $0xa8] sm:$0xff]  ;;  %v1496_v17 = vld [vmem:[#allocation2 + $0xb8] sm:$0xff] }
 0x1ce   : > { %2637 = vmatpush3.msra.mxu0 %v1598_v6  ;;  %2727 = vmatpush3.msra.mxu1 %v1598_v6  ;;  %v1576_v53 = vmax.f32 %v1544_v43, 0.0  ;;  %v1546_v55 = vadd.f32 %v3354_v15, %v1507_v47  ;;  %v1561_v60 = vmax.f32 %v1529_v50, 0.0  ;;  %v1531_v62 = vadd.f32 %v3354_v15, %v1492_v56  ;;  %v1494_v4 = vld [vmem:[#allocation2 + $0x88] sm:$0xff]  ;;  %v1510_v5 = vld [vmem:[#allocation2 + $0xd0] sm:$0xff]  ;;  %v1513_v20 = vld [vmem:[#allocation2 + $0xa0] sm:$0xff] }
 0x1cf   : > { %2638 = vmatprep.subr.mxu0 %v1597_v7  ;;  %2712 = vmatprep.subr.mxu1 %v1597_v7  ;;  %v1577_v61 = vmax.f32 %v1545_v51, 0.0  ;;  %v1547_v63 = vadd.f32 %v3354_v15, %v1508_v57  ;;  %v1562_v0 = vmax.f32 %v1530_v54, 0.0  ;;  %v1532_v2 = vadd.f32 %v3354_v15, %v1493_v58  ;;  %v1495_v6 = vld [vmem:[#allocation2 + $0xe8] sm:$0xff]  ;;  %v1498_v29 = vld [vmem:[#allocation2 + $0xf0] sm:$0xff]  ;;  %v1514_v30 = vld [vmem:[#allocation2 + $0xf8] sm:$0xff] }
 0x1d0   : > { %2639 = vmatpush3.msra.mxu0 %v1597_v7  ;;  %2728 = vmatpush3.msra.mxu1 %v1597_v7  ;;  %v1578_v1 = vmax.f32 %v1546_v55, 0.0  ;;  %v1548_v3 = vadd.f32 %v3354_v15, %v1509_v59  ;;  %v1511_v7 = vld [vmem:[#allocation2 + $0x10] sm:$0xff]  ;;  %v1534_v14 = vadd.f32 %v3354_v15, %v1495_v6  ;;  %v1512_v18 = vld [vmem:[#allocation2 + $0x28] sm:$0xff]  ;;  %v1535_v23 = vadd.f32 %v3354_v15, %v1496_v17  ;;  %v1515_v32 = vld [vmem:[#allocation2 + $0x20] sm:$0xff] }
 0x1d1   : > { %2640 = vmatprep.subr.mxu0 %v1596_v8  ;;  %2713 = vmatprep.subr.mxu1 %v1596_v8  ;;  %v1550_v16 = vadd.f32 %v3354_v15, %v1511_v7  ;;  %v1552_v28 = vadd.f32 %v3354_v15, %v1513_v20  ;;  %v1516_v42 = vld [vmem:[#allocation2 + $0x98] sm:$0xff] }
 0x1d2   : > { %2641 = vmatpush3.msra.mxu0 %v1596_v8  ;;  %2729 = vmatpush3.msra.mxu1 %v1596_v8  ;;  %v1563_v8 = vmax.f32 %v1531_v62, 0.0  ;;  %v1566_v25 = vmax.f32 %v1534_v14, 0.0  ;;  %v1567_v33 = vmax.f32 %v1535_v23, 0.0  ;;  %v1555_v46 = vadd.f32 %v3354_v15, %v1516_v42 }
 0x1d3   : > { %2642 = vmatprep.subr.mxu0 %v1595_v9  ;;  %2714 = vmatprep.subr.mxu1 %v1595_v9  ;;  %v1582_v26 = vmax.f32 %v1550_v16, 0.0  ;;  %v1584_v38 = vmax.f32 %v1552_v28, 0.0 }
 0x1d4   : > { %2643 = vmatpush3.msra.mxu0 %v1595_v9  ;;  %2730 = vmatpush3.msra.mxu1 %v1595_v9  ;;  %v1579_v9 = vmax.f32 %v1547_v63, 0.0  ;;  %v1587_v50 = vmax.f32 %v1555_v46, 0.0 }
 0x1d5   : > { %2644 = vmatprep.subr.mxu0 %v1594_v10  ;;  %2715 = vmatprep.subr.mxu1 %v1594_v10 }
 0x1d6   : > { %2645 = vmatpush3.msra.mxu0 %v1594_v10  ;;  %2731 = vmatpush3.msra.mxu1 %v1594_v10  ;;  %v1533_v10 = vadd.f32 %v3354_v15, %v1494_v4 }
 0x1d7   : > { %2646 = vmatprep.subr.mxu0 %v1593_v11  ;;  %2716 = vmatprep.subr.mxu1 %v1593_v11 }
 0x1d8   : > { %2647 = vmatpush3.msra.mxu0 %v1593_v11  ;;  %2732 = vmatpush3.msra.mxu1 %v1593_v11  ;;  %v1549_v11 = vadd.f32 %v3354_v15, %v1510_v5  ;;  %v1565_v21 = vmax.f32 %v1533_v10, 0.0 }
 0x1d9   : > { %2648 = vmatprep.subr.mxu0 %v1592_v12  ;;  %2717 = vmatprep.subr.mxu1 %v1592_v12 }
 0x1da   : > { %2649 = vmatpush3.msra.mxu0 %v1592_v12  ;;  %2733 = vmatpush3.msra.mxu1 %v1592_v12  ;;  %v1564_v12 = vmax.f32 %v1532_v2, 0.0  ;;  %v1581_v22 = vmax.f32 %v1549_v11, 0.0 }
 0x1db   : > { %2650 = vmatprep.subr.mxu0 %v1591_v13  ;;  %2718 = vmatprep.subr.mxu1 %v1591_v13 }
 0x1dc   : > { %2651 = vmatpush3.msra.mxu0 %v1591_v13  ;;  %2734 = vmatpush3.msra.mxu1 %v1591_v13  ;;  %v1580_v13 = vmax.f32 %v1548_v3, 0.0 }
 0x1dd   : > { %2652 = vmatprep.subr.mxu0 %v1590_v19  ;;  %2719 = vmatprep.subr.mxu1 %v1590_v19 }
 0x1de   : > { %2653 = vmatpush3.msra.mxu0 %v1590_v19  ;;  %2735 = vmatpush3.msra.mxu1 %v1590_v19  ;;  %v1497_v19 = vld [vmem:[#allocation2 + $0x60] sm:$0xff] }
 0x1df   : > { %2654 = vmatprep.subr.mxu0 %v1589_v24  ;;  %2720 = vmatprep.subr.mxu1 %v1589_v24  ;;  %v1536_v27 = vadd.f32 %v3354_v15, %v1497_v19 }
 0x1e0   : > { %2655 = vmatpush3.msra.mxu0 %v1589_v24  ;;  %2736 = vmatpush3.msra.mxu1 %v1589_v24  ;;  %v1551_v24 = vadd.f32 %v3354_v15, %v1512_v18 }
 0x1e1   : > { %2656 = vmatprep.subr.mxu0 %v1588_v31  ;;  %2721 = vmatprep.subr.mxu1 %v1588_v31 }
 0x1e2   : > { %2657 = vmatpush3.msra.mxu0 %v1588_v31  ;;  %2737 = vmatpush3.msra.mxu1 %v1588_v31  ;;  %v1499_v31 = vld [vmem:[#allocation2 + $0x8] sm:$0xff] }
 0x1e3   : > { %2658 = vmatprep.mubr.f32.mxu0 %v1556_v34  ;;  %2682 = vmatprep.mubr.f32.mxu1 %v1572_v35  ;;  %v1583_v34 = vmax.f32 %v1551_v24, 0.0  ;;  %v1537_v35 = vadd.f32 %v3354_v15, %v1498_v29  ;;  %v1538_v39 = vadd.f32 %v3354_v15, %v1499_v31 }
 0x1e4   : > { %2659 = vmatmul.mubr.f32.vlgmr.msra.gmra.mxu0 %v1557_v36  ;;  %2683 = vmatmul.mubr.f32.vlgmr.msra.gmra.mxu1 %v1573_v37  ;;  %v1553_v36 = vadd.f32 %v3354_v15, %v1514_v30  ;;  %v1568_v37 = vmax.f32 %v1536_v27, 0.0 }
 0x1e5   : > { %2661 = vmatprep.mubr.f32.mxu0 %v1558_v40  ;;  %2685 = vmatprep.mubr.f32.mxu1 %v1574_v41  ;;  %v1554_v40 = vadd.f32 %v3354_v15, %v1515_v32  ;;  %v1500_v41 = vld [vmem:[#allocation2 + $0x78] sm:$0xff]  ;;  %v1569_v43 = vmax.f32 %v1537_v35, 0.0  ;;  %v1570_v47 = vmax.f32 %v1538_v39, 0.0 }
 0x1e6   : > { %v1585_v44 = vmax.f32 %v1553_v36, 0.0  ;;  %v1539_v45 = vadd.f32 %v3354_v15, %v1500_v41 }
 0x1e8   : > { %2662 = vmatmul.mubr.f32.gmra.mxu0 %v1559_v48  ;;  %2686 = vmatmul.mubr.f32.gmra.mxu1 %v1575_v49  ;;  %v1586_v48 = vmax.f32 %v1554_v40, 0.0  ;;  %v1571_v49 = vmax.f32 %v1539_v45, 0.0 }
 0x1e9   : > { %2664 = vmatprep.mubr.f32.mxu0 %v1560_v52  ;;  %2688 = vmatprep.mubr.f32.mxu1 %v1576_v53 }
 0x1ec   : > { %2665 = vmatmul.mubr.f32.gmra.mxu0 %v1561_v60  ;;  %2689 = vmatmul.mubr.f32.gmra.mxu1 %v1577_v61 }
 0x1ed   : > { %2667 = vmatprep.mubr.f32.mxu0 %v1562_v0  ;;  %2691 = vmatprep.mubr.f32.mxu1 %v1578_v1 }
 0x1f0   : > { %2668 = vmatmul.mubr.f32.gmra.mxu0 %v1563_v8  ;;  %2692 = vmatmul.mubr.f32.gmra.mxu1 %v1579_v9 }
 0x1f1   : > { %2670 = vmatprep.mubr.f32.mxu0 %v1564_v12  ;;  %2694 = vmatprep.mubr.f32.mxu1 %v1580_v13 }
 0x1f4   : > { %2671 = vmatmul.mubr.f32.gmra.mxu0 %v1565_v21  ;;  %2695 = vmatmul.mubr.f32.gmra.mxu1 %v1581_v22 }
 0x1f5   : > { %2673 = vmatprep.mubr.f32.mxu0 %v1566_v25  ;;  %2697 = vmatprep.mubr.f32.mxu1 %v1582_v26 }
 0x1f8   : > { %2674 = vmatmul.mubr.f32.gmra.mxu0 %v1567_v33  ;;  %2698 = vmatmul.mubr.f32.gmra.mxu1 %v1583_v34 }
 0x1f9   : > { %2676 = vmatprep.mubr.f32.mxu0 %v1568_v37  ;;  %2700 = vmatprep.mubr.f32.mxu1 %v1584_v38 }
 0x1fc   : > { %2677 = vmatmul.mubr.f32.gmra.mxu0 %v1569_v43  ;;  %2701 = vmatmul.mubr.f32.gmra.mxu1 %v1585_v44 }
 0x1fd   : > { %2679 = vmatprep.mubr.f32.mxu0 %v1570_v47  ;;  %2703 = vmatprep.mubr.f32.mxu1 %v1586_v48 }
 0x200   : > { %2680 = vmatmul.mubr.f32.gmra.mxu0 %v1571_v49  ;;  %2704 = vmatmul.mubr.f32.gmra.mxu1 %v1587_v50 }
 0x2a4   : > { %v2660_v51 = vpop.f32.mrf.mxu0  ;;  %v2684_v52 = vpop.f32.mrf.mxu1 }
 0x2a6   : > { %v1670_v53 = vpop.f32.mrf.mxu0  ;;  %v1750_v15 = vpop.f32.mrf.mxu1 }
 0x2a7   : > { %v2262_v54 = vpack.c.bf16 %v2660_v51, %v1670_v53  ;;  %v2302_v55 = vpack.c.bf16 %v2684_v52, %v1750_v15 }
 0x2a8   : > { %v2663_v56 = vpop.f32.mrf.mxu0  ;;  %v2687_v57 = vpop.f32.mrf.mxu1 }
 0x2a9   : > { %2263 = vst [vmem:[%s3210_s8] sm:$0xff] %v2262_v54   ;;  %2346 = vst [vmem:[%s3210_s8 + $0x40] sm:$0xff] %v2302_v55  }
 0x2aa   : > { %v1680_v58 = vpop.f32.mrf.mxu0  ;;  %v1760_v59 = vpop.f32.mrf.mxu1 }
 0x2ab   : > { %v2267_v60 = vpack.c.bf16 %v2663_v56, %v1680_v58  ;;  %v2307_v61 = vpack.c.bf16 %v2687_v57, %v1760_v59 }
 0x2ac   : > { %v2666_v62 = vpop.f32.mrf.mxu0  ;;  %v2690_v63 = vpop.f32.mrf.mxu1 }
 0x2ad   : > { %2339 = vst [vmem:[%s3210_s8 + $0x8] sm:$0xff] %v2267_v60   ;;  %2347 = vst [vmem:[%s3210_s8 + $0x48] sm:$0xff] %v2307_v61  }
 0x2ae   : > { %v1690_v0 = vpop.f32.mrf.mxu0  ;;  %v1770_v1 = vpop.f32.mrf.mxu1 }
 0x2af   : > { %v2272_v2 = vpack.c.bf16 %v2666_v62, %v1690_v0  ;;  %v2312_v3 = vpack.c.bf16 %v2690_v63, %v1770_v1 }
 0x2b0   : > { %v2669_v4 = vpop.f32.mrf.mxu0  ;;  %v2693_v5 = vpop.f32.mrf.mxu1 }
 0x2b1   : > { %2340 = vst [vmem:[%s3210_s8 + $0x10] sm:$0xff] %v2272_v2   ;;  %2348 = vst [vmem:[%s3210_s8 + $0x50] sm:$0xff] %v2312_v3  }
 0x2b2   : > { %v1700_v6 = vpop.f32.mrf.mxu0  ;;  %v1780_v7 = vpop.f32.mrf.mxu1 }
 0x2b3   : > { %v2277_v8 = vpack.c.bf16 %v2669_v4, %v1700_v6  ;;  %v2317_v9 = vpack.c.bf16 %v2693_v5, %v1780_v7 }
 0x2b4   : > { %v2672_v10 = vpop.f32.mrf.mxu0  ;;  %v2696_v11 = vpop.f32.mrf.mxu1 }
 0x2b5   : > { %2341 = vst [vmem:[%s3210_s8 + $0x18] sm:$0xff] %v2277_v8   ;;  %2349 = vst [vmem:[%s3210_s8 + $0x58] sm:$0xff] %v2317_v9  }
 0x2b6   : > { %v1710_v12 = vpop.f32.mrf.mxu0  ;;  %v1790_v13 = vpop.f32.mrf.mxu1 }
 0x2b7   : > { %v2282_v14 = vpack.c.bf16 %v2672_v10, %v1710_v12  ;;  %v2322_v16 = vpack.c.bf16 %v2696_v11, %v1790_v13 }
 0x2b8   : > { %v2675_v17 = vpop.f32.mrf.mxu0  ;;  %v2699_v18 = vpop.f32.mrf.mxu1 }
 0x2b9   : > { %2342 = vst [vmem:[%s3210_s8 + $0x20] sm:$0xff] %v2282_v14   ;;  %2350 = vst [vmem:[%s3210_s8 + $0x60] sm:$0xff] %v2322_v16  }
 0x2ba   : > { %v1720_v19 = vpop.f32.mrf.mxu0  ;;  %v1800_v20 = vpop.f32.mrf.mxu1 }
 0x2bb   : > { %v2287_v21 = vpack.c.bf16 %v2675_v17, %v1720_v19  ;;  %v2327_v22 = vpack.c.bf16 %v2699_v18, %v1800_v20 }
 0x2bc   : > { %v2678_v23 = vpop.f32.mrf.mxu0  ;;  %v2702_v24 = vpop.f32.mrf.mxu1 }
 0x2bd   : > { %2343 = vst [vmem:[%s3210_s8 + $0x28] sm:$0xff] %v2287_v21   ;;  %2351 = vst [vmem:[%s3210_s8 + $0x68] sm:$0xff] %v2327_v22  }
 0x2be   : > { %v1730_v25 = vpop.f32.mrf.mxu0  ;;  %v1810_v26 = vpop.f32.mrf.mxu1 }
 0x2bf   : > { %v2292_v27 = vpack.c.bf16 %v2678_v23, %v1730_v25  ;;  %v2332_v28 = vpack.c.bf16 %v2702_v24, %v1810_v26 }
 0x2c0   : > { %v2681_v29 = vpop.f32.mrf.mxu0  ;;  %v2705_v30 = vpop.f32.mrf.mxu1 }
 0x2c1   : > { %2344 = vst [vmem:[%s3210_s8 + $0x30] sm:$0xff] %v2292_v27   ;;  %2352 = vst [vmem:[%s3210_s8 + $0x70] sm:$0xff] %v2332_v28  }
 0x2c2   : > { %v1740_v31 = vpop.f32.mrf.mxu0  ;;  %v1820_v32 = vpop.f32.mrf.mxu1 }
 0x2c3   : > { %v2297_v33 = vpack.c.bf16 %v2681_v29, %v1740_v31  ;;  %v2337_v34 = vpack.c.bf16 %v2705_v30, %v1820_v32 }
 0x2c5   : > { %2345 = vst [vmem:[%s3210_s8 + $0x38] sm:$0xff] %v2297_v33   ;;  %2353 = vst [vmem:[%s3210_s8 + $0x78] sm:$0xff] %v2337_v34  }
 0x2c6 PF: > { %s14_s21 = sadd.s32 1, %s2977_s21   ;;  %s3439_s15 = smov %s2957_s16 }
 0x2c7   : > { %p11_p0 = scmp.ge.s32.totalorder %s14_s21, 10   ;;  %s3440_s16 = smov %s3056_s28 }
 0x2c8   : > { %s3441_s17 = smov %s2969_s19  ;;  %s3442_s18 = smov %s2973_s20 }
 0x2c9   : > { %s3443_s19 = smov %s3446_s22  ;;  %s3444_s20 = smov %s3450_s23 }
 0x2ca   :  { %13 = sbr.rel (!%p11_p0) target bundleno = 4 (0x4), region = 105 }

// kernel: gcn_forward.5
= control target key start
LH: loop header
LB: loop body
LE: loop exit
PB: predicated region body
PF: predicated region fallthrough
CT: control target
= control target key end

     0   :  { %s2768_s12 = smov 0   ;;  %s2770_s13 = smov 0   ;;  %s3552_s0 = inlined_call_operand.vmem [shape: bf16[1024,1024], index: 0, kind: input, shape index: {}]   ;;  %s3553_s1 = inlined_call_operand.vmem [shape: bf16[1024,128], index: 1, kind: input, shape index: {}]   ;;  %s3554_s2 = inlined_call_operand.vmem [shape: f32[1,128], index: 2, kind: input, shape index: {}]   ;;  %s3555_s3 = inlined_call_operand.vmem [shape: f32[1024,128], index: 3, kind: output, shape index: {}]  }
   0x1   :  { %s2772_s14 = smov 0   ;;  %s2774_s15 = smov 0  }
   0x2   :  { %s2776_s16 = smov 0   ;;  %s2778_s17 = smov 0  }
   0x3   :  { %s2780_s18 = smov 0  }
   0x4 LB: > { %s22_s19 = sadd.s32 1, %s2737_s16  ;;  %s25_s20 = sadd.s32 1, %s2741_s17  ;;  %s2745_s18 = sphi %s2780_s18, %s13_s18   ;;  %s2741_s17 = sphi %s2778_s17, %s3561_s17   ;;  %s2737_s16 = sphi %s2776_s16, %s3560_s16   ;;  %s2733_s15 = sphi %s2774_s15, %s3559_s15   ;;  %s2729_s14 = sphi %s2772_s14, %s3558_s14   ;;  %s2725_s13 = sphi %s2770_s13, %s3557_s13   ;;  %s2721_s12 = sphi %s2768_s12, %s3556_s12  }
   0x5   : > { %p23_p0 = scmp.ge.s32.totalorder %s22_s19, 2  ;;  %p41_p1 = scmp.ne.s32.totalorder %s2725_s13, %s2721_s12 }
   0x6   : > { %p42_p2 = scmp.eq.s32.totalorder %s2745_s18, 0  ;;  %s34_s24 = sadd.s32 1, %s2725_s13 }
   0x7   : > { %s3563_s19 = smov (%p23_p0, %s22_s19), 0  ;;  %s3565_s20 = smov (!%p23_p0, %s25_s20), %s2741_s17 }
   0x8   : > { %p43_p3 = por %p42_p2, %p41_p1  ;;  %p27_p4 = scmp.ge.s32.totalorder %s3565_s20, 4 }
   0x9   : > { %s30_s21 = ssub.s32 %s2737_s16, %s3563_s19  ;;  %p2040_p6 = scmp.ge.s32.totalorder %s2745_s18, 8 }
   0xa   : > { %s3567_s20 = smov (%p27_p4, %s3565_s20), 0 }
   0xb   : > { %s29_s22 = ssub.s32 %s2741_s17, %s3567_s20  ;;  %143 = sbr.rel (%p2040_p6) target bundleno = 55 (0x37), region = 20 }
   0xc   : > { %s31_s23 = sor.u32 %s30_s21, %s29_s22 }
   0xd   : > { %p32_p5 = scmp.eq.s32.totalorder %s31_s23, 0 }
   0xf   : > { %s2819_s25 = scalar_select %p32_p5, %s2725_s13, %s34_s24  }
  0x10   : > { %146 = sbr.rel (!%p43_p3) target bundleno = 55 (0x37), region = 24  ;;  %s148_s26 = sand.u32 (%p43_p3), 1, %s2725_s13  }
  0x11   : > { %s2043_s27 = sshll.u32 (%p43_p3), %s2737_s16, 2  ;;  %s2041_s28 = sshll.u32 (%p43_p3), %s148_s26, 9 }
  0x12   : > { %s2153_s29 = sshll.u32 (%p43_p3), %s2741_s17, 8  ;;  %s2833_s8 = scalar_lea.vmem (%p43_p3), [#allocation3], %s2041_s28 }
  0x13   : > { %s154_s30 = sadd.s32 (%p43_p3), %s2153_s29, %s2043_s27 }
  0x14   : > { %s2045_s4 = sshll.u32 (%p43_p3), %s154_s30, 2 }
  0x15   : > { %s2828_s7 = scalar_lea.vmem %s3552_s0, %s2045_s4 }
  0x16   : > { %v169_v0 = vld [vmem:[%s2828_s7] sm:$0xff]  ;;  %v171_v1 = vld [vmem:[%s2828_s7 + $0x8] sm:$0xff] }
  0x17   : > { %v173_v2 = vld [vmem:[%s2828_s7 + $0x20] sm:$0xff]  ;;  %170 = vst [vmem:[%s2833_s8] sm:$0xff] %v169_v0  ;;  %172 = vst [vmem:[%s2833_s8 + $0x8] sm:$0xff] %v171_v1  ;;  %v175_v3 = vld [vmem:[%s2828_s7 + $0x28] sm:$0xff] }
  0x18   : > { %174 = vst [vmem:[%s2833_s8 + $0x10] sm:$0xff] %v173_v2  ;;  %v177_v4 = vld [vmem:[%s2828_s7 + $0x40] sm:$0xff]  ;;  %v179_v5 = vld [vmem:[%s2828_s7 + $0x48] sm:$0xff]  ;;  %176 = vst [vmem:[%s2833_s8 + $0x18] sm:$0xff] %v175_v3 }
  0x19   : > { %178 = vst [vmem:[%s2833_s8 + $0x20] sm:$0xff] %v177_v4  ;;  %180 = vst [vmem:[%s2833_s8 + $0x28] sm:$0xff] %v179_v5  ;;  %v181_v6 = vld [vmem:[%s2828_s7 + $0x60] sm:$0xff]  ;;  %v183_v7 = vld [vmem:[%s2828_s7 + $0x68] sm:$0xff] }
  0x1a   : > { %v185_v8 = vld [vmem:[%s2828_s7 + $0x80] sm:$0xff]  ;;  %182 = vst [vmem:[%s2833_s8 + $0x30] sm:$0xff] %v181_v6  ;;  %184 = vst [vmem:[%s2833_s8 + $0x38] sm:$0xff] %v183_v7  ;;  %v187_v9 = vld [vmem:[%s2828_s7 + $0x88] sm:$0xff] }
  0x1b   : > { %186 = vst [vmem:[%s2833_s8 + $0x40] sm:$0xff] %v185_v8  ;;  %v189_v10 = vld [vmem:[%s2828_s7 + $0xa0] sm:$0xff]  ;;  %v191_v11 = vld [vmem:[%s2828_s7 + $0xa8] sm:$0xff]  ;;  %188 = vst [vmem:[%s2833_s8 + $0x48] sm:$0xff] %v187_v9 }
  0x1c   : > { %190 = vst [vmem:[%s2833_s8 + $0x50] sm:$0xff] %v189_v10  ;;  %192 = vst [vmem:[%s2833_s8 + $0x58] sm:$0xff] %v191_v11  ;;  %v193_v12 = vld [vmem:[%s2828_s7 + $0xc0] sm:$0xff]  ;;  %v195_v13 = vld [vmem:[%s2828_s7 + $0xc8] sm:$0xff] }
  0x1d   : > { %v197_v14 = vld [vmem:[%s2828_s7 + $0xe0] sm:$0xff]  ;;  %194 = vst [vmem:[%s2833_s8 + $0x60] sm:$0xff] %v193_v12  ;;  %196 = vst [vmem:[%s2833_s8 + $0x68] sm:$0xff] %v195_v13  ;;  %v199_v15 = vld [vmem:[%s2828_s7 + $0xe8] sm:$0xff] }
  0x1e   : > { %198 = vst [vmem:[%s2833_s8 + $0x70] sm:$0xff] %v197_v14  ;;  %v201_v16 = vld [vmem:[%s2828_s7 + $0x100] sm:$0xff]  ;;  %v203_v17 = vld [vmem:[%s2828_s7 + $0x108] sm:$0xff]  ;;  %200 = vst [vmem:[%s2833_s8 + $0x78] sm:$0xff] %v199_v15 }
  0x1f   : > { %202 = vst [vmem:[%s2833_s8 + $0x80] sm:$0xff] %v201_v16  ;;  %204 = vst [vmem:[%s2833_s8 + $0x88] sm:$0xff] %v203_v17  ;;  %v205_v18 = vld [vmem:[%s2828_s7 + $0x120] sm:$0xff]  ;;  %v207_v19 = vld [vmem:[%s2828_s7 + $0x128] sm:$0xff] }
  0x20   : > { %v209_v20 = vld [vmem:[%s2828_s7 + $0x140] sm:$0xff]  ;;  %206 = vst [vmem:[%s2833_s8 + $0x90] sm:$0xff] %v205_v18  ;;  %208 = vst [vmem:[%s2833_s8 + $0x98] sm:$0xff] %v207_v19  ;;  %v211_v21 = vld [vmem:[%s2828_s7 + $0x148] sm:$0xff] }
  0x21   : > { %210 = vst [vmem:[%s2833_s8 + $0xa0] sm:$0xff] %v209_v20  ;;  %v213_v22 = vld [vmem:[%s2828_s7 + $0x160] sm:$0xff]  ;;  %v215_v23 = vld [vmem:[%s2828_s7 + $0x168] sm:$0xff]  ;;  %212 = vst [vmem:[%s2833_s8 + $0xa8] sm:$0xff] %v211_v21 }
  0x22   : > { %214 = vst [vmem:[%s2833_s8 + $0xb0] sm:$0xff] %v213_v22  ;;  %216 = vst [vmem:[%s2833_s8 + $0xb8] sm:$0xff] %v215_v23  ;;  %v217_v24 = vld [vmem:[%s2828_s7 + $0x180] sm:$0xff]  ;;  %v219_v25 = vld [vmem:[%s2828_s7 + $0x188] sm:$0xff] }
  0x23   : > { %v221_v26 = vld [vmem:[%s2828_s7 + $0x1a0] sm:$0xff]  ;;  %218 = vst [vmem:[%s2833_s8 + $0xc0] sm:$0xff] %v217_v24  ;;  %220 = vst [vmem:[%s2833_s8 + $0xc8] sm:$0xff] %v219_v25  ;;  %v223_v27 = vld [vmem:[%s2828_s7 + $0x1a8] sm:$0xff] }
  0x24   : > { %222 = vst [vmem:[%s2833_s8 + $0xd0] sm:$0xff] %v221_v26  ;;  %v225_v28 = vld [vmem:[%s2828_s7 + $0x1c0] sm:$0xff]  ;;  %v227_v29 = vld [vmem:[%s2828_s7 + $0x1c8] sm:$0xff]  ;;  %224 = vst [vmem:[%s2833_s8 + $0xd8] sm:$0xff] %v223_v27 }
  0x25   : > { %226 = vst [vmem:[%s2833_s8 + $0xe0] sm:$0xff] %v225_v28  ;;  %228 = vst [vmem:[%s2833_s8 + $0xe8] sm:$0xff] %v227_v29  ;;  %v229_v30 = vld [vmem:[%s2828_s7 + $0x1e0] sm:$0xff]  ;;  %v231_v31 = vld [vmem:[%s2828_s7 + $0x1e8] sm:$0xff] }
  0x26   : > { %v233_v32 = vld [vmem:[%s2828_s7 + $0x200] sm:$0xff]  ;;  %230 = vst [vmem:[%s2833_s8 + $0xf0] sm:$0xff] %v229_v30  ;;  %232 = vst [vmem:[%s2833_s8 + $0xf8] sm:$0xff] %v231_v31  ;;  %v235_v33 = vld [vmem:[%s2828_s7 + $0x208] sm:$0xff] }
  0x27   : > { %234 = vst [vmem:[%s2833_s8 + $0x100] sm:$0xff] %v233_v32  ;;  %v237_v34 = vld [vmem:[%s2828_s7 + $0x220] sm:$0xff]  ;;  %v239_v35 = vld [vmem:[%s2828_s7 + $0x228] sm:$0xff]  ;;  %236 = vst [vmem:[%s2833_s8 + $0x108] sm:$0xff] %v235_v33 }
  0x28   : > { %238 = vst [vmem:[%s2833_s8 + $0x110] sm:$0xff] %v237_v34  ;;  %240 = vst [vmem:[%s2833_s8 + $0x118] sm:$0xff] %v239_v35  ;;  %v241_v36 = vld [vmem:[%s2828_s7 + $0x240] sm:$0xff]  ;;  %v243_v37 = vld [vmem:[%s2828_s7 + $0x248] sm:$0xff] }
  0x29   : > { %v245_v38 = vld [vmem:[%s2828_s7 + $0x260] sm:$0xff]  ;;  %242 = vst [vmem:[%s2833_s8 + $0x120] sm:$0xff] %v241_v36  ;;  %244 = vst [vmem:[%s2833_s8 + $0x128] sm:$0xff] %v243_v37  ;;  %v247_v39 = vld [vmem:[%s2828_s7 + $0x268] sm:$0xff] }
  0x2a   : > { %246 = vst [vmem:[%s2833_s8 + $0x130] sm:$0xff] %v245_v38  ;;  %v249_v40 = vld [vmem:[%s2828_s7 + $0x280] sm:$0xff]  ;;  %v251_v41 = vld [vmem:[%s2828_s7 + $0x288] sm:$0xff]  ;;  %248 = vst [vmem:[%s2833_s8 + $0x138] sm:$0xff] %v247_v39 }
  0x2b   : > { %250 = vst [vmem:[%s2833_s8 + $0x140] sm:$0xff] %v249_v40  ;;  %252 = vst [vmem:[%s2833_s8 + $0x148] sm:$0xff] %v251_v41  ;;  %v253_v42 = vld [vmem:[%s2828_s7 + $0x2a0] sm:$0xff]  ;;  %v255_v43 = vld [vmem:[%s2828_s7 + $0x2a8] sm:$0xff] }
  0x2c   : > { %v257_v44 = vld [vmem:[%s2828_s7 + $0x2c0] sm:$0xff]  ;;  %254 = vst [vmem:[%s2833_s8 + $0x150] sm:$0xff] %v253_v42  ;;  %256 = vst [vmem:[%s2833_s8 + $0x158] sm:$0xff] %v255_v43  ;;  %v259_v45 = vld [vmem:[%s2828_s7 + $0x2c8] sm:$0xff] }
  0x2d   : > { %258 = vst [vmem:[%s2833_s8 + $0x160] sm:$0xff] %v257_v44  ;;  %v261_v46 = vld [vmem:[%s2828_s7 + $0x2e0] sm:$0xff]  ;;  %v263_v47 = vld [vmem:[%s2828_s7 + $0x2e8] sm:$0xff]  ;;  %260 = vst [vmem:[%s2833_s8 + $0x168] sm:$0xff] %v259_v45 }
  0x2e   : > { %262 = vst [vmem:[%s2833_s8 + $0x170] sm:$0xff] %v261_v46  ;;  %264 = vst [vmem:[%s2833_s8 + $0x178] sm:$0xff] %v263_v47  ;;  %v265_v48 = vld [vmem:[%s2828_s7 + $0x300] sm:$0xff]  ;;  %v267_v49 = vld [vmem:[%s2828_s7 + $0x308] sm:$0xff] }
  0x2f   : > { %v269_v50 = vld [vmem:[%s2828_s7 + $0x320] sm:$0xff]  ;;  %266 = vst [vmem:[%s2833_s8 + $0x180] sm:$0xff] %v265_v48  ;;  %268 = vst [vmem:[%s2833_s8 + $0x188] sm:$0xff] %v267_v49  ;;  %v271_v51 = vld [vmem:[%s2828_s7 + $0x328] sm:$0xff] }
  0x30   : > { %270 = vst [vmem:[%s2833_s8 + $0x190] sm:$0xff] %v269_v50  ;;  %v273_v52 = vld [vmem:[%s2828_s7 + $0x340] sm:$0xff]  ;;  %v275_v53 = vld [vmem:[%s2828_s7 + $0x348] sm:$0xff]  ;;  %272 = vst [vmem:[%s2833_s8 + $0x198] sm:$0xff] %v271_v51 }
  0x31   : > { %274 = vst [vmem:[%s2833_s8 + $0x1a0] sm:$0xff] %v273_v52  ;;  %276 = vst [vmem:[%s2833_s8 + $0x1a8] sm:$0xff] %v275_v53  ;;  %v277_v54 = vld [vmem:[%s2828_s7 + $0x360] sm:$0xff]  ;;  %v279_v55 = vld [vmem:[%s2828_s7 + $0x368] sm:$0xff] }
  0x32   : > { %v281_v56 = vld [vmem:[%s2828_s7 + $0x380] sm:$0xff]  ;;  %278 = vst [vmem:[%s2833_s8 + $0x1b0] sm:$0xff] %v277_v54  ;;  %280 = vst [vmem:[%s2833_s8 + $0x1b8] sm:$0xff] %v279_v55  ;;  %v283_v57 = vld [vmem:[%s2828_s7 + $0x388] sm:$0xff] }
  0x33   : > { %282 = vst [vmem:[%s2833_s8 + $0x1c0] sm:$0xff] %v281_v56  ;;  %v285_v58 = vld [vmem:[%s2828_s7 + $0x3a0] sm:$0xff]  ;;  %v287_v59 = vld [vmem:[%s2828_s7 + $0x3a8] sm:$0xff]  ;;  %284 = vst [vmem:[%s2833_s8 + $0x1c8] sm:$0xff] %v283_v57 }
  0x34   : > { %286 = vst [vmem:[%s2833_s8 + $0x1d0] sm:$0xff] %v285_v58  ;;  %288 = vst [vmem:[%s2833_s8 + $0x1d8] sm:$0xff] %v287_v59  ;;  %v289_v60 = vld [vmem:[%s2828_s7 + $0x3c0] sm:$0xff]  ;;  %v291_v61 = vld [vmem:[%s2828_s7 + $0x3c8] sm:$0xff] }
  0x35   : > { %v293_v62 = vld [vmem:[%s2828_s7 + $0x3e0] sm:$0xff]  ;;  %290 = vst [vmem:[%s2833_s8 + $0x1e0] sm:$0xff] %v289_v60  ;;  %292 = vst [vmem:[%s2833_s8 + $0x1e8] sm:$0xff] %v291_v61  ;;  %v295_v63 = vld [vmem:[%s2828_s7 + $0x3e8] sm:$0xff] }
  0x36   : > { %294 = vst [vmem:[%s2833_s8 + $0x1f0] sm:$0xff] %v293_v62  ;;  %296 = vst [vmem:[%s2833_s8 + $0x1f8] sm:$0xff] %v295_v63 }
  0x37 PF: > { %p2046_p7 = scmp.ge.s32.totalorder %s2745_s18, 1  ;;  %p310_p8 = scmp.lt.s32.totalorder %s2745_s18, 9 }
  0x39   : > { %p311_p9 = pnand %p2046_p7, %p310_p8 }
  0x3a   : > { %s317_s9 = sand.u32 (!%p311_p9), 1, %s2721_s12   ;;  %s2048_s10 = sshll.u32 (!%p311_p9), %s2729_s14, 6 }
  0x3b   : > { %314 = sbr.rel (%p311_p9) target bundleno = 834 (0x342), region = 51  ;;  %s2047_s11 = sshll.u32 (!%p311_p9), %s317_s9, 9 }
  0x3c   : > { %p348_p10 = scmp.lt.s32.totalorder (!%p311_p9), %s2048_s10, 127  ;;  %s2050_s21 = sshll.u32 (!%p311_p9), %s2733_s15, 5 }
  0x3d   : > { %p354_p11 = scmp.lt.s32.totalorder (!%p311_p9), %s2050_s21, 127  ;;  %s2975_s12 = scalar_lea.vmem (!%p311_p9), [#allocation3], %s2047_s11 }
  0x3e   : > { %p2052_p12 = scmp.ne.s32.totalorder (!%p311_p9), %s2729_s14, 0 }
  0x40   : > { %s3569_s10 = smov (!%p348_p10, %s2048_s10), 127  ;;  %s3571_s21 = smov (!%p354_p11, %s2050_s21), 127 }
  0x41   : > { %s2049_s22 = sshll.u32 %s3569_s10, 2  ;;  %s2051_s27 = sshll.u32 %s3571_s21, 3 }
  0x42   : > { %s2968_s26 = scalar_lea.vmem %s3553_s1, %s2049_s22  ;;  %s2973_s30 = scalar_lea.vmem %s3555_s3, %s2051_s27 }
  0x43   : > { %363 = sbr.rel (%p2052_p12) target bundleno = 89 (0x59), region = 59 }
  0x48   : > { %v2747_v0 = vmov 0.0  }
  0x49   : > { %364 = vst [vmem:[#allocation2 + $0xb0] sm:$0xff] %v2747_v0  ;;  %365 = vst [vmem:[#allocation2] sm:$0xff] %v2747_v0 }
  0x4a   : > { %366 = vst [vmem:[#allocation2 + $0xd8] sm:$0xff] %v2747_v0  ;;  %367 = vst [vmem:[#allocation2 + $0x18] sm:$0xff] %v2747_v0 }
  0x4b   : > { %368 = vst [vmem:[#allocation2 + $0x50] sm:$0xff] %v2747_v0  ;;  %369 = vst [vmem:[#allocation2 + $0x68] sm:$0xff] %v2747_v0 }
  0x4c   : > { %370 = vst [vmem:[#allocation2 + $0x30] sm:$0xff] %v2747_v0  ;;  %371 = vst [vmem:[#allocation2 + $0x48] sm:$0xff] %v2747_v0 }
  0x4d   : > { %372 = vst [vmem:[#allocation2 + $0x80] sm:$0xff] %v2747_v0  ;;  %373 = vst [vmem:[#allocation2 + $0x88] sm:$0xff] %v2747_v0 }
  0x4e   : > { %374 = vst [vmem:[#allocation2 + $0xe8] sm:$0xff] %v2747_v0  ;;  %375 = vst [vmem:[#allocation2 + $0xb8] sm:$0xff] %v2747_v0 }
  0x4f   : > { %376 = vst [vmem:[#allocation2 + $0x60] sm:$0xff] %v2747_v0  ;;  %377 = vst [vmem:[#allocation2 + $0xf0] sm:$0xff] %v2747_v0 }
  0x50   : > { %378 = vst [vmem:[#allocation2 + $0x8] sm:$0xff] %v2747_v0  ;;  %379 = vst [vmem:[#allocation2 + $0x78] sm:$0xff] %v2747_v0 }
  0x51   : > { %380 = vst [vmem:[#allocation2 + $0x38] sm:$0xff] %v2747_v0  ;;  %381 = vst [vmem:[#allocation2 + $0x58] sm:$0xff] %v2747_v0 }
  0x52   : > { %382 = vst [vmem:[#allocation2 + $0x40] sm:$0xff] %v2747_v0  ;;  %383 = vst [vmem:[#allocation2 + $0xc8] sm:$0xff] %v2747_v0 }
  0x53   : > { %384 = vst [vmem:[#allocation2 + $0xe0] sm:$0xff] %v2747_v0  ;;  %385 = vst [vmem:[#allocation2 + $0x90] sm:$0xff] %v2747_v0 }
  0x54   : > { %386 = vst [vmem:[#allocation2 + $0x70] sm:$0xff] %v2747_v0  ;;  %387 = vst [vmem:[#allocation2 + $0xc0] sm:$0xff] %v2747_v0 }
  0x55   : > { %388 = vst [vmem:[#allocation2 + $0xa8] sm:$0xff] %v2747_v0  ;;  %389 = vst [vmem:[#allocation2 + $0xd0] sm:$0xff] %v2747_v0 }
  0x56   : > { %390 = vst [vmem:[#allocation2 + $0x10] sm:$0xff] %v2747_v0  ;;  %391 = vst [vmem:[#allocation2 + $0x28] sm:$0xff] %v2747_v0 }
  0x57   : > { %392 = vst [vmem:[#allocation2 + $0xa0] sm:$0xff] %v2747_v0  ;;  %393 = vst [vmem:[#allocation2 + $0xf8] sm:$0xff] %v2747_v0 }
  0x58   : > { %394 = vst [vmem:[#allocation2 + $0x20] sm:$0xff] %v2747_v0  ;;  %395 = vst [vmem:[#allocation2 + $0x98] sm:$0xff] %v2747_v0 }
  0x59 PF: > { %v2435_v1 = vld [vmem:[%s2968_s26 + $0x78] sm:$0xff]   ;;  %v2439_v5 = vld [vmem:[%s2968_s26 + $0x70] sm:$0xff]   ;;  %v2443_v9 = vld [vmem:[%s2968_s26 + $0x68] sm:$0xff]   ;;  %p2149_p13 = scmp.ne.s32.totalorder %s2729_s14, 1 }
  0x5a   : > { %v2436_v2 = vld [vmem:[%s2968_s26 + $0xf8] sm:$0xff]   ;;  %2154 = vmatprep.subr.bf16.mxu0 %v2435_v1  ;;  %v2440_v6 = vld [vmem:[%s2968_s26 + $0xf0] sm:$0xff]   ;;  %v2444_v10 = vld [vmem:[%s2968_s26 + $0xe8] sm:$0xff]  }
  0x5b   : > { %v2437_v3 = vld [vmem:[%s2968_s26 + $0x38] sm:$0xff]   ;;  %2266 = vmatprep.subr.bf16.mxu1 %v2436_v2  ;;  %v2441_v7 = vld [vmem:[%s2968_s26 + $0x30] sm:$0xff]   ;;  %v2445_v11 = vld [vmem:[%s2968_s26 + $0x28] sm:$0xff]  }
  0x5c   : > { %v2438_v4 = vld [vmem:[%s2968_s26 + $0xb8] sm:$0xff]   ;;  %2155 = vmatpush3.bf16.msra.mxu0 %v2437_v3  ;;  %v2442_v8 = vld [vmem:[%s2968_s26 + $0xb0] sm:$0xff]   ;;  %v2446_v12 = vld [vmem:[%s2968_s26 + $0xa8] sm:$0xff]  }
  0x5d   : > { %2267 = vmatpush3.bf16.msra.mxu1 %v2438_v4  ;;  %2156 = vmatprep.subr.bf16.mxu0 %v2439_v5  ;;  %v2447_v13 = vld [vmem:[%s2968_s26 + $0x60] sm:$0xff]   ;;  %v2451_v17 = vld [vmem:[%s2968_s26 + $0x58] sm:$0xff]   ;;  %v2455_v21 = vld [vmem:[%s2968_s26 + $0x50] sm:$0xff]  }
  0x5e   : > { %2268 = vmatprep.subr.bf16.mxu1 %v2440_v6  ;;  %v2448_v14 = vld [vmem:[%s2968_s26 + $0xe0] sm:$0xff]   ;;  %v2452_v18 = vld [vmem:[%s2968_s26 + $0xd8] sm:$0xff]   ;;  %v2456_v22 = vld [vmem:[%s2968_s26 + $0xd0] sm:$0xff]  }
  0x5f   : > { %v2449_v15 = vld [vmem:[%s2968_s26 + $0x20] sm:$0xff]   ;;  %v2453_v19 = vld [vmem:[%s2968_s26 + $0x18] sm:$0xff]   ;;  %v2457_v23 = vld [vmem:[%s2968_s26 + $0x10] sm:$0xff]  }
  0x60   : > { %2157 = vmatpush3.bf16.msra.mxu0 %v2441_v7  ;;  %v2450_v16 = vld [vmem:[%s2968_s26 + $0xa0] sm:$0xff]   ;;  %v2454_v20 = vld [vmem:[%s2968_s26 + $0x98] sm:$0xff]   ;;  %v2458_v24 = vld [vmem:[%s2968_s26 + $0x90] sm:$0xff]  }
  0x61   : > { %2269 = vmatpush3.bf16.msra.mxu1 %v2442_v8  ;;  %2158 = vmatprep.subr.bf16.mxu0 %v2443_v9  ;;  %v2459_v25 = vld [vmem:[%s2968_s26 + $0x48] sm:$0xff]   ;;  %v2463_v29 = vld [vmem:[%s2968_s26 + $0x40] sm:$0xff]  }
  0x62   : > { %2270 = vmatprep.subr.bf16.mxu1 %v2444_v10  ;;  %v2460_v26 = vld [vmem:[%s2968_s26 + $0xc8] sm:$0xff]   ;;  %v2464_v30 = vld [vmem:[%s2968_s26 + $0xc0] sm:$0xff]  }
  0x63   : > { %v2461_v27 = vld [vmem:[%s2968_s26 + $0x8] sm:$0xff]   ;;  %v2465_v31 = vld [vmem:[%s2968_s26] sm:$0xff]  }
  0x64   : > { %2159 = vmatpush3.bf16.msra.mxu0 %v2445_v11  ;;  %v2462_v28 = vld [vmem:[%s2968_s26 + $0x88] sm:$0xff]   ;;  %v2466_v32 = vld [vmem:[%s2968_s26 + $0x80] sm:$0xff]  }
  0x65   : > { %2271 = vmatpush3.bf16.msra.mxu1 %v2446_v12  ;;  %2160 = vmatprep.subr.bf16.mxu0 %v2447_v13  ;;  %v2467_v33 = vld [vmem:[%s2975_s12] ss:$16 sps:$4 sm:$0xff]   ;;  %v2469_v34 = vld [vmem:[%s2975_s12 + $0x4] ss:$16 sps:$4 sm:$0xff]   ;;  %v2470_v35 = vld [vmem:[%s2975_s12 + $0x8] ss:$16 sps:$4 sm:$0xff]  }
  0x66   : > { %2272 = vmatprep.subr.bf16.mxu1 %v2448_v14  ;;  %v2472_v36 = vld [vmem:[%s2975_s12 + $0xc] ss:$16 sps:$4 sm:$0xff]   ;;  %1100 = vmatprep.mubr.bf16.mxu0 %v2469_v34  ;;  %v2473_v37 = vld [vmem:[%s2975_s12 + $0x24] ss:$16 sps:$4 sm:$0xff]   ;;  %v2477_v39 = vld [vmem:[%s2975_s12 + $0x20] ss:$16 sps:$4 sm:$0xff]  }
  0x67   : > { %1261 = vmatprep.mubr.bf16.mxu1 %v2472_v36  ;;  %v2475_v38 = vld [vmem:[%s2975_s12 + $0x2c] ss:$16 sps:$4 sm:$0xff]   ;;  %v2478_v40 = vld [vmem:[%s2975_s12 + $0x28] ss:$16 sps:$4 sm:$0xff]   ;;  %v2479_v41 = vld [vmem:[%s2975_s12 + $0x44] ss:$16 sps:$4 sm:$0xff]  }
  0x68   : > { %2161 = vmatpush3.bf16.msra.mxu0 %v2449_v15  ;;  %v2481_v42 = vld [vmem:[%s2975_s12 + $0x4c] ss:$16 sps:$4 sm:$0xff]   ;;  %v2483_v43 = vld [vmem:[%s2975_s12 + $0x40] ss:$16 sps:$4 sm:$0xff]   ;;  %v2484_v44 = vld [vmem:[%s2975_s12 + $0x48] ss:$16 sps:$4 sm:$0xff]  }
  0x69   : > { %2273 = vmatpush3.bf16.msra.mxu1 %v2450_v16  ;;  %2162 = vmatprep.subr.bf16.mxu0 %v2451_v17  ;;  %v2485_v45 = vld [vmem:[%s2975_s12 + $0x64] ss:$16 sps:$4 sm:$0xff]   ;;  %v2487_v46 = vld [vmem:[%s2975_s12 + $0x6c] ss:$16 sps:$4 sm:$0xff]   ;;  %v2489_v47 = vld [vmem:[%s2975_s12 + $0x60] ss:$16 sps:$4 sm:$0xff]  }
  0x6a   : > { %2274 = vmatprep.subr.bf16.mxu1 %v2452_v18  ;;  %v2490_v48 = vld [vmem:[%s2975_s12 + $0x68] ss:$16 sps:$4 sm:$0xff]   ;;  %v2491_v49 = vld [vmem:[%s2975_s12 + $0x84] ss:$16 sps:$4 sm:$0xff]   ;;  %v2493_v50 = vld [vmem:[%s2975_s12 + $0x8c] ss:$16 sps:$4 sm:$0xff]  }
  0x6b   : > { %v2495_v51 = vld [vmem:[%s2975_s12 + $0x80] ss:$16 sps:$4 sm:$0xff]   ;;  %v2496_v52 = vld [vmem:[%s2975_s12 + $0x88] ss:$16 sps:$4 sm:$0xff]   ;;  %v2497_v53 = vld [vmem:[%s2975_s12 + $0xa4] ss:$16 sps:$4 sm:$0xff]  }
  0x6c   : > { %2163 = vmatpush3.bf16.msra.mxu0 %v2453_v19  ;;  %v2499_v54 = vld [vmem:[%s2975_s12 + $0xac] ss:$16 sps:$4 sm:$0xff]   ;;  %v2501_v55 = vld [vmem:[%s2975_s12 + $0xa0] ss:$16 sps:$4 sm:$0xff]   ;;  %v2502_v56 = vld [vmem:[%s2975_s12 + $0xa8] ss:$16 sps:$4 sm:$0xff]  }
  0x6d   : > { %2275 = vmatpush3.bf16.msra.mxu1 %v2454_v20  ;;  %2164 = vmatprep.subr.bf16.mxu0 %v2455_v21  ;;  %v2503_v57 = vld [vmem:[%s2975_s12 + $0xc4] ss:$16 sps:$4 sm:$0xff]   ;;  %v2505_v58 = vld [vmem:[%s2975_s12 + $0xcc] ss:$16 sps:$4 sm:$0xff]   ;;  %v2507_v59 = vld [vmem:[%s2975_s12 + $0xc0] ss:$16 sps:$4 sm:$0xff]  }
  0x6e   : > { %2276 = vmatprep.subr.bf16.mxu1 %v2456_v22  ;;  %v2508_v60 = vld [vmem:[%s2975_s12 + $0xc8] ss:$16 sps:$4 sm:$0xff]   ;;  %v2509_v61 = vld [vmem:[%s2975_s12 + $0xe4] ss:$16 sps:$4 sm:$0xff]   ;;  %v2511_v62 = vld [vmem:[%s2975_s12 + $0xec] ss:$16 sps:$4 sm:$0xff]  }
  0x6f   : > { %v2513_v63 = vld [vmem:[%s2975_s12 + $0xe0] ss:$16 sps:$4 sm:$0xff]   ;;  %v2514_v0 = vld [vmem:[%s2975_s12 + $0xe8] ss:$16 sps:$4 sm:$0xff]   ;;  %v2515_v1 = vld [vmem:[%s2975_s12 + $0x104] ss:$16 sps:$4 sm:$0xff]  }
  0x70   : > { %2165 = vmatpush3.bf16.msra.mxu0 %v2457_v23  ;;  %v2517_v2 = vld [vmem:[%s2975_s12 + $0x10c] ss:$16 sps:$4 sm:$0xff]   ;;  %v2519_v3 = vld [vmem:[%s2975_s12 + $0x100] ss:$16 sps:$4 sm:$0xff]   ;;  %v2520_v4 = vld [vmem:[%s2975_s12 + $0x108] ss:$16 sps:$4 sm:$0xff]  }
  0x71   : > { %2277 = vmatpush3.bf16.msra.mxu1 %v2458_v24  ;;  %2166 = vmatprep.subr.bf16.mxu0 %v2459_v25  ;;  %v2521_v5 = vld [vmem:[%s2975_s12 + $0x124] ss:$16 sps:$4 sm:$0xff]   ;;  %v2523_v6 = vld [vmem:[%s2975_s12 + $0x12c] ss:$16 sps:$4 sm:$0xff]   ;;  %v2525_v7 = vld [vmem:[%s2975_s12 + $0x120] ss:$16 sps:$4 sm:$0xff]  }
  0x72   : > { %2278 = vmatprep.subr.bf16.mxu1 %v2460_v26  ;;  %v2526_v8 = vld [vmem:[%s2975_s12 + $0x128] ss:$16 sps:$4 sm:$0xff]   ;;  %v2527_v9 = vld [vmem:[%s2975_s12 + $0x144] ss:$16 sps:$4 sm:$0xff]   ;;  %v2529_v10 = vld [vmem:[%s2975_s12 + $0x14c] ss:$16 sps:$4 sm:$0xff]  }
  0x73   : > { %v2531_v11 = vld [vmem:[%s2975_s12 + $0x140] ss:$16 sps:$4 sm:$0xff]   ;;  %v2532_v12 = vld [vmem:[%s2975_s12 + $0x148] ss:$16 sps:$4 sm:$0xff]   ;;  %v2533_v13 = vld [vmem:[%s2975_s12 + $0x164] ss:$16 sps:$4 sm:$0xff]  }
  0x74   : > { %2167 = vmatpush3.bf16.msra.mxu0 %v2461_v27  ;;  %v2535_v14 = vld [vmem:[%s2975_s12 + $0x16c] ss:$16 sps:$4 sm:$0xff]   ;;  %v2537_v15 = vld [vmem:[%s2975_s12 + $0x160] ss:$16 sps:$4 sm:$0xff]   ;;  %v2538_v16 = vld [vmem:[%s2975_s12 + $0x168] ss:$16 sps:$4 sm:$0xff]  }
  0x75   : > { %2279 = vmatpush3.bf16.msra.mxu1 %v2462_v28  ;;  %2168 = vmatprep.subr.bf16.mxu0 %v2463_v29  ;;  %v2539_v17 = vld [vmem:[%s2975_s12 + $0x184] ss:$16 sps:$4 sm:$0xff]   ;;  %v2541_v18 = vld [vmem:[%s2975_s12 + $0x18c] ss:$16 sps:$4 sm:$0xff]   ;;  %v2543_v19 = vld [vmem:[%s2975_s12 + $0x180] ss:$16 sps:$4 sm:$0xff]  }
  0x76   : > { %2280 = vmatprep.subr.bf16.mxu1 %v2464_v30  ;;  %v2544_v20 = vld [vmem:[%s2975_s12 + $0x188] ss:$16 sps:$4 sm:$0xff]   ;;  %v2545_v21 = vld [vmem:[%s2975_s12 + $0x1a4] ss:$16 sps:$4 sm:$0xff]   ;;  %v2547_v22 = vld [vmem:[%s2975_s12 + $0x1ac] ss:$16 sps:$4 sm:$0xff]  }
  0x77   : > { %v2549_v23 = vld [vmem:[%s2975_s12 + $0x1a0] ss:$16 sps:$4 sm:$0xff]   ;;  %v2550_v24 = vld [vmem:[%s2975_s12 + $0x1a8] ss:$16 sps:$4 sm:$0xff]   ;;  %v2551_v25 = vld [vmem:[%s2975_s12 + $0x1c4] ss:$16 sps:$4 sm:$0xff]  }
  0x78   : > { %2169 = vmatpush3.bf16.msra.mxu0 %v2465_v31  ;;  %v2553_v26 = vld [vmem:[%s2975_s12 + $0x1cc] ss:$16 sps:$4 sm:$0xff]   ;;  %v2555_v27 = vld [vmem:[%s2975_s12 + $0x1c0] ss:$16 sps:$4 sm:$0xff]   ;;  %v2556_v28 = vld [vmem:[%s2975_s12 + $0x1c8] ss:$16 sps:$4 sm:$0xff]  }
  0x79   : > { %2281 = vmatpush3.bf16.msra.mxu1 %v2466_v32  ;;  %v2557_v29 = vld [vmem:[%s2975_s12 + $0x1e4] ss:$16 sps:$4 sm:$0xff]   ;;  %v2559_v30 = vld [vmem:[%s2975_s12 + $0x1ec] ss:$16 sps:$4 sm:$0xff]   ;;  %v2561_v31 = vld [vmem:[%s2975_s12 + $0x1e0] ss:$16 sps:$4 sm:$0xff]  }
  0x7a   : > { %v2562_v32 = vld [vmem:[%s2975_s12 + $0x1e8] ss:$16 sps:$4 sm:$0xff]  }
  0x7b   : > { %1101 = vmatmul.mubr.bf16.vlgmr.msra.gmra.mxu0 %v2467_v33 }
  0x7c   : > { %1262 = vmatmul.mubr.bf16.vlgmr.msra.gmra.mxu1 %v2470_v35  ;;  %1108 = vmatprep.mubr.bf16.mxu0 %v2473_v37 }
  0x7d   : > { %1269 = vmatprep.mubr.bf16.mxu1 %v2475_v38 }
  0x83   : > { %1109 = vmatmul.mubr.bf16.gmra.mxu0 %v2477_v39 }
  0x84   : > { %1270 = vmatmul.mubr.bf16.gmra.mxu1 %v2478_v40  ;;  %1116 = vmatprep.mubr.bf16.mxu0 %v2479_v41  ;;  %v396_v40 = vld [vmem:[#allocation2 + $0xb0] sm:$0xff] }
  0x85   : > { %1277 = vmatprep.mubr.bf16.mxu1 %v2481_v42 }
  0x8b   : > { %1117 = vmatmul.mubr.bf16.gmra.mxu0 %v2483_v43 }
  0x8c   : > { %1278 = vmatmul.mubr.bf16.gmra.mxu1 %v2484_v44  ;;  %1124 = vmatprep.mubr.bf16.mxu0 %v2485_v45 }
  0x8d   : > { %1285 = vmatprep.mubr.bf16.mxu1 %v2487_v46 }
  0x93   : > { %1125 = vmatmul.mubr.bf16.gmra.mxu0 %v2489_v47 }
  0x94   : > { %1286 = vmatmul.mubr.bf16.gmra.mxu1 %v2490_v48  ;;  %1132 = vmatprep.mubr.bf16.mxu0 %v2491_v49  ;;  %v397_v49 = vld [vmem:[#allocation2] sm:$0xff] }
  0x95   : > { %1293 = vmatprep.mubr.bf16.mxu1 %v2493_v50 }
  0x9b   : > { %1133 = vmatmul.mubr.bf16.gmra.mxu0 %v2495_v51 }
  0x9c   : > { %1294 = vmatmul.mubr.bf16.gmra.mxu1 %v2496_v52  ;;  %1140 = vmatprep.mubr.bf16.mxu0 %v2497_v53 }
  0x9d   : > { %1301 = vmatprep.mubr.bf16.mxu1 %v2499_v54 }
  0xa3   : > { %1141 = vmatmul.mubr.bf16.gmra.mxu0 %v2501_v55 }
  0xa4   : > { %1302 = vmatmul.mubr.bf16.gmra.mxu1 %v2502_v56  ;;  %1148 = vmatprep.mubr.bf16.mxu0 %v2503_v57 }
  0xa5   : > { %1309 = vmatprep.mubr.bf16.mxu1 %v2505_v58  ;;  %v398_v58 = vld [vmem:[#allocation2 + $0xd8] sm:$0xff] }
  0xab   : > { %1149 = vmatmul.mubr.bf16.gmra.mxu0 %v2507_v59 }
  0xac   : > { %1310 = vmatmul.mubr.bf16.gmra.mxu1 %v2508_v60  ;;  %1156 = vmatprep.mubr.bf16.mxu0 %v2509_v61 }
  0xad   : > { %1317 = vmatprep.mubr.bf16.mxu1 %v2511_v62 }
  0xb3   : > { %1157 = vmatmul.mubr.bf16.gmra.mxu0 %v2513_v63 }
  0xb4   : > { %1318 = vmatmul.mubr.bf16.gmra.mxu1 %v2514_v0  ;;  %1164 = vmatprep.mubr.bf16.mxu0 %v2515_v1 }
  0xb5   : > { %1325 = vmatprep.mubr.bf16.mxu1 %v2517_v2 }
  0xbb   : > { %1165 = vmatmul.mubr.bf16.gmra.mxu0 %v2519_v3  ;;  %v399_v3 = vld [vmem:[#allocation2 + $0x18] sm:$0xff] }
  0xbc   : > { %1326 = vmatmul.mubr.bf16.gmra.mxu1 %v2520_v4  ;;  %1172 = vmatprep.mubr.bf16.mxu0 %v2521_v5 }
  0xbd   : > { %1333 = vmatprep.mubr.bf16.mxu1 %v2523_v6 }
  0xc3   : > { %1173 = vmatmul.mubr.bf16.gmra.mxu0 %v2525_v7 }
  0xc4   : > { %1334 = vmatmul.mubr.bf16.gmra.mxu1 %v2526_v8  ;;  %1180 = vmatprep.mubr.bf16.mxu0 %v2527_v9 }
  0xc5   : > { %1341 = vmatprep.mubr.bf16.mxu1 %v2529_v10 }
  0xcb   : > { %1181 = vmatmul.mubr.bf16.gmra.mxu0 %v2531_v11 }
  0xcc   : > { %1342 = vmatmul.mubr.bf16.gmra.mxu1 %v2532_v12  ;;  %1188 = vmatprep.mubr.bf16.mxu0 %v2533_v13  ;;  %v400_v12 = vld [vmem:[#allocation2 + $0x50] sm:$0xff] }
  0xcd   : > { %1349 = vmatprep.mubr.bf16.mxu1 %v2535_v14 }
  0xd3   : > { %1189 = vmatmul.mubr.bf16.gmra.mxu0 %v2537_v15 }
  0xd4   : > { %1350 = vmatmul.mubr.bf16.gmra.mxu1 %v2538_v16  ;;  %1196 = vmatprep.mubr.bf16.mxu0 %v2539_v17 }
  0xd5   : > { %1357 = vmatprep.mubr.bf16.mxu1 %v2541_v18 }
  0xdb   : > { %1197 = vmatmul.mubr.bf16.gmra.mxu0 %v2543_v19 }
  0xdc   : > { %1358 = vmatmul.mubr.bf16.gmra.mxu1 %v2544_v20  ;;  %1204 = vmatprep.mubr.bf16.mxu0 %v2545_v21  ;;  %v401_v21 = vld [vmem:[#allocation2 + $0x68] sm:$0xff] }
  0xdd   : > { %1365 = vmatprep.mubr.bf16.mxu1 %v2547_v22 }
  0xe3   : > { %1205 = vmatmul.mubr.bf16.gmra.mxu0 %v2549_v23 }
  0xe4   : > { %1366 = vmatmul.mubr.bf16.gmra.mxu1 %v2550_v24  ;;  %1212 = vmatprep.mubr.bf16.mxu0 %v2551_v25 }
  0xe5   : > { %1373 = vmatprep.mubr.bf16.mxu1 %v2553_v26 }
  0xeb   : > { %1213 = vmatmul.mubr.bf16.gmra.mxu0 %v2555_v27 }
  0xec   : > { %1374 = vmatmul.mubr.bf16.gmra.mxu1 %v2556_v28  ;;  %1220 = vmatprep.mubr.bf16.mxu0 %v2557_v29 }
  0xed   : > { %1381 = vmatprep.mubr.bf16.mxu1 %v2559_v30  ;;  %v402_v30 = vld [vmem:[#allocation2 + $0x30] sm:$0xff] }
  0xf3   : > { %1221 = vmatmul.mubr.bf16.gmra.mxu0 %v2561_v31 }
  0xf4   : > { %1382 = vmatmul.mubr.bf16.gmra.mxu1 %v2562_v32 }
 0x13b   : > { %v2170_v33 = vpop.f32.mrf.mxu0 }
 0x13c   : > { %v2282_v34 = vpop.f32.mrf.mxu1 }
 0x13d   : > { %v2171_v35 = vpop.f32.mrf.mxu0 }
 0x13e   : > { %v2172_v36 = vadd.f32 %v2171_v35, %v2170_v33  ;;  %v2283_v37 = vpop.f32.mrf.mxu1 }
 0x13f   : > { %v2284_v38 = vadd.f32 %v2283_v37, %v2282_v34  ;;  %v2173_v39 = vpop.f32.mrf.mxu0 }
 0x140   : > { %v2285_v41 = vpop.f32.mrf.mxu1 }
 0x141   : > { %v1264_v42 = vadd.f32 %v2284_v38, %v2172_v36  ;;  %v2174_v43 = vpop.f32.mrf.mxu0 }
 0x142   : > { %v2175_v44 = vadd.f32 %v2174_v43, %v2173_v39  ;;  %v2286_v45 = vpop.f32.mrf.mxu1  ;;  %v403_v39 = vld [vmem:[#allocation2 + $0x48] sm:$0xff] }
 0x143   : > { %v1390_v46 = vadd.f32 %v1264_v42, %v396_v40  ;;  %v2287_v47 = vadd.f32 %v2286_v45, %v2285_v41  ;;  %v2176_v48 = vpop.f32.mrf.mxu0 }
 0x144   : > { %v2288_v50 = vpop.f32.mrf.mxu1 }
 0x145   : > { %1422 = vst [vmem:[#allocation2 + $0xb0] sm:$0xff] %v1390_v46  ;;  %v1267_v51 = vadd.f32 %v2287_v47, %v2175_v44  ;;  %v2177_v52 = vpop.f32.mrf.mxu0 }
 0x146   : > { %v2178_v53 = vadd.f32 %v2177_v52, %v2176_v48  ;;  %v2289_v54 = vpop.f32.mrf.mxu1  ;;  %v404_v48 = vld [vmem:[#allocation2 + $0x80] sm:$0xff] }
 0x147   : > { %v1391_v55 = vadd.f32 %v1267_v51, %v397_v49  ;;  %v2290_v56 = vadd.f32 %v2289_v54, %v2288_v50  ;;  %v2179_v57 = vpop.f32.mrf.mxu0 }
 0x148   : > { %v2291_v59 = vpop.f32.mrf.mxu1 }
 0x149   : > { %1423 = vst [vmem:[#allocation2] sm:$0xff] %v1391_v55  ;;  %v1272_v60 = vadd.f32 %v2290_v56, %v2178_v53  ;;  %v2180_v61 = vpop.f32.mrf.mxu0 }
 0x14a   : > { %v2181_v62 = vadd.f32 %v2180_v61, %v2179_v57  ;;  %v2292_v63 = vpop.f32.mrf.mxu1  ;;  %v405_v57 = vld [vmem:[#allocation2 + $0x88] sm:$0xff] }
 0x14b   : > { %v1392_v0 = vadd.f32 %v1272_v60, %v398_v58  ;;  %v2293_v1 = vadd.f32 %v2292_v63, %v2291_v59  ;;  %v2182_v2 = vpop.f32.mrf.mxu0 }
 0x14c   : > { %v2294_v4 = vpop.f32.mrf.mxu1 }
 0x14d   : > { %1424 = vst [vmem:[#allocation2 + $0xd8] sm:$0xff] %v1392_v0  ;;  %v1275_v5 = vadd.f32 %v2293_v1, %v2181_v62  ;;  %v2183_v6 = vpop.f32.mrf.mxu0 }
 0x14e   : > { %v2184_v7 = vadd.f32 %v2183_v6, %v2182_v2  ;;  %v2295_v8 = vpop.f32.mrf.mxu1  ;;  %v406_v2 = vld [vmem:[#allocation2 + $0xe8] sm:$0xff] }
 0x14f   : > { %v1393_v9 = vadd.f32 %v1275_v5, %v399_v3  ;;  %v2296_v10 = vadd.f32 %v2295_v8, %v2294_v4  ;;  %v2185_v11 = vpop.f32.mrf.mxu0 }
 0x150   : > { %v2297_v13 = vpop.f32.mrf.mxu1 }
 0x151   : > { %1425 = vst [vmem:[#allocation2 + $0x18] sm:$0xff] %v1393_v9  ;;  %v1280_v14 = vadd.f32 %v2296_v10, %v2184_v7  ;;  %v2186_v15 = vpop.f32.mrf.mxu0 }
 0x152   : > { %v2187_v16 = vadd.f32 %v2186_v15, %v2185_v11  ;;  %v2298_v17 = vpop.f32.mrf.mxu1  ;;  %v407_v11 = vld [vmem:[#allocation2 + $0xb8] sm:$0xff] }
 0x153   : > { %v1394_v18 = vadd.f32 %v1280_v14, %v400_v12  ;;  %v2299_v19 = vadd.f32 %v2298_v17, %v2297_v13  ;;  %v2188_v20 = vpop.f32.mrf.mxu0 }
 0x154   : > { %v2300_v22 = vpop.f32.mrf.mxu1 }
 0x155   : > { %1426 = vst [vmem:[#allocation2 + $0x50] sm:$0xff] %v1394_v18  ;;  %v1283_v23 = vadd.f32 %v2299_v19, %v2187_v16  ;;  %v2189_v24 = vpop.f32.mrf.mxu0 }
 0x156   : > { %v2190_v25 = vadd.f32 %v2189_v24, %v2188_v20  ;;  %v2301_v26 = vpop.f32.mrf.mxu1  ;;  %v408_v20 = vld [vmem:[#allocation2 + $0x60] sm:$0xff] }
 0x157   : > { %v1395_v27 = vadd.f32 %v1283_v23, %v401_v21  ;;  %v2302_v28 = vadd.f32 %v2301_v26, %v2300_v22  ;;  %v2191_v29 = vpop.f32.mrf.mxu0 }
 0x158   : > { %v2303_v31 = vpop.f32.mrf.mxu1 }
 0x159   : > { %1427 = vst [vmem:[#allocation2 + $0x68] sm:$0xff] %v1395_v27  ;;  %v1288_v32 = vadd.f32 %v2302_v28, %v2190_v25  ;;  %v2192_v33 = vpop.f32.mrf.mxu0 }
 0x15a   : > { %v2193_v34 = vadd.f32 %v2192_v33, %v2191_v29  ;;  %v2304_v35 = vpop.f32.mrf.mxu1  ;;  %v409_v29 = vld [vmem:[#allocation2 + $0xf0] sm:$0xff] }
 0x15b   : > { %v1396_v36 = vadd.f32 %v1288_v32, %v402_v30  ;;  %v2305_v37 = vadd.f32 %v2304_v35, %v2303_v31  ;;  %v2194_v38 = vpop.f32.mrf.mxu0 }
 0x15c   : > { %v2306_v40 = vpop.f32.mrf.mxu1 }
 0x15d   : > { %1428 = vst [vmem:[#allocation2 + $0x30] sm:$0xff] %v1396_v36  ;;  %v1291_v41 = vadd.f32 %v2305_v37, %v2193_v34  ;;  %v2195_v42 = vpop.f32.mrf.mxu0 }
 0x15e   : > { %v2196_v43 = vadd.f32 %v2195_v42, %v2194_v38  ;;  %v2307_v44 = vpop.f32.mrf.mxu1  ;;  %v410_v38 = vld [vmem:[#allocation2 + $0x8] sm:$0xff] }
 0x15f   : > { %v1397_v45 = vadd.f32 %v1291_v41, %v403_v39  ;;  %v2308_v46 = vadd.f32 %v2307_v44, %v2306_v40  ;;  %v2197_v47 = vpop.f32.mrf.mxu0 }
 0x160   : > { %v2309_v49 = vpop.f32.mrf.mxu1 }
 0x161   : > { %1429 = vst [vmem:[#allocation2 + $0x48] sm:$0xff] %v1397_v45  ;;  %v1296_v50 = vadd.f32 %v2308_v46, %v2196_v43  ;;  %v2198_v51 = vpop.f32.mrf.mxu0 }
 0x162   : > { %v2199_v52 = vadd.f32 %v2198_v51, %v2197_v47  ;;  %v2310_v53 = vpop.f32.mrf.mxu1  ;;  %v411_v47 = vld [vmem:[#allocation2 + $0x78] sm:$0xff] }
 0x163   : > { %v1398_v54 = vadd.f32 %v1296_v50, %v404_v48  ;;  %v2311_v55 = vadd.f32 %v2310_v53, %v2309_v49  ;;  %v2200_v56 = vpop.f32.mrf.mxu0 }
 0x164   : > { %v2312_v58 = vpop.f32.mrf.mxu1 }
 0x165   : > { %1430 = vst [vmem:[#allocation2 + $0x80] sm:$0xff] %v1398_v54  ;;  %v1299_v59 = vadd.f32 %v2311_v55, %v2199_v52  ;;  %v2201_v60 = vpop.f32.mrf.mxu0 }
 0x166   : > { %v2202_v61 = vadd.f32 %v2201_v60, %v2200_v56  ;;  %v2313_v62 = vpop.f32.mrf.mxu1  ;;  %v412_v56 = vld [vmem:[#allocation2 + $0x38] sm:$0xff] }
 0x167   : > { %v1399_v63 = vadd.f32 %v1299_v59, %v405_v57  ;;  %v2314_v0 = vadd.f32 %v2313_v62, %v2312_v58  ;;  %v2203_v1 = vpop.f32.mrf.mxu0 }
 0x168   : > { %v2315_v3 = vpop.f32.mrf.mxu1 }
 0x169   : > { %1431 = vst [vmem:[#allocation2 + $0x88] sm:$0xff] %v1399_v63  ;;  %v1304_v4 = vadd.f32 %v2314_v0, %v2202_v61  ;;  %v2204_v5 = vpop.f32.mrf.mxu0 }
 0x16a   : > { %v2205_v6 = vadd.f32 %v2204_v5, %v2203_v1  ;;  %v2316_v7 = vpop.f32.mrf.mxu1  ;;  %v413_v1 = vld [vmem:[#allocation2 + $0x58] sm:$0xff] }
 0x16b   : > { %v1400_v8 = vadd.f32 %v1304_v4, %v406_v2  ;;  %v2317_v9 = vadd.f32 %v2316_v7, %v2315_v3  ;;  %v2206_v10 = vpop.f32.mrf.mxu0 }
 0x16c   : > { %v2318_v12 = vpop.f32.mrf.mxu1 }
 0x16d   : > { %1432 = vst [vmem:[#allocation2 + $0xe8] sm:$0xff] %v1400_v8  ;;  %v1307_v13 = vadd.f32 %v2317_v9, %v2205_v6  ;;  %v2207_v14 = vpop.f32.mrf.mxu0 }
 0x16e   : > { %v2208_v15 = vadd.f32 %v2207_v14, %v2206_v10  ;;  %v2319_v16 = vpop.f32.mrf.mxu1  ;;  %v414_v10 = vld [vmem:[#allocation2 + $0x40] sm:$0xff] }
 0x16f   : > { %v1401_v17 = vadd.f32 %v1307_v13, %v407_v11  ;;  %v2320_v18 = vadd.f32 %v2319_v16, %v2318_v12  ;;  %v2209_v19 = vpop.f32.mrf.mxu0 }
 0x170   : > { %v2321_v21 = vpop.f32.mrf.mxu1 }
 0x171   : > { %1433 = vst [vmem:[#allocation2 + $0xb8] sm:$0xff] %v1401_v17  ;;  %v1312_v22 = vadd.f32 %v2320_v18, %v2208_v15  ;;  %v2210_v23 = vpop.f32.mrf.mxu0 }
 0x172   : > { %v2211_v24 = vadd.f32 %v2210_v23, %v2209_v19  ;;  %v2322_v25 = vpop.f32.mrf.mxu1  ;;  %v415_v19 = vld [vmem:[#allocation2 + $0xc8] sm:$0xff] }
 0x173   : > { %v1402_v26 = vadd.f32 %v1312_v22, %v408_v20  ;;  %v2323_v27 = vadd.f32 %v2322_v25, %v2321_v21  ;;  %v2212_v28 = vpop.f32.mrf.mxu0 }
 0x174   : > { %v2324_v30 = vpop.f32.mrf.mxu1 }
 0x175   : > { %1434 = vst [vmem:[#allocation2 + $0x60] sm:$0xff] %v1402_v26  ;;  %v1315_v31 = vadd.f32 %v2323_v27, %v2211_v24  ;;  %v2213_v32 = vpop.f32.mrf.mxu0 }
 0x176   : > { %v2214_v33 = vadd.f32 %v2213_v32, %v2212_v28  ;;  %v2325_v34 = vpop.f32.mrf.mxu1  ;;  %v416_v28 = vld [vmem:[#allocation2 + $0xe0] sm:$0xff] }
 0x177   : > { %v1403_v35 = vadd.f32 %v1315_v31, %v409_v29  ;;  %v2326_v36 = vadd.f32 %v2325_v34, %v2324_v30  ;;  %v2215_v37 = vpop.f32.mrf.mxu0 }
 0x178   : > { %v2327_v39 = vpop.f32.mrf.mxu1 }
 0x179   : > { %1435 = vst [vmem:[#allocation2 + $0xf0] sm:$0xff] %v1403_v35  ;;  %v1320_v40 = vadd.f32 %v2326_v36, %v2214_v33  ;;  %v2216_v41 = vpop.f32.mrf.mxu0 }
 0x17a   : > { %v2217_v42 = vadd.f32 %v2216_v41, %v2215_v37  ;;  %v2328_v43 = vpop.f32.mrf.mxu1  ;;  %v417_v37 = vld [vmem:[#allocation2 + $0x90] sm:$0xff] }
 0x17b   : > { %v1404_v44 = vadd.f32 %v1320_v40, %v410_v38  ;;  %v2329_v45 = vadd.f32 %v2328_v43, %v2327_v39  ;;  %v2218_v46 = vpop.f32.mrf.mxu0 }
 0x17c   : > { %v2330_v48 = vpop.f32.mrf.mxu1 }
 0x17d   : > { %1436 = vst [vmem:[#allocation2 + $0x8] sm:$0xff] %v1404_v44  ;;  %v1323_v49 = vadd.f32 %v2329_v45, %v2217_v42  ;;  %v2219_v50 = vpop.f32.mrf.mxu0 }
 0x17e   : > { %v2220_v51 = vadd.f32 %v2219_v50, %v2218_v46  ;;  %v2331_v52 = vpop.f32.mrf.mxu1  ;;  %v418_v46 = vld [vmem:[#allocation2 + $0x70] sm:$0xff] }
 0x17f   : > { %v1405_v53 = vadd.f32 %v1323_v49, %v411_v47  ;;  %v2332_v54 = vadd.f32 %v2331_v52, %v2330_v48  ;;  %v2221_v55 = vpop.f32.mrf.mxu0 }
 0x180   : > { %v2333_v57 = vpop.f32.mrf.mxu1 }
 0x181   : > { %1437 = vst [vmem:[#allocation2 + $0x78] sm:$0xff] %v1405_v53  ;;  %v1328_v58 = vadd.f32 %v2332_v54, %v2220_v51  ;;  %v2222_v59 = vpop.f32.mrf.mxu0 }
 0x182   : > { %v2223_v60 = vadd.f32 %v2222_v59, %v2221_v55  ;;  %v2334_v61 = vpop.f32.mrf.mxu1  ;;  %v419_v55 = vld [vmem:[#allocation2 + $0xc0] sm:$0xff] }
 0x183   : > { %v1406_v62 = vadd.f32 %v1328_v58, %v412_v56  ;;  %v2335_v63 = vadd.f32 %v2334_v61, %v2333_v57  ;;  %v2224_v0 = vpop.f32.mrf.mxu0 }
 0x184   : > { %v2336_v2 = vpop.f32.mrf.mxu1 }
 0x185   : > { %1438 = vst [vmem:[#allocation2 + $0x38] sm:$0xff] %v1406_v62  ;;  %v1331_v3 = vadd.f32 %v2335_v63, %v2223_v60  ;;  %v2225_v4 = vpop.f32.mrf.mxu0 }
 0x186   : > { %v2226_v5 = vadd.f32 %v2225_v4, %v2224_v0  ;;  %v2337_v6 = vpop.f32.mrf.mxu1  ;;  %v420_v0 = vld [vmem:[#allocation2 + $0xa8] sm:$0xff] }
 0x187   : > { %v1407_v7 = vadd.f32 %v1331_v3, %v413_v1  ;;  %v2338_v8 = vadd.f32 %v2337_v6, %v2336_v2  ;;  %v2227_v9 = vpop.f32.mrf.mxu0 }
 0x188   : > { %v2339_v11 = vpop.f32.mrf.mxu1 }
 0x189   : > { %1439 = vst [vmem:[#allocation2 + $0x58] sm:$0xff] %v1407_v7  ;;  %v1336_v12 = vadd.f32 %v2338_v8, %v2226_v5  ;;  %v2228_v13 = vpop.f32.mrf.mxu0 }
 0x18a   : > { %v2229_v14 = vadd.f32 %v2228_v13, %v2227_v9  ;;  %v2340_v15 = vpop.f32.mrf.mxu1  ;;  %v421_v9 = vld [vmem:[#allocation2 + $0xd0] sm:$0xff] }
 0x18b   : > { %v1408_v16 = vadd.f32 %v1336_v12, %v414_v10  ;;  %v2341_v17 = vadd.f32 %v2340_v15, %v2339_v11  ;;  %v2230_v18 = vpop.f32.mrf.mxu0 }
 0x18c   : > { %v2342_v20 = vpop.f32.mrf.mxu1 }
 0x18d   : > { %1440 = vst [vmem:[#allocation2 + $0x40] sm:$0xff] %v1408_v16  ;;  %v1339_v21 = vadd.f32 %v2341_v17, %v2229_v14  ;;  %v2231_v22 = vpop.f32.mrf.mxu0 }
 0x18e   : > { %v2232_v23 = vadd.f32 %v2231_v22, %v2230_v18  ;;  %v2343_v24 = vpop.f32.mrf.mxu1  ;;  %v422_v18 = vld [vmem:[#allocation2 + $0x10] sm:$0xff] }
 0x18f   : > { %v1409_v25 = vadd.f32 %v1339_v21, %v415_v19  ;;  %v2344_v26 = vadd.f32 %v2343_v24, %v2342_v20  ;;  %v2233_v27 = vpop.f32.mrf.mxu0 }
 0x190   : > { %v2345_v29 = vpop.f32.mrf.mxu1 }
 0x191   : > { %1441 = vst [vmem:[#allocation2 + $0xc8] sm:$0xff] %v1409_v25  ;;  %v1344_v30 = vadd.f32 %v2344_v26, %v2232_v23  ;;  %v2234_v31 = vpop.f32.mrf.mxu0 }
 0x192   : > { %v2235_v32 = vadd.f32 %v2234_v31, %v2233_v27  ;;  %v2346_v33 = vpop.f32.mrf.mxu1  ;;  %v423_v27 = vld [vmem:[#allocation2 + $0x28] sm:$0xff] }
 0x193   : > { %v1410_v34 = vadd.f32 %v1344_v30, %v416_v28  ;;  %v2347_v35 = vadd.f32 %v2346_v33, %v2345_v29  ;;  %v2236_v36 = vpop.f32.mrf.mxu0 }
 0x194   : > { %v2348_v38 = vpop.f32.mrf.mxu1 }
 0x195   : > { %1442 = vst [vmem:[#allocation2 + $0xe0] sm:$0xff] %v1410_v34  ;;  %v1347_v39 = vadd.f32 %v2347_v35, %v2235_v32  ;;  %v2237_v40 = vpop.f32.mrf.mxu0 }
 0x196   : > { %v2238_v41 = vadd.f32 %v2237_v40, %v2236_v36  ;;  %v2349_v42 = vpop.f32.mrf.mxu1  ;;  %v424_v36 = vld [vmem:[#allocation2 + $0xa0] sm:$0xff] }
 0x197   : > { %v1411_v43 = vadd.f32 %v1347_v39, %v417_v37  ;;  %v2350_v44 = vadd.f32 %v2349_v42, %v2348_v38  ;;  %v2239_v45 = vpop.f32.mrf.mxu0 }
 0x198   : > { %v2351_v47 = vpop.f32.mrf.mxu1 }
 0x199   : > { %1443 = vst [vmem:[#allocation2 + $0x90] sm:$0xff] %v1411_v43  ;;  %v1352_v48 = vadd.f32 %v2350_v44, %v2238_v41  ;;  %v2240_v49 = vpop.f32.mrf.mxu0 }
 0x19a   : > { %v2241_v50 = vadd.f32 %v2240_v49, %v2239_v45  ;;  %v2352_v51 = vpop.f32.mrf.mxu1  ;;  %v425_v45 = vld [vmem:[#allocation2 + $0xf8] sm:$0xff] }
 0x19b   : > { %v1412_v52 = vadd.f32 %v1352_v48, %v418_v46  ;;  %v2353_v53 = vadd.f32 %v2352_v51, %v2351_v47  ;;  %v2242_v54 = vpop.f32.mrf.mxu0 }
 0x19c   : > { %v2354_v56 = vpop.f32.mrf.mxu1 }
 0x19d   : > { %1444 = vst [vmem:[#allocation2 + $0x70] sm:$0xff] %v1412_v52  ;;  %v1355_v57 = vadd.f32 %v2353_v53, %v2241_v50  ;;  %v2243_v58 = vpop.f32.mrf.mxu0 }
 0x19e   : > { %v2244_v59 = vadd.f32 %v2243_v58, %v2242_v54  ;;  %v2355_v60 = vpop.f32.mrf.mxu1  ;;  %v426_v54 = vld [vmem:[#allocation2 + $0x20] sm:$0xff] }
 0x19f   : > { %v1413_v61 = vadd.f32 %v1355_v57, %v419_v55  ;;  %v2356_v62 = vadd.f32 %v2355_v60, %v2354_v56  ;;  %v2245_v63 = vpop.f32.mrf.mxu0 }
 0x1a0   : > { %v2357_v1 = vpop.f32.mrf.mxu1 }
 0x1a1   : > { %1445 = vst [vmem:[#allocation2 + $0xc0] sm:$0xff] %v1413_v61  ;;  %v1360_v2 = vadd.f32 %v2356_v62, %v2244_v59  ;;  %v2246_v3 = vpop.f32.mrf.mxu0  ;;  %v427_v62 = vld [vmem:[#allocation2 + $0x98] sm:$0xff] }
 0x1a2   : > { %v2247_v4 = vadd.f32 %v2246_v3, %v2245_v63  ;;  %v2358_v5 = vpop.f32.mrf.mxu1 }
 0x1a3   : > { %v1414_v6 = vadd.f32 %v1360_v2, %v420_v0  ;;  %v2359_v7 = vadd.f32 %v2358_v5, %v2357_v1  ;;  %v2248_v8 = vpop.f32.mrf.mxu0 }
 0x1a4   : > { %v2360_v10 = vpop.f32.mrf.mxu1 }
 0x1a5   : > { %1446 = vst [vmem:[#allocation2 + $0xa8] sm:$0xff] %v1414_v6  ;;  %v1363_v11 = vadd.f32 %v2359_v7, %v2247_v4  ;;  %v2249_v12 = vpop.f32.mrf.mxu0 }
 0x1a6   : > { %v2250_v13 = vadd.f32 %v2249_v12, %v2248_v8  ;;  %v2361_v14 = vpop.f32.mrf.mxu1 }
 0x1a7   : > { %v1415_v15 = vadd.f32 %v1363_v11, %v421_v9  ;;  %v2362_v16 = vadd.f32 %v2361_v14, %v2360_v10  ;;  %v2251_v17 = vpop.f32.mrf.mxu0 }
 0x1a8   : > { %v2363_v19 = vpop.f32.mrf.mxu1 }
 0x1a9   : > { %1447 = vst [vmem:[#allocation2 + $0xd0] sm:$0xff] %v1415_v15  ;;  %v1368_v20 = vadd.f32 %v2362_v16, %v2250_v13  ;;  %v2252_v21 = vpop.f32.mrf.mxu0 }
 0x1aa   : > { %v2253_v22 = vadd.f32 %v2252_v21, %v2251_v17  ;;  %v2364_v23 = vpop.f32.mrf.mxu1 }
 0x1ab   : > { %v1416_v24 = vadd.f32 %v1368_v20, %v422_v18  ;;  %v2365_v25 = vadd.f32 %v2364_v23, %v2363_v19  ;;  %v2254_v26 = vpop.f32.mrf.mxu0 }
 0x1ac   : > { %v2366_v28 = vpop.f32.mrf.mxu1 }
 0x1ad   : > { %1448 = vst [vmem:[#allocation2 + $0x10] sm:$0xff] %v1416_v24  ;;  %v1371_v29 = vadd.f32 %v2365_v25, %v2253_v22  ;;  %v2255_v30 = vpop.f32.mrf.mxu0 }
 0x1ae   : > { %v2256_v31 = vadd.f32 %v2255_v30, %v2254_v26  ;;  %v2367_v32 = vpop.f32.mrf.mxu1 }
 0x1af   : > { %v1417_v33 = vadd.f32 %v1371_v29, %v423_v27  ;;  %v2368_v34 = vadd.f32 %v2367_v32, %v2366_v28  ;;  %v2257_v35 = vpop.f32.mrf.mxu0 }
 0x1b0   : > { %v2369_v37 = vpop.f32.mrf.mxu1 }
 0x1b1   : > { %1449 = vst [vmem:[#allocation2 + $0x28] sm:$0xff] %v1417_v33  ;;  %v1376_v38 = vadd.f32 %v2368_v34, %v2256_v31  ;;  %v2258_v39 = vpop.f32.mrf.mxu0 }
 0x1b2   : > { %v2259_v40 = vadd.f32 %v2258_v39, %v2257_v35  ;;  %v2370_v41 = vpop.f32.mrf.mxu1 }
 0x1b3   : > { %v1418_v42 = vadd.f32 %v1376_v38, %v424_v36  ;;  %v2371_v43 = vadd.f32 %v2370_v41, %v2369_v37  ;;  %v2260_v44 = vpop.f32.mrf.mxu0 }
 0x1b4   : > { %v2372_v46 = vpop.f32.mrf.mxu1 }
 0x1b5   : > { %1450 = vst [vmem:[#allocation2 + $0xa0] sm:$0xff] %v1418_v42  ;;  %v1379_v47 = vadd.f32 %v2371_v43, %v2259_v40  ;;  %v2261_v48 = vpop.f32.mrf.mxu0 }
 0x1b6   : > { %v2262_v49 = vadd.f32 %v2261_v48, %v2260_v44  ;;  %v2373_v50 = vpop.f32.mrf.mxu1 }
 0x1b7   : > { %v1419_v51 = vadd.f32 %v1379_v47, %v425_v45  ;;  %v2374_v52 = vadd.f32 %v2373_v50, %v2372_v46  ;;  %v2263_v53 = vpop.f32.mrf.mxu0 }
 0x1b8   : > { %v2375_v55 = vpop.f32.mrf.mxu1 }
 0x1b9   : > { %1451 = vst [vmem:[#allocation2 + $0xf8] sm:$0xff] %v1419_v51  ;;  %v1384_v56 = vadd.f32 %v2374_v52, %v2262_v49  ;;  %v2264_v57 = vpop.f32.mrf.mxu0 }
 0x1ba   : > { %v2265_v58 = vadd.f32 %v2264_v57, %v2263_v53  ;;  %v2376_v59 = vpop.f32.mrf.mxu1 }
 0x1bb   : > { %v1420_v60 = vadd.f32 %v1384_v56, %v426_v54  ;;  %v2377_v61 = vadd.f32 %v2376_v59, %v2375_v55 }
 0x1bd   : > { %1452 = vst [vmem:[#allocation2 + $0x20] sm:$0xff] %v1420_v60  ;;  %v1387_v63 = vadd.f32 %v2377_v61, %v2265_v58  ;;  %1457 = sbr.rel (%p2149_p13) target bundleno = 834 (0x342), region = 63 }
 0x1bf   : > { %v1421_v0 = vadd.f32 %v1387_v63, %v427_v62 }
 0x1c1   : > { %1453 = vst [vmem:[#allocation2 + $0x98] sm:$0xff] %v1421_v0 }
 0x1c2   : > { %v1458_v1 = vld [vmem:[#allocation2 + $0xb0] sm:$0xff]  ;;  %v3078_v2 = vld [vmem:[%s3554_s2] ss:$0 sm:$0xff]  ;;  %v1529_v3 = vlaneseq  ;;  %v1460_v4 = vld [vmem:[#allocation2 + $0xd8] sm:$0xff] }
 0x1c3   : > { %v3081_v5 = vadd.f32 %v3078_v2, %v1458_v1  ;;  %v3084_v6 = vadd.f32 %v3078_v2, %v1460_v4  ;;  %v1459_v7 = vld [vmem:[#allocation2] sm:$0xff]  ;;  %v1461_v8 = vld [vmem:[#allocation2 + $0x18] sm:$0xff]  ;;  %v1462_v12 = vld [vmem:[#allocation2 + $0x50] sm:$0xff] }
 0x1c4   : > { %v3086_v9 = vand.u32 127, %v1529_v3  ;;  %v3089_v10 = vadd.f32 %v3078_v2, %v1459_v7  ;;  %v3092_v11 = vadd.f32 %v3078_v2, %v1461_v8  ;;  %v1463_v13 = vld [vmem:[#allocation2 + $0x68] sm:$0xff]  ;;  %v3108_v18 = vadd.f32 %v3078_v2, %v1462_v12  ;;  %v1464_v20 = vld [vmem:[#allocation2 + $0x30] sm:$0xff]  ;;  %v1466_v26 = vld [vmem:[#allocation2 + $0x80] sm:$0xff] }
 0x1c5   : > { %v3111_v19 = vadd.f32 %v3078_v2, %v1463_v13  ;;  %v1465_v21 = vld [vmem:[#allocation2 + $0x48] sm:$0xff]  ;;  %v3120_v24 = vadd.f32 %v3078_v2, %v1464_v20  ;;  %v3132_v30 = vadd.f32 %v3078_v2, %v1466_v26  ;;  %v1469_v33 = vld [vmem:[#allocation2 + $0xb8] sm:$0xff]  ;;  %v1470_v38 = vld [vmem:[#allocation2 + $0x60] sm:$0xff] }
 0x1c6   : > { %vm1531_vm0 = vcmp.lt.s32.totalorder %v3086_v9, 8  ;;  %v3123_v25 = vadd.f32 %v3078_v2, %v1465_v21  ;;  %v1467_v27 = vld [vmem:[#allocation2 + $0x88] sm:$0xff]  ;;  %v3147_v37 = vadd.f32 %v3078_v2, %v1469_v33  ;;  %v1471_v39 = vld [vmem:[#allocation2 + $0xf0] sm:$0xff]  ;;  %v3156_v42 = vadd.f32 %v3078_v2, %v1470_v38  ;;  %v1473_v45 = vld [vmem:[#allocation2 + $0x78] sm:$0xff] }
 0x1c7   : > { %v1532_v14 = vsel %vm1531_vm0, %v3081_v5, -inf  ;;  %v1534_v15 = vsel %vm1531_vm0, %v3084_v6, -inf  ;;  %v1533_v16 = vsel %vm1531_vm0, %v3089_v10, -inf  ;;  %v1535_v17 = vsel %vm1531_vm0, %v3092_v11, -inf  ;;  %v1468_v32 = vld [vmem:[#allocation2 + $0xe8] sm:$0xff]  ;;  %v1474_v50 = vld [vmem:[#allocation2 + $0x38] sm:$0xff] }
 0x1c8   : > { %1564 = vmax.xlane.f32.xlu0 %v1532_v14  ;;  %1568 = vmax.xlane.f32.xlu1 %v1534_v15  ;;  %v1536_v22 = vsel %vm1531_vm0, %v3108_v18, -inf  ;;  %v1537_v23 = vsel %vm1531_vm0, %v3111_v19, -inf  ;;  %v1538_v28 = vsel %vm1531_vm0, %v3120_v24, -inf  ;;  %v1539_v29 = vsel %vm1531_vm0, %v3123_v25, -inf  ;;  %v1472_v44 = vld [vmem:[#allocation2 + $0x8] sm:$0xff]  ;;  %v1475_v51 = vld [vmem:[#allocation2 + $0x58] sm:$0xff] }
 0x1c9   : > { %v3135_v31 = vadd.f32 %v3078_v2, %v1467_v27  ;;  %v1540_v34 = vsel %vm1531_vm0, %v3132_v30, -inf  ;;  %v3144_v36 = vadd.f32 %v3078_v2, %v1468_v32  ;;  %v1543_v41 = vsel %vm1531_vm0, %v3147_v37, -inf  ;;  %v1476_v56 = vld [vmem:[#allocation2 + $0x40] sm:$0xff]  ;;  %v1477_v57 = vld [vmem:[#allocation2 + $0xc8] sm:$0xff]  ;;  %v1479_v63 = vld [vmem:[#allocation2 + $0x90] sm:$0xff] }
 0x1ca   : > { %v3159_v43 = vadd.f32 %v3078_v2, %v1471_v39  ;;  %v1544_v46 = vsel %vm1531_vm0, %v3156_v42, -inf  ;;  %v3168_v48 = vadd.f32 %v3078_v2, %v1472_v44  ;;  %v3171_v49 = vadd.f32 %v3078_v2, %v1473_v45  ;;  %v1478_v62 = vld [vmem:[#allocation2 + $0xe0] sm:$0xff]  ;;  %v1480_v7 = vld [vmem:[#allocation2 + $0x70] sm:$0xff]  ;;  %v1485_v27 = vld [vmem:[#allocation2 + $0x28] sm:$0xff] }
 0x1cb   : > { %v1541_v35 = vsel %vm1531_vm0, %v3135_v31, -inf  ;;  %v1542_v40 = vsel %vm1531_vm0, %v3144_v36, -inf  ;;  %v3180_v54 = vadd.f32 %v3078_v2, %v1474_v50  ;;  %v3183_v55 = vadd.f32 %v3078_v2, %v1475_v51  ;;  %v1481_v8 = vld [vmem:[#allocation2 + $0xc0] sm:$0xff]  ;;  %v1484_v26 = vld [vmem:[#allocation2 + $0x10] sm:$0xff]  ;;  %v1489_v45 = vld [vmem:[#allocation2 + $0x98] sm:$0xff] }
 0x1cc   : > { %1566 = vmax.xlane.f32.xlu0 %v1533_v16  ;;  %1570 = vmax.xlane.f32.xlu1 %v1535_v17  ;;  %v1545_v47 = vsel %vm1531_vm0, %v3159_v43, -inf  ;;  %v1546_v52 = vsel %vm1531_vm0, %v3168_v48, -inf  ;;  %v1547_v53 = vsel %vm1531_vm0, %v3171_v49, -inf  ;;  %v3192_v60 = vadd.f32 %v3078_v2, %v1476_v56  ;;  %v1482_v16 = vld [vmem:[#allocation2 + $0xa8] sm:$0xff]  ;;  %v1483_v17 = vld [vmem:[#allocation2 + $0xd0] sm:$0xff]  ;;  %v1488_v44 = vld [vmem:[#allocation2 + $0x20] sm:$0xff] }
 0x1cd   : > { %v1548_v58 = vsel %vm1531_vm0, %v3180_v54, -inf  ;;  %v1549_v59 = vsel %vm1531_vm0, %v3183_v55, -inf  ;;  %v3195_v61 = vadd.f32 %v3078_v2, %v1477_v57  ;;  %v3204_v3 = vadd.f32 %v3078_v2, %v1478_v62 }
 0x1ce   : > { %v1550_v0 = vsel %vm1531_vm0, %v3192_v60, -inf  ;;  %v3207_v4 = vadd.f32 %v3078_v2, %v1479_v63  ;;  %v3216_v14 = vadd.f32 %v3078_v2, %v1480_v7  ;;  %v3219_v15 = vadd.f32 %v3078_v2, %v1481_v8 }
 0x1cf   : > { %v1551_v1 = vsel %vm1531_vm0, %v3195_v61, -inf  ;;  %v1552_v12 = vsel %vm1531_vm0, %v3204_v3, -inf  ;;  %v3240_v32 = vadd.f32 %v3078_v2, %v1484_v26  ;;  %v3243_v33 = vadd.f32 %v3078_v2, %v1485_v27 }
 0x1d0   : > { %1572 = vmax.xlane.f32.xlu0 %v1536_v22  ;;  %1574 = vmax.xlane.f32.xlu1 %v1537_v23  ;;  %v1553_v13 = vsel %vm1531_vm0, %v3207_v4, -inf  ;;  %v1554_v20 = vsel %vm1531_vm0, %v3216_v14, -inf  ;;  %v1555_v21 = vsel %vm1531_vm0, %v3219_v15, -inf  ;;  %v3228_v22 = vadd.f32 %v3078_v2, %v1482_v16 }
 0x1d1   : > { %v3231_v23 = vadd.f32 %v3078_v2, %v1483_v17  ;;  %v1558_v38 = vsel %vm1531_vm0, %v3240_v32, -inf  ;;  %v1559_v39 = vsel %vm1531_vm0, %v3243_v33, -inf  ;;  %v3264_v50 = vadd.f32 %v3078_v2, %v1488_v44 }
 0x1d2   : > { %v3267_v51 = vadd.f32 %v3078_v2, %v1489_v45 }
 0x1d4   : > { %1576 = vmax.xlane.f32.xlu0 %v1538_v28  ;;  %1578 = vmax.xlane.f32.xlu1 %v1539_v29  ;;  %v1556_v28 = vsel %vm1531_vm0, %v3228_v22, -inf  ;;  %v1557_v29 = vsel %vm1531_vm0, %v3231_v23, -inf }
 0x1d8   : > { %1580 = vmax.xlane.f32.xlu0 %v1540_v34  ;;  %1582 = vmax.xlane.f32.xlu1 %v1541_v35  ;;  %v1486_v34 = vld [vmem:[#allocation2 + $0xa0] sm:$0xff]  ;;  %v1487_v35 = vld [vmem:[#allocation2 + $0xf8] sm:$0xff] }
 0x1dc   : > { %1584 = vmax.xlane.f32.xlu0 %v1542_v40  ;;  %1586 = vmax.xlane.f32.xlu1 %v1543_v41  ;;  %v3252_v40 = vadd.f32 %v3078_v2, %v1486_v34  ;;  %v3255_v41 = vadd.f32 %v3078_v2, %v1487_v35 }
 0x1e0   : > { %1588 = vmax.xlane.f32.xlu0 %v1544_v46  ;;  %1590 = vmax.xlane.f32.xlu1 %v1545_v47  ;;  %v1560_v46 = vsel %vm1531_vm0, %v3252_v40, -inf  ;;  %v1561_v47 = vsel %vm1531_vm0, %v3255_v41, -inf }
 0x1e4   : > { %1592 = vmax.xlane.f32.xlu0 %v1546_v52  ;;  %1594 = vmax.xlane.f32.xlu1 %v1547_v53  ;;  %v1562_v52 = vsel %vm1531_vm0, %v3264_v50, -inf  ;;  %v1563_v53 = vsel %vm1531_vm0, %v3267_v51, -inf }
 0x1e8   : > { %1596 = vmax.xlane.f32.xlu0 %v1548_v58  ;;  %1598 = vmax.xlane.f32.xlu1 %v1549_v59 }
 0x1ec   : > { %1600 = vmax.xlane.f32.xlu0 %v1550_v0  ;;  %1602 = vmax.xlane.f32.xlu1 %v1551_v1 }
 0x1f0   : > { %1604 = vmax.xlane.f32.xlu0 %v1552_v12  ;;  %1606 = vmax.xlane.f32.xlu1 %v1553_v13 }
 0x1f4   : > { %1608 = vmax.xlane.f32.xlu0 %v1554_v20  ;;  %1610 = vmax.xlane.f32.xlu1 %v1555_v21 }
 0x1f8   : > { %1612 = vmax.xlane.f32.xlu0 %v1556_v28  ;;  %1614 = vmax.xlane.f32.xlu1 %v1557_v29 }
 0x1fc   : > { %1616 = vmax.xlane.f32.xlu0 %v1558_v38  ;;  %1618 = vmax.xlane.f32.xlu1 %v1559_v39 }
 0x200   : > { %1620 = vmax.xlane.f32.xlu0 %v1560_v46  ;;  %1622 = vmax.xlane.f32.xlu1 %v1561_v47 }
 0x204   : > { %1624 = vmax.xlane.f32.xlu0 %v1562_v52  ;;  %1626 = vmax.xlane.f32.xlu1 %v1563_v53 }
 0x251   : > { %v1565_v56 = vpop.xlane.xlu0 %1564  ;;  %v1569_v57 = vpop.xlane.xlu1 %1568 }
 0x252   : > { %v3276_v58 = vsub.f32 %v3081_v5, %v1565_v56  ;;  %v3279_v2 = vsub.f32 %v3084_v6, %v1569_v57 }
 0x254   : > { %v1660_v59 = vmul.f32 1.442695, %v3276_v58  ;;  %v1664_v62 = vmul.f32 1.442695, %v3279_v2 }
 0x255   : > { %v1567_v63 = vpop.xlane.xlu0 %1566  ;;  %v1571_v0 = vpop.xlane.xlu1 %1570 }
 0x256   : > { %2563 = vpow2.f32 %v1660_v59  ;;  %v3284_v1 = vsub.f32 %v3089_v10, %v1567_v63  ;;  %v3287_v7 = vsub.f32 %v3092_v11, %v1571_v0 }
 0x257   : > { %2565 = vpow2.f32 %v1664_v62 }
 0x258   : > { %v1662_v5 = vmul.f32 1.442695, %v3284_v1  ;;  %v1666_v8 = vmul.f32 1.442695, %v3287_v7 }
 0x259   : > { %v1573_v6 = vpop.xlane.xlu0 %1572  ;;  %v1575_v12 = vpop.xlane.xlu1 %1574 }
 0x25a   : > { %2567 = vpow2.f32 %v1662_v5  ;;  %v3292_v13 = vsub.f32 %v3108_v18, %v1573_v6  ;;  %v3295_v16 = vsub.f32 %v3111_v19, %v1575_v12 }
 0x25b   : > { %2569 = vpow2.f32 %v1666_v8 }
 0x25c   : > { %v1668_v10 = vmul.f32 1.442695, %v3292_v13  ;;  %v1670_v11 = vmul.f32 1.442695, %v3295_v16 }
 0x25d   : > { %v1577_v17 = vpop.xlane.xlu0 %1576  ;;  %v1579_v20 = vpop.xlane.xlu1 %1578 }
 0x25e   : > { %2571 = vpow2.f32 %v1668_v10  ;;  %v3300_v21 = vsub.f32 %v3120_v24, %v1577_v17  ;;  %v3303_v26 = vsub.f32 %v3123_v25, %v1579_v20 }
 0x25f   : > { %2573 = vpow2.f32 %v1670_v11 }
 0x260   : > { %v1672_v18 = vmul.f32 1.442695, %v3300_v21  ;;  %v1674_v19 = vmul.f32 1.442695, %v3303_v26 }
 0x261   : > { %v1581_v27 = vpop.xlane.xlu0 %1580  ;;  %v1583_v28 = vpop.xlane.xlu1 %1582 }
 0x262   : > { %2575 = vpow2.f32 %v1672_v18  ;;  %v3308_v29 = vsub.f32 %v3132_v30, %v1581_v27  ;;  %v3311_v34 = vsub.f32 %v3135_v31, %v1583_v28 }
 0x263   : > { %v2564_v35 = vpop.eup %2563  ;;  %2577 = vpow2.f32 %v1674_v19 }
 0x264   : > { %v2566_v24 = vpop.eup %2565  ;;  %v1676_v25 = vmul.f32 1.442695, %v3308_v29  ;;  %v1678_v38 = vmul.f32 1.442695, %v3311_v34  ;;  %v1724_v39 = vsel %vm1531_vm0, %v2564_v35, 0.0 }
 0x265   : > { %1756 = vadd.xlane.f32.xlu0 %v1724_v39  ;;  %v1585_v44 = vpop.xlane.xlu0 %1584  ;;  %v1587_v45 = vpop.xlane.xlu1 %1586  ;;  %v1726_v46 = vsel %vm1531_vm0, %v2566_v24, 0.0 }
 0x266   : > { %2579 = vpow2.f32 %v1676_v25  ;;  %v3318_v30 = vsub.f32 %v3144_v36, %v1585_v44  ;;  %v3321_v31 = vsub.f32 %v3147_v37, %v1587_v45 }
 0x267   : > { %v2568_v47 = vpop.eup %2567  ;;  %2581 = vpow2.f32 %v1678_v38 }
 0x268   : > { %v2570_v52 = vpop.eup %2569  ;;  %v1680_v53 = vmul.f32 1.442695, %v3318_v30  ;;  %v1682_v56 = vmul.f32 1.442695, %v3321_v31  ;;  %v1725_v57 = vsel %vm1531_vm0, %v2568_v47, 0.0 }
 0x269   : > { %1760 = vadd.xlane.f32.xlu0 %v1726_v46  ;;  %1758 = vadd.xlane.f32.xlu1 %v1725_v57  ;;  %v1589_v36 = vpop.xlane.xlu0 %1588  ;;  %v1591_v59 = vpop.xlane.xlu1 %1590  ;;  %v1727_v63 = vsel %vm1531_vm0, %v2570_v52, 0.0 }
 0x26a   : > { %2583 = vpow2.f32 %v1680_v53  ;;  %v3330_v37 = vsub.f32 %v3156_v42, %v1589_v36  ;;  %v3333_v62 = vsub.f32 %v3159_v43, %v1591_v59 }
 0x26b   : > { %v2572_v0 = vpop.eup %2571  ;;  %2585 = vpow2.f32 %v1682_v56 }
 0x26c   : > { %v2574_v5 = vpop.eup %2573  ;;  %v1684_v8 = vmul.f32 1.442695, %v3330_v37  ;;  %v1686_v6 = vmul.f32 1.442695, %v3333_v62  ;;  %v1728_v12 = vsel %vm1531_vm0, %v2572_v0, 0.0 }
 0x26d   : > { %1762 = vadd.xlane.f32.xlu1 %v1727_v63  ;;  %1764 = vadd.xlane.f32.xlu0 %v1728_v12  ;;  %v1593_v42 = vpop.xlane.xlu0 %1592  ;;  %v1595_v10 = vpop.xlane.xlu1 %1594  ;;  %v1729_v17 = vsel %vm1531_vm0, %v2574_v5, 0.0 }
 0x26e   : > { %2587 = vpow2.f32 %v1684_v8  ;;  %v3342_v43 = vsub.f32 %v3168_v48, %v1593_v42  ;;  %v3345_v11 = vsub.f32 %v3171_v49, %v1595_v10 }
 0x26f   : > { %v2576_v20 = vpop.eup %2575  ;;  %2589 = vpow2.f32 %v1686_v6 }
 0x270   : > { %v2578_v18 = vpop.eup %2577  ;;  %v1688_v19 = vmul.f32 1.442695, %v3342_v43  ;;  %v1690_v27 = vmul.f32 1.442695, %v3345_v11  ;;  %v1730_v28 = vsel %vm1531_vm0, %v2576_v20, 0.0 }
 0x271   : > { %1766 = vadd.xlane.f32.xlu1 %v1729_v17  ;;  %1768 = vadd.xlane.f32.xlu0 %v1730_v28  ;;  %v1597_v48 = vpop.xlane.xlu0 %1596  ;;  %v1599_v35 = vpop.xlane.xlu1 %1598  ;;  %v1731_v25 = vsel %vm1531_vm0, %v2578_v18, 0.0 }
 0x272   : > { %2591 = vpow2.f32 %v1688_v19  ;;  %v3354_v49 = vsub.f32 %v3180_v54, %v1597_v48  ;;  %v3357_v24 = vsub.f32 %v3183_v55, %v1599_v35 }
 0x273   : > { %v2580_v38 = vpop.eup %2579  ;;  %2593 = vpow2.f32 %v1690_v27 }
 0x274   : > { %v2582_v39 = vpop.eup %2581  ;;  %v1692_v44 = vmul.f32 1.442695, %v3354_v49  ;;  %v1694_v45 = vmul.f32 1.442695, %v3357_v24  ;;  %v1732_v46 = vsel %vm1531_vm0, %v2580_v38, 0.0 }
 0x275   : > { %1770 = vadd.xlane.f32.xlu1 %v1731_v25  ;;  %1772 = vadd.xlane.f32.xlu0 %v1732_v46  ;;  %v1601_v54 = vpop.xlane.xlu0 %1600  ;;  %v1603_v47 = vpop.xlane.xlu1 %1602  ;;  %v1733_v53 = vsel %vm1531_vm0, %v2582_v39, 0.0 }
 0x276   : > { %2595 = vpow2.f32 %v1692_v44  ;;  %v3366_v55 = vsub.f32 %v3192_v60, %v1601_v54  ;;  %v3369_v52 = vsub.f32 %v3195_v61, %v1603_v47 }
 0x277   : > { %v2584_v56 = vpop.eup %2583  ;;  %2597 = vpow2.f32 %v1694_v45 }
 0x278   : > { %v2586_v57 = vpop.eup %2585  ;;  %v1696_v36 = vmul.f32 1.442695, %v3366_v55  ;;  %v1698_v59 = vmul.f32 1.442695, %v3369_v52  ;;  %v1734_v63 = vsel %vm1531_vm0, %v2584_v56, 0.0 }
 0x279   : > { %1774 = vadd.xlane.f32.xlu1 %v1733_v53  ;;  %1776 = vadd.xlane.f32.xlu0 %v1734_v63  ;;  %v1605_v60 = vpop.xlane.xlu0 %1604  ;;  %v1607_v0 = vpop.xlane.xlu1 %1606  ;;  %v1735_v8 = vsel %vm1531_vm0, %v2586_v57, 0.0 }
 0x27a   : > { %2599 = vpow2.f32 %v1696_v36  ;;  %v3378_v61 = vsub.f32 %v3204_v3, %v1605_v60  ;;  %v3381_v5 = vsub.f32 %v3207_v4, %v1607_v0 }
 0x27b   : > { %v2588_v6 = vpop.eup %2587  ;;  %2601 = vpow2.f32 %v1698_v59 }
 0x27c   : > { %v2590_v12 = vpop.eup %2589  ;;  %v1700_v42 = vmul.f32 1.442695, %v3378_v61  ;;  %v1702_v10 = vmul.f32 1.442695, %v3381_v5  ;;  %v1736_v17 = vsel %vm1531_vm0, %v2588_v6, 0.0 }
 0x27d   : > { %1778 = vadd.xlane.f32.xlu1 %v1735_v8  ;;  %1780 = vadd.xlane.f32.xlu0 %v1736_v17  ;;  %v1609_v3 = vpop.xlane.xlu0 %1608  ;;  %v1611_v20 = vpop.xlane.xlu1 %1610  ;;  %v1737_v19 = vsel %vm1531_vm0, %v2590_v12, 0.0 }
 0x27e   : > { %2603 = vpow2.f32 %v1700_v42  ;;  %v3390_v4 = vsub.f32 %v3216_v14, %v1609_v3  ;;  %v3393_v18 = vsub.f32 %v3219_v15, %v1611_v20 }
 0x27f   : > { %v2592_v27 = vpop.eup %2591  ;;  %2605 = vpow2.f32 %v1702_v10 }
 0x280   : > { %v2594_v28 = vpop.eup %2593  ;;  %v1704_v48 = vmul.f32 1.442695, %v3390_v4  ;;  %v1706_v35 = vmul.f32 1.442695, %v3393_v18  ;;  %v1738_v25 = vsel %vm1531_vm0, %v2592_v27, 0.0 }
 0x281   : > { %1782 = vadd.xlane.f32.xlu1 %v1737_v19  ;;  %1784 = vadd.xlane.f32.xlu0 %v1738_v25  ;;  %v1613_v14 = vpop.xlane.xlu0 %1612  ;;  %v1615_v38 = vpop.xlane.xlu1 %1614  ;;  %v1739_v44 = vsel %vm1531_vm0, %v2594_v28, 0.0 }
 0x282   : > { %2607 = vpow2.f32 %v1704_v48  ;;  %v3402_v15 = vsub.f32 %v3228_v22, %v1613_v14  ;;  %v3405_v39 = vsub.f32 %v3231_v23, %v1615_v38 }
 0x283   : > { %v2596_v45 = vpop.eup %2595  ;;  %2609 = vpow2.f32 %v1706_v35 }
 0x284   : > { %v2598_v46 = vpop.eup %2597  ;;  %v1708_v54 = vmul.f32 1.442695, %v3402_v15  ;;  %v1710_v47 = vmul.f32 1.442695, %v3405_v39  ;;  %v1740_v53 = vsel %vm1531_vm0, %v2596_v45, 0.0 }
 0x285   : > { %1786 = vadd.xlane.f32.xlu1 %v1739_v44  ;;  %1788 = vadd.xlane.f32.xlu0 %v1740_v53  ;;  %v1617_v22 = vpop.xlane.xlu0 %1616  ;;  %v1619_v56 = vpop.xlane.xlu1 %1618  ;;  %v1741_v36 = vsel %vm1531_vm0, %v2598_v46, 0.0 }
 0x286   : > { %2611 = vpow2.f32 %v1708_v54  ;;  %v3414_v23 = vsub.f32 %v3240_v32, %v1617_v22  ;;  %v3417_v57 = vsub.f32 %v3243_v33, %v1619_v56 }
 0x287   : > { %v2600_v59 = vpop.eup %2599  ;;  %2613 = vpow2.f32 %v1710_v47 }
 0x288   : > { %v2602_v63 = vpop.eup %2601  ;;  %v1712_v60 = vmul.f32 1.442695, %v3414_v23  ;;  %v1714_v0 = vmul.f32 1.442695, %v3417_v57  ;;  %v1742_v8 = vsel %vm1531_vm0, %v2600_v59, 0.0 }
 0x289   : > { %1790 = vadd.xlane.f32.xlu1 %v1741_v36  ;;  %1792 = vadd.xlane.f32.xlu0 %v1742_v8  ;;  %v1621_v32 = vpop.xlane.xlu0 %1620  ;;  %v1623_v6 = vpop.xlane.xlu1 %1622  ;;  %v1743_v42 = vsel %vm1531_vm0, %v2602_v63, 0.0 }
 0x28a   : > { %2615 = vpow2.f32 %v1712_v60  ;;  %v3426_v33 = vsub.f32 %v3252_v40, %v1621_v32  ;;  %v3429_v12 = vsub.f32 %v3255_v41, %v1623_v6 }
 0x28b   : > { %v2604_v10 = vpop.eup %2603  ;;  %2617 = vpow2.f32 %v1714_v0 }
 0x28c   : > { %v2606_v17 = vpop.eup %2605  ;;  %v1716_v3 = vmul.f32 1.442695, %v3426_v33  ;;  %v1718_v20 = vmul.f32 1.442695, %v3429_v12  ;;  %v1744_v19 = vsel %vm1531_vm0, %v2604_v10, 0.0 }
 0x28d   : > { %1794 = vadd.xlane.f32.xlu1 %v1743_v42  ;;  %1796 = vadd.xlane.f32.xlu0 %v1744_v19  ;;  %v1625_v40 = vpop.xlane.xlu0 %1624  ;;  %v1627_v27 = vpop.xlane.xlu1 %1626  ;;  %v1745_v48 = vsel %vm1531_vm0, %v2606_v17, 0.0 }
 0x28e   : > { %2619 = vpow2.f32 %v1716_v3  ;;  %v3438_v41 = vsub.f32 %v3264_v50, %v1625_v40  ;;  %v3441_v28 = vsub.f32 %v3267_v51, %v1627_v27 }
 0x28f   : > { %v2608_v35 = vpop.eup %2607  ;;  %2621 = vpow2.f32 %v1718_v20 }
 0x290   : > { %v2610_v25 = vpop.eup %2609  ;;  %v1720_v14 = vmul.f32 1.442695, %v3438_v41  ;;  %v1722_v38 = vmul.f32 1.442695, %v3441_v28  ;;  %v1746_v44 = vsel %vm1531_vm0, %v2608_v35, 0.0 }
 0x291   : > { %1798 = vadd.xlane.f32.xlu1 %v1745_v48  ;;  %1800 = vadd.xlane.f32.xlu0 %v1746_v44  ;;  %v1747_v50 = vsel %vm1531_vm0, %v2610_v25, 0.0 }
 0x292   : > { %2623 = vpow2.f32 %v1720_v14 }
 0x293   : > { %v2612_v51 = vpop.eup %2611  ;;  %2625 = vpow2.f32 %v1722_v38 }
 0x294   : > { %v2614_v45 = vpop.eup %2613  ;;  %v1748_v46 = vsel %vm1531_vm0, %v2612_v51, 0.0 }
 0x295   : > { %1802 = vadd.xlane.f32.xlu1 %v1747_v50  ;;  %1804 = vadd.xlane.f32.xlu0 %v1748_v46  ;;  %v1749_v54 = vsel %vm1531_vm0, %v2614_v45, 0.0 }
 0x297   : > { %v2616_v47 = vpop.eup %2615 }
 0x298   : > { %v2618_v53 = vpop.eup %2617  ;;  %v1750_v22 = vsel %vm1531_vm0, %v2616_v47, 0.0 }
 0x299   : > { %1806 = vadd.xlane.f32.xlu1 %v1749_v54  ;;  %1808 = vadd.xlane.f32.xlu0 %v1750_v22  ;;  %v1751_v56 = vsel %vm1531_vm0, %v2618_v53, 0.0 }
 0x29b   : > { %v2620_v36 = vpop.eup %2619 }
 0x29c   : > { %v2622_v59 = vpop.eup %2621  ;;  %v1752_v63 = vsel %vm1531_vm0, %v2620_v36, 0.0 }
 0x29d   : > { %1810 = vadd.xlane.f32.xlu1 %v1751_v56  ;;  %1812 = vadd.xlane.f32.xlu0 %v1752_v63  ;;  %v1753_v60 = vsel %vm1531_vm0, %v2622_v59, 0.0 }
 0x29f   : > { %v2624_v0 = vpop.eup %2623 }
 0x2a0   : > { %v2626_v8 = vpop.eup %2625  ;;  %v1754_v32 = vsel %vm1531_vm0, %v2624_v0, 0.0 }
 0x2a1   : > { %1814 = vadd.xlane.f32.xlu1 %v1753_v60  ;;  %1816 = vadd.xlane.f32.xlu0 %v1754_v32  ;;  %v1755_v6 = vsel %vm1531_vm0, %v2626_v8, 0.0 }
 0x2a5   : > { %1818 = vadd.xlane.f32.xlu1 %v1755_v6 }
 0x2ee   : > { %v1757_v42 = vpop.xlane.xlu0 %1756 }
 0x2ef   : > { %2627 = vlog2.f32 %v1757_v42 }
 0x2f2   : > { %v1759_v10 = vpop.xlane.xlu1 %1758  ;;  %v1761_v17 = vpop.xlane.xlu0 %1760 }
 0x2f3   : > { %2629 = vlog2.f32 %v1759_v10 }
 0x2f4   : > { %2631 = vlog2.f32 %v1761_v17 }
 0x2f6   : > { %v1763_v3 = vpop.xlane.xlu1 %1762  ;;  %v1765_v20 = vpop.xlane.xlu0 %1764 }
 0x2f7   : > { %2633 = vlog2.f32 %v1763_v3 }
 0x2f8   : > { %2635 = vlog2.f32 %v1765_v20 }
 0x2fa   : > { %v1767_v19 = vpop.xlane.xlu1 %1766  ;;  %v1769_v40 = vpop.xlane.xlu0 %1768 }
 0x2fb   : > { %2637 = vlog2.f32 %v1767_v19 }
 0x2fc   : > { %v2628_v27 = vpop.eup %2627  ;;  %2639 = vlog2.f32 %v1769_v40 }
 0x2fd   : > { %v1821_v48 = vmul.f32 0.6931472, %v2628_v27 }
 0x2fe   : > { %v1771_v9 = vpop.xlane.xlu1 %1770  ;;  %v1773_v35 = vpop.xlane.xlu0 %1772 }
 0x2ff   : > { %v1884_v25 = vsub.f32 %v3276_v58, %v1821_v48  ;;  %2641 = vlog2.f32 %v1771_v9 }
 0x300   : > { %v2630_v14 = vpop.eup %2629  ;;  %2643 = vlog2.f32 %v1773_v35 }
 0x301   : > { %v2632_v38 = vpop.eup %2631  ;;  %1916 = vst [vmem:[%s2973_s30] sm:$0xff] %v1884_v25  ;;  %v1823_v44 = vmul.f32 0.6931472, %v2630_v14 }
 0x302   : > { %v1825_v50 = vmul.f32 0.6931472, %v2632_v38  ;;  %v1775_v51 = vpop.xlane.xlu1 %1774  ;;  %v1777_v45 = vpop.xlane.xlu0 %1776 }
 0x303   : > { %v1885_v46 = vsub.f32 %v3284_v1, %v1823_v44  ;;  %2645 = vlog2.f32 %v1775_v51 }
 0x304   : > { %v2634_v54 = vpop.eup %2633  ;;  %v1886_v47 = vsub.f32 %v3279_v2, %v1825_v50  ;;  %2647 = vlog2.f32 %v1777_v45 }
 0x305   : > { %v2636_v58 = vpop.eup %2635  ;;  %1917 = vst [vmem:[%s2973_s30 + $0x8] sm:$0xff] %v1885_v46  ;;  %v1827_v53 = vmul.f32 0.6931472, %v2634_v54 }
 0x306   : > { %1918 = vst [vmem:[%s2973_s30 + $0x10] sm:$0xff] %v1886_v47  ;;  %v1829_v22 = vmul.f32 0.6931472, %v2636_v58  ;;  %v1779_v56 = vpop.xlane.xlu1 %1778  ;;  %v1781_v36 = vpop.xlane.xlu0 %1780 }
 0x307   : > { %v1887_v59 = vsub.f32 %v3287_v7, %v1827_v53  ;;  %2649 = vlog2.f32 %v1779_v56 }
 0x308   : > { %v2638_v63 = vpop.eup %2637  ;;  %v1888_v1 = vsub.f32 %v3292_v13, %v1829_v22  ;;  %2651 = vlog2.f32 %v1781_v36 }
 0x309   : > { %v2640_v60 = vpop.eup %2639  ;;  %1919 = vst [vmem:[%s2973_s30 + $0x18] sm:$0xff] %v1887_v59  ;;  %v1831_v2 = vmul.f32 0.6931472, %v2638_v63 }
 0x30a   : > { %1920 = vst [vmem:[%s2973_s30 + $0x20] sm:$0xff] %v1888_v1  ;;  %v1833_v0 = vmul.f32 0.6931472, %v2640_v60  ;;  %v1783_v8 = vpop.xlane.xlu1 %1782  ;;  %v1785_v32 = vpop.xlane.xlu0 %1784 }
 0x30b   : > { %v1889_v6 = vsub.f32 %v3295_v16, %v1831_v2  ;;  %2653 = vlog2.f32 %v1783_v8 }
 0x30c   : > { %v2642_v42 = vpop.eup %2641  ;;  %v1890_v7 = vsub.f32 %v3300_v21, %v1833_v0  ;;  %2655 = vlog2.f32 %v1785_v32 }
 0x30d   : > { %v2644_v10 = vpop.eup %2643  ;;  %1921 = vst [vmem:[%s2973_s30 + $0x28] sm:$0xff] %v1889_v6  ;;  %v1835_v13 = vmul.f32 0.6931472, %v2642_v42 }
 0x30e   : > { %1922 = vst [vmem:[%s2973_s30 + $0x30] sm:$0xff] %v1890_v7  ;;  %v1837_v17 = vmul.f32 0.6931472, %v2644_v10  ;;  %v1787_v3 = vpop.xlane.xlu1 %1786  ;;  %v1789_v20 = vpop.xlane.xlu0 %1788 }
 0x30f   : > { %v1891_v19 = vsub.f32 %v3303_v26, %v1835_v13  ;;  %2657 = vlog2.f32 %v1787_v3 }
 0x310   : > { %v2646_v40 = vpop.eup %2645  ;;  %v1892_v16 = vsub.f32 %v3308_v29, %v1837_v17  ;;  %2659 = vlog2.f32 %v1789_v20 }
 0x311   : > { %v2648_v27 = vpop.eup %2647  ;;  %1923 = vst [vmem:[%s2973_s30 + $0x38] sm:$0xff] %v1891_v19  ;;  %v1839_v21 = vmul.f32 0.6931472, %v2646_v40 }
 0x312   : > { %1924 = vst [vmem:[%s2973_s30 + $0x40] sm:$0xff] %v1892_v16  ;;  %v1841_v48 = vmul.f32 0.6931472, %v2648_v27  ;;  %v1791_v9 = vpop.xlane.xlu1 %1790  ;;  %v1793_v35 = vpop.xlane.xlu0 %1792 }
 0x313   : > { %v1893_v25 = vsub.f32 %v3311_v34, %v1839_v21  ;;  %2661 = vlog2.f32 %v1791_v9 }
 0x314   : > { %v2650_v14 = vpop.eup %2649  ;;  %v1894_v26 = vsub.f32 %v3318_v30, %v1841_v48  ;;  %2663 = vlog2.f32 %v1793_v35 }
 0x315   : > { %v2652_v38 = vpop.eup %2651  ;;  %1925 = vst [vmem:[%s2973_s30 + $0x48] sm:$0xff] %v1893_v25  ;;  %v1843_v29 = vmul.f32 0.6931472, %v2650_v14 }
 0x316   : > { %1926 = vst [vmem:[%s2973_s30 + $0x50] sm:$0xff] %v1894_v26  ;;  %v1845_v44 = vmul.f32 0.6931472, %v2652_v38  ;;  %v1795_v50 = vpop.xlane.xlu1 %1794  ;;  %v1797_v51 = vpop.xlane.xlu0 %1796 }
 0x317   : > { %v1895_v45 = vsub.f32 %v3321_v31, %v1843_v29  ;;  %2665 = vlog2.f32 %v1795_v50 }
 0x318   : > { %v2654_v46 = vpop.eup %2653  ;;  %v1896_v34 = vsub.f32 %v3330_v37, %v1845_v44  ;;  %2667 = vlog2.f32 %v1797_v51 }
 0x319   : > { %v2656_v54 = vpop.eup %2655  ;;  %1927 = vst [vmem:[%s2973_s30 + $0x58] sm:$0xff] %v1895_v45  ;;  %v1847_v30 = vmul.f32 0.6931472, %v2654_v46 }
 0x31a   : > { %1928 = vst [vmem:[%s2973_s30 + $0x60] sm:$0xff] %v1896_v34  ;;  %v1849_v47 = vmul.f32 0.6931472, %v2656_v54  ;;  %v1799_v58 = vpop.xlane.xlu1 %1798  ;;  %v1801_v53 = vpop.xlane.xlu0 %1800 }
 0x31b   : > { %v1897_v22 = vsub.f32 %v3333_v62, %v1847_v30  ;;  %2669 = vlog2.f32 %v1799_v58 }
 0x31c   : > { %v2658_v56 = vpop.eup %2657  ;;  %v1898_v31 = vsub.f32 %v3342_v43, %v1849_v47  ;;  %2671 = vlog2.f32 %v1801_v53 }
 0x31d   : > { %v2660_v36 = vpop.eup %2659  ;;  %1929 = vst [vmem:[%s2973_s30 + $0x68] sm:$0xff] %v1897_v22  ;;  %v1851_v37 = vmul.f32 0.6931472, %v2658_v56 }
 0x31e   : > { %1930 = vst [vmem:[%s2973_s30 + $0x70] sm:$0xff] %v1898_v31  ;;  %v1853_v59 = vmul.f32 0.6931472, %v2660_v36  ;;  %v1803_v63 = vpop.xlane.xlu1 %1802  ;;  %v1805_v1 = vpop.xlane.xlu0 %1804 }
 0x31f   : > { %v1899_v60 = vsub.f32 %v3345_v11, %v1851_v37  ;;  %2673 = vlog2.f32 %v1803_v63 }
 0x320   : > { %v2662_v2 = vpop.eup %2661  ;;  %v1900_v62 = vsub.f32 %v3354_v49, %v1853_v59  ;;  %2675 = vlog2.f32 %v1805_v1 }
 0x321   : > { %v2664_v0 = vpop.eup %2663  ;;  %1931 = vst [vmem:[%s2973_s30 + $0x78] sm:$0xff] %v1899_v60  ;;  %v1855_v43 = vmul.f32 0.6931472, %v2662_v2 }
 0x322   : > { %1932 = vst [vmem:[%s2973_s30 + $0x80] sm:$0xff] %v1900_v62  ;;  %v1857_v8 = vmul.f32 0.6931472, %v2664_v0  ;;  %v1807_v32 = vpop.xlane.xlu1 %1806  ;;  %v1809_v6 = vpop.xlane.xlu0 %1808 }
 0x323   : > { %v1901_v42 = vsub.f32 %v3357_v24, %v1855_v43  ;;  %2677 = vlog2.f32 %v1807_v32 }
 0x324   : > { %v2666_v7 = vpop.eup %2665  ;;  %v1902_v11 = vsub.f32 %v3366_v55, %v1857_v8  ;;  %2679 = vlog2.f32 %v1809_v6 }
 0x325   : > { %v2668_v10 = vpop.eup %2667  ;;  %1933 = vst [vmem:[%s2973_s30 + $0x88] sm:$0xff] %v1901_v42  ;;  %v1859_v49 = vmul.f32 0.6931472, %v2666_v7 }
 0x326   : > { %1934 = vst [vmem:[%s2973_s30 + $0x90] sm:$0xff] %v1902_v11  ;;  %v1861_v13 = vmul.f32 0.6931472, %v2668_v10  ;;  %v1811_v17 = vpop.xlane.xlu1 %1810  ;;  %v1813_v3 = vpop.xlane.xlu0 %1812 }
 0x327   : > { %v1903_v20 = vsub.f32 %v3369_v52, %v1859_v49  ;;  %2681 = vlog2.f32 %v1811_v17 }
 0x328   : > { %v2670_v19 = vpop.eup %2669  ;;  %v1904_v24 = vsub.f32 %v3378_v61, %v1861_v13  ;;  %2683 = vlog2.f32 %v1813_v3 }
 0x329   : > { %v2672_v40 = vpop.eup %2671  ;;  %1935 = vst [vmem:[%s2973_s30 + $0x98] sm:$0xff] %v1903_v20  ;;  %v1863_v55 = vmul.f32 0.6931472, %v2670_v19 }
 0x32a   : > { %1936 = vst [vmem:[%s2973_s30 + $0xa0] sm:$0xff] %v1904_v24  ;;  %v1865_v16 = vmul.f32 0.6931472, %v2672_v40  ;;  %v1815_v27 = vpop.xlane.xlu1 %1814  ;;  %v1817_v21 = vpop.xlane.xlu0 %1816 }
 0x32b   : > { %v1905_v48 = vsub.f32 %v3381_v5, %v1863_v55  ;;  %2685 = vlog2.f32 %v1815_v27 }
 0x32c   : > { %v2674_v9 = vpop.eup %2673  ;;  %v1906_v52 = vsub.f32 %v3390_v4, %v1865_v16  ;;  %2687 = vlog2.f32 %v1817_v21 }
 0x32d   : > { %v2676_v35 = vpop.eup %2675  ;;  %1937 = vst [vmem:[%s2973_s30 + $0xa8] sm:$0xff] %v1905_v48  ;;  %v1867_v61 = vmul.f32 0.6931472, %v2674_v9 }
 0x32e   : > { %1938 = vst [vmem:[%s2973_s30 + $0xb0] sm:$0xff] %v1906_v52  ;;  %v1869_v25 = vmul.f32 0.6931472, %v2676_v35  ;;  %v1819_v14 = vpop.xlane.xlu1 %1818 }
 0x32f   : > { %v1907_v26 = vsub.f32 %v3393_v18, %v1867_v61  ;;  %2689 = vlog2.f32 %v1819_v14 }
 0x330   : > { %v2678_v38 = vpop.eup %2677  ;;  %v1908_v5 = vsub.f32 %v3402_v15, %v1869_v25 }
 0x331   : > { %v2680_v29 = vpop.eup %2679  ;;  %1939 = vst [vmem:[%s2973_s30 + $0xb8] sm:$0xff] %v1907_v26  ;;  %v1871_v44 = vmul.f32 0.6931472, %v2678_v38 }
 0x332   : > { %1940 = vst [vmem:[%s2973_s30 + $0xc0] sm:$0xff] %v1908_v5  ;;  %v1873_v4 = vmul.f32 0.6931472, %v2680_v29 }
 0x333   : > { %v1909_v50 = vsub.f32 %v3405_v39, %v1871_v44 }
 0x334   : > { %v2682_v51 = vpop.eup %2681  ;;  %v1910_v45 = vsub.f32 %v3414_v23, %v1873_v4 }
 0x335   : > { %v2684_v46 = vpop.eup %2683  ;;  %1941 = vst [vmem:[%s2973_s30 + $0xc8] sm:$0xff] %v1909_v50  ;;  %v1875_v18 = vmul.f32 0.6931472, %v2682_v51 }
 0x336   : > { %1942 = vst [vmem:[%s2973_s30 + $0xd0] sm:$0xff] %v1910_v45  ;;  %v1877_v34 = vmul.f32 0.6931472, %v2684_v46 }
 0x337   : > { %v1911_v15 = vsub.f32 %v3417_v57, %v1875_v18 }
 0x338   : > { %v2686_v54 = vpop.eup %2685  ;;  %v1912_v30 = vsub.f32 %v3426_v33, %v1877_v34 }
 0x339   : > { %v2688_v47 = vpop.eup %2687  ;;  %1943 = vst [vmem:[%s2973_s30 + $0xd8] sm:$0xff] %v1911_v15  ;;  %v1879_v58 = vmul.f32 0.6931472, %v2686_v54 }
 0x33a   : > { %1944 = vst [vmem:[%s2973_s30 + $0xe0] sm:$0xff] %v1912_v30  ;;  %v1881_v39 = vmul.f32 0.6931472, %v2688_v47 }
 0x33b   : > { %v1913_v23 = vsub.f32 %v3429_v12, %v1879_v58 }
 0x33c   : > { %v2690_v53 = vpop.eup %2689  ;;  %v1914_v22 = vsub.f32 %v3438_v41, %v1881_v39 }
 0x33d   : > { %1945 = vst [vmem:[%s2973_s30 + $0xe8] sm:$0xff] %v1913_v23  ;;  %v1883_v56 = vmul.f32 0.6931472, %v2690_v53 }
 0x33e   : > { %1946 = vst [vmem:[%s2973_s30 + $0xf0] sm:$0xff] %v1914_v22 }
 0x33f   : > { %v1915_v31 = vsub.f32 %v3441_v28, %v1883_v56 }
 0x341   : > { %1947 = vst [vmem:[%s2973_s30 + $0xf8] sm:$0xff] %v1915_v31 }
 0x342 PF: > { %s13_s18 = sadd.s32 1, %s2745_s18   ;;  %s3556_s12 = smov %s2725_s13 }
 0x343   : > { %p10_p0 = scmp.ge.s32.totalorder %s13_s18, 10   ;;  %s3557_s13 = smov %s2819_s25 }
 0x344   : > { %s3558_s14 = smov %s2737_s16  ;;  %s3559_s15 = smov %s2741_s17 }
 0x345   : > { %s3560_s16 = smov %s3563_s19  ;;  %s3561_s17 = smov %s3567_s20 }
 0x346   :  { %12 = sbr.rel (!%p10_p0) target bundleno = 4 (0x4), region = 101 }

</bundles_post_ra>
